<compile_context>
chip_gen: v7x
topology: tpu7x:2x2x1
jax: 0.10.0
libtpu: 0.0.40
codegen_flags: <defaults>
</compile_context>

<pallas_src>
import functools

import jax
import jax.numpy as jnp
import numpy as np
from jax.experimental import pallas as pl
from jax.experimental.pallas import tpu as pltpu

LANE = 128


def _round_up(v, m):
    return (v + m - 1) // m * m


def bottleneck_kernel(xc_ref, xh_ref, w1_ref, b1_ref, w2_ref, b2_ref,
                      w3_ref, b3_ref, o_ref, *, w_true, h_true, center_mask):
    """Grid step (n, r): output rows [r*TH, (r+1)*TH) of image n.

    xc_ref: (1, TH, Wp, Cp)   center rows, bf16 (zero-padded W / C / H)
    xh_ref: (1, 2, Wp, Cp)    rows r*TH-1 and (r+1)*TH (conv2 row halo), bf16
    w1_ref: (Cp, Wd)          1x1 conv #1, BN1 scale folded, bf16
    w2_ref: (9*Wd, Wd)        3x3 conv taps (ky, kx) row-major, BN2 folded
    w3_ref: (Wd, Cp)          1x1 conv #3, BN3 scale folded, bf16
    b*_ref: (1, C)            folded BatchNorm biases, f32
    o_ref : (1, TH, Wp, Cp)   output row tile, f32 (lane-dense Cp)
    """
    _, TH, Wp, Cp = o_ref.shape
    Wd = w1_ref.shape[1]
    n_out = TH * Wp
    r = pl.program_id(1)
    bf16 = jnp.bfloat16

    # ---- conv1 (1x1) + folded-BN bias + relu on the TH center rows ---------
    xc = xc_ref[0].reshape(n_out, Cp)                       # bf16, no cast
    h1c = jnp.dot(xc, w1_ref[...], preferred_element_type=jnp.float32)
    h1c = jnp.maximum(h1c + b1_ref[...], 0.0)               # (n_out, Wd) f32
    if center_mask:
        # Only when H was padded to a multiple of TH (awkward H): rows past
        # the true image must be zero so they act as conv2 zero padding.
        rowid = (jax.lax.broadcasted_iota(jnp.int32, (n_out, Wd), 0) // Wp
                 + r * TH)
        h1c = jnp.where(rowid < h_true, h1c, 0.0)

    # ---- conv1 on the two pre-gathered halo rows ----------------------------
    xh = xh_ref[0].reshape(2 * Wp, Cp)                      # bf16
    h1h = jnp.dot(xh, w1_ref[...], preferred_element_type=jnp.float32)
    h1h = jnp.maximum(h1h + b1_ref[...], 0.0)               # (2*Wp, Wd) f32
    # Out-of-image halo rows must be zero after bn/relu (conv2 zero padding):
    # two scalar-gated row zeroings instead of a full-slab iota mask.
    top_ok = (r > 0).astype(jnp.float32)
    bot_ok = ((r + 1) * TH < h_true).astype(jnp.float32)
    h1 = jnp.concatenate(
        [h1h[:Wp] * top_ok, h1c, h1h[Wp:] * bot_ok], axis=0)  # ((TH+2)*Wp, Wd)

    # ---- conv2 (3x3, pad=1) + bias + relu: 9 taps -> one K = 9*Wd matmul ----
    col = jax.lax.broadcasted_iota(jnp.int32, (n_out, Wd), 0) % Wp
    left_ok = col >= 1
    right_ok = col <= w_true - 2        # also masks zero-padded W columns
    taps = []
    for ky in range(3):
        base = h1[ky * Wp: ky * Wp + n_out]                 # (n_out, Wd) f32
        left = jnp.where(left_ok, pltpu.roll(base, shift=1, axis=0), 0.0)
        right = jnp.where(right_ok,
                          pltpu.roll(base, shift=n_out - 1, axis=0), 0.0)
        taps += [left.astype(bf16), base.astype(bf16), right.astype(bf16)]
    im2col = jnp.concatenate(taps, axis=-1)                 # (n_out, 9*Wd) bf16
    h2 = jnp.dot(im2col, w2_ref[...], preferred_element_type=jnp.float32)
    h2 = jnp.maximum(h2 + b2_ref[...], 0.0)                 # (n_out, Wd)

    # ---- conv3 (1x1) + bias + residual + relu -------------------------------
    h3 = jnp.dot(h2.astype(bf16), w3_ref[...],
                 preferred_element_type=jnp.float32)        # (n_out, Cp)
    out = jnp.maximum(h3 + b3_ref[...] + xc.astype(jnp.float32), 0.0)
    o_ref[0] = out.reshape(TH, Wp, Cp).astype(o_ref.dtype)


def _pick_tile(H, Wp, N, Cp, Wd, vmem_budget):
    """Pick the row tile TH (targets ~1024 output rows/step within budget)."""
    def est(th):
        rows = th * Wp
        x_blk = rows * Cp * 2 * 2                 # bf16 center block, 2 bufs
        halo_blk = 2 * Wp * Cp * 2 * 2
        o_blk = rows * Cp * 4 * 2                 # f32 out block, 2 bufs
        weights = (Cp * Wd + 9 * Wd * Wd + Wd * Cp) * 2 * 2
        inter = ((rows + 2 * Wp) * Wd * 4         # h1 slab (f32)
                 + rows * 9 * Wd * 2              # im2col (bf16)
                 + rows * Wd * 4                  # h2
                 + rows * Cp * 4 * 2)             # h3 / out staging
        return x_blk + halo_blk + o_blk + weights + inter

    th = min(H, max(8, -(-1024 // Wp)))           # ~1024 output rows per step
    if N == 1 and H >= 2:
        th = min(th, -(-H // 2))                  # >=2 grid steps (megacore)
    while th > 1 and est(th) > vmem_budget:
        th = max(1, (3 * th) // 4)

    div = 1
    for d in range(th, 0, -1):                    # prefer a divisor of H
        if H % d == 0:
            div = d
            break
    if 2 * div >= th:
        return div, H, False
    hp = -(-H // th) * th                         # pad H; kernel masks rows
    return th, hp, True


def bottleneck_forward(x_nchw, params, *, out_dtype=jnp.float32):
    """x_nchw: (N, Cin, H, W) float32 -> (N, planes, H, W) float32."""
    w1, w2, w3 = params["w1"], params["w2"], params["w3"]
    width, planes = w1.shape[1], w3.shape[1]
    N, Cin, H, W = x_nchw.shape
    assert Cin == planes, "identity shortcut requires inplanes == planes"

    Cp = _round_up(max(Cin, planes), LANE)        # lane-dense in/out channels
    Wd = _round_up(width, LANE)                   # lane-dense bottleneck width
    Wp = _round_up(W, 16)                         # free bf16 row collapses

    # Per-generation VMEM limit: ~75% of physical, capped at 100 MiB.
    try:
        vmem_cap = int(pltpu.get_tpu_info().vmem_capacity_bytes)
    except Exception:
        vmem_cap = 64 * 1024 * 1024
    vmem_limit = min((vmem_cap * 3) // 4, 100 * 1024 * 1024)

    TH, Hp, center_mask = _pick_tile(H, Wp, N, Cp, Wd, (vmem_limit * 3) // 5)
    R = Hp // TH

    # NHWC, zero-pad H/W/C, cast to bf16 once on the host.
    x = jnp.transpose(x_nchw, (0, 2, 3, 1))
    xc = jnp.pad(x, ((0, 0), (0, Hp - H), (0, Wp - W), (0, Cp - Cin)))
    xc = xc.astype(jnp.bfloat16)                              # (N, Hp, Wp, Cp)
    # Pre-gather the 2 conv2 halo rows per row tile (2/TH of the image).
    xpad = jnp.pad(xc, ((0, 0), (1, 1), (0, 0), (0, 0)))      # (N, Hp+2, Wp, Cp)
    halo = jnp.stack([xpad[:, 0:Hp:TH], xpad[:, TH + 1:Hp + 2:TH]], axis=2)
    halo = halo.reshape(N, 2 * R, Wp, Cp)                     # rows [2r, 2r+1]

    bf16 = jnp.bfloat16
    s1, s2, s3 = params["s1"], params["s2"], params["s3"]
    w1f = (w1 * s1).astype(bf16)                  # fold BN scale into weights
    w2f = (w2 * s2.reshape(1, 1, width)).astype(bf16)
    w3f = (w3 * s3).astype(bf16)
    w1p = jnp.zeros((Cp, Wd), bf16).at[:Cin, :width].set(w1f)
    w2p = (jnp.zeros((9, Wd, Wd), bf16)
           .at[:, :width, :width].set(w2f).reshape(9 * Wd, Wd))
    w3p = jnp.zeros((Wd, Cp), bf16).at[:width, :planes].set(w3f)

    def padvec(v, n):
        return jnp.pad(v.astype(jnp.float32), ((0, 0), (0, n - v.shape[1])))

    b1p, b2p = padvec(params["b1"], Wd), padvec(params["b2"], Wd)
    b3p = padvec(params["b3"], Cp)

    n_rows = N * Hp * Wp
    flops = (2 * (n_rows + N * R * 2 * Wp) * Cp * Wd
             + 2 * n_rows * (9 * Wd * Wd + Wd * Cp))
    bytes_accessed = (xc.size * 2 + halo.size * 2
                      + n_rows * Cp * np.dtype(out_dtype).itemsize
                      + (w1p.size + w2p.size + w3p.size) * 2
                      + (b1p.size + b2p.size + b3p.size) * 4)

    kernel = functools.partial(bottleneck_kernel, w_true=W, h_true=H,
                               center_mask=center_mask)

    out_nhwc = pl.pallas_call(
        kernel,
        out_shape=jax.ShapeDtypeStruct((N, Hp, Wp, Cp), out_dtype),
        grid_spec=pltpu.PrefetchScalarGridSpec(
            num_scalar_prefetch=0,
            grid=(N, R),
            in_specs=[
                pl.BlockSpec((1, TH, Wp, Cp), lambda n, r: (n, r, 0, 0)),
                pl.BlockSpec((1, 2, Wp, Cp), lambda n, r: (n, r, 0, 0)),
                pl.BlockSpec((Cp, Wd), lambda n, r: (0, 0)),
                pl.BlockSpec((1, Wd), lambda n, r: (0, 0)),
                pl.BlockSpec((9 * Wd, Wd), lambda n, r: (0, 0)),
                pl.BlockSpec((1, Wd), lambda n, r: (0, 0)),
                pl.BlockSpec((Wd, Cp), lambda n, r: (0, 0)),
                pl.BlockSpec((1, Cp), lambda n, r: (0, 0)),
            ],
            out_specs=pl.BlockSpec((1, TH, Wp, Cp), lambda n, r: (n, r, 0, 0)),
        ),
        compiler_params=pltpu.CompilerParams(
            dimension_semantics=("parallel", "parallel"),
            vmem_limit_bytes=int(vmem_limit)),
        cost_estimate=pl.CostEstimate(flops=int(flops), transcendentals=0,
                                      bytes_accessed=int(bytes_accessed)),
    )(xc, halo, w1p, b1p, w2p, b2p, w3p, b3p)

    out = out_nhwc[:, :H, :W, :planes]
    return jnp.transpose(out, (0, 3, 1, 2)).astype(jnp.float32)


# ------------------------- pure-JAX reference --------------------------------
def ref_forward(x_nchw, params):
    """Reference matching the kernel's quantization: bf16-rounded input and
    (scale-folded) weights, f32 accumulation, bf16-rounded identity."""
    x = jnp.transpose(x_nchw, (0, 2, 3, 1)).astype(jnp.float32)
    w1, w2, w3 = params["w1"], params["w2"], params["w3"]
    inplanes, width = w1.shape
    planes = w3.shape[1]

    def q(a):
        return a.astype(jnp.bfloat16).astype(jnp.float32)

    def conv(inp, w_hwio, pad):
        return jax.lax.conv_general_dilated(
            inp, w_hwio, (1, 1), pad,
            dimension_numbers=("NHWC", "HWIO", "NHWC"),
            precision=jax.lax.Precision.HIGHEST)

    def addb(h, b):
        return h + b.reshape(1, 1, 1, -1)

    xq = q(x)
    h = conv(xq, q(w1 * params["s1"]).reshape(1, 1, inplanes, width), "VALID")
    h = jnp.maximum(addb(h, params["b1"]), 0.0)
    h = conv(q(h),
             q(w2 * params["s2"].reshape(1, 1, width)).reshape(3, 3, width, width),
             [(1, 1), (1, 1)])
    h = jnp.maximum(addb(h, params["b2"]), 0.0)
    h = conv(q(h), q(w3 * params["s3"]).reshape(1, 1, width, planes), "VALID")
    h = addb(h, params["b3"])
    out = jnp.maximum(h + xq, 0.0)
    return jnp.transpose(out, (0, 3, 1, 2))


# --------------------------- parameter setup ---------------------------------
def make_params(key, inplanes, planes):
    width = planes // 2
    eps = 1e-5
    ks = jax.random.split(key, 12)

    w1 = 0.1 * jax.random.normal(ks[0], (inplanes, width), jnp.float32)
    w2 = 0.1 * jax.random.normal(ks[1], (9, width, width), jnp.float32)
    w3 = 0.1 * jax.random.normal(ks[2], (width, planes), jnp.float32)

    def fold_bn(kg, kb, km, kv, c):
        gamma = jax.random.uniform(kg, (c,), jnp.float32, 0.5, 1.5)
        beta = 0.1 * jax.random.normal(kb, (c,), jnp.float32)
        mean = 0.1 * jax.random.normal(km, (c,), jnp.float32)
        var = jax.random.uniform(kv, (c,), jnp.float32, 0.5, 1.5)
        scale = gamma / jnp.sqrt(var + eps)
        bias = beta - mean * scale
        return scale.reshape(1, c), bias.reshape(1, c)

    s1, b1 = fold_bn(ks[3], ks[4], ks[5], ks[6], width)
    s2, b2 = fold_bn(ks[7], ks[8], ks[9], ks[10], width)
    s3, b3 = fold_bn(*jax.random.split(ks[11], 4), planes)

    return dict(w1=w1, s1=s1, b1=b1, w2=w2, s2=s2, b2=b2,
                w3=w3, s3=s3, b3=b3)


if __name__ == "__main__":
    key = jax.random.PRNGKey(0)
    k_x, k_p = jax.random.split(key)

    N, inplanes, H, W = 2, 8, 16, 16
    planes = inplanes                        # residual add needs equal channels
    x = jax.random.normal(k_x, (N, inplanes, H, W), jnp.float32)
    params = make_params(k_p, inplanes, planes)

    out = jax.block_until_ready(bottleneck_forward(x, params))
    ref = jax.block_until_ready(ref_forward(x, params))
    np.testing.assert_allclose(np.asarray(out), np.asarray(ref),
                               rtol=2e-3, atol=2e-3)

    print("KERNEL_OK")
</pallas_src>

<mosaic_0001>
module attributes {stable_mosaic.version = 11 : i64} {
  func.func @bottleneck_kernel(%arg0: i32, %arg1: i32, %arg2: memref<1x16x16x128xbf16, #tpu.memory_space<vmem>>, %arg3: memref<1x2x16x128xbf16, #tpu.memory_space<vmem>>, %arg4: memref<128x128xbf16, #tpu.memory_space<vmem>>, %arg5: memref<1x128xf32, #tpu.memory_space<vmem>>, %arg6: memref<1152x128xbf16, #tpu.memory_space<vmem>>, %arg7: memref<1x128xf32, #tpu.memory_space<vmem>>, %arg8: memref<128x128xbf16, #tpu.memory_space<vmem>>, %arg9: memref<1x128xf32, #tpu.memory_space<vmem>>, %arg10: memref<1x16x16x128xf32, #tpu.memory_space<vmem>>) attributes {dimension_semantics = [#tpu.dimension_semantics<parallel>, #tpu.dimension_semantics<parallel>], iteration_bounds = array<i64: 2, 1>, scalar_prefetch = 0 : i64, scratch_operands = 0 : i64, tpu.core_type = #tpu.core_type<tc>, window_params = [{transform_indices = @transform_0, window_bounds = array<i64: 1, 16, 16, 128>}, {transform_indices = @transform_1, window_bounds = array<i64: 1, 2, 16, 128>}, {pipeline_mode = #tpu.pipeline_mode<synchronous>, transform_indices = @transform_2, window_bounds = array<i64: 128, 128>}, {pipeline_mode = #tpu.pipeline_mode<synchronous>, transform_indices = @transform_3, window_bounds = array<i64: 1, 128>}, {pipeline_mode = #tpu.pipeline_mode<synchronous>, transform_indices = @transform_4, window_bounds = array<i64: 1152, 128>}, {pipeline_mode = #tpu.pipeline_mode<synchronous>, transform_indices = @transform_5, window_bounds = array<i64: 1, 128>}, {pipeline_mode = #tpu.pipeline_mode<synchronous>, transform_indices = @transform_6, window_bounds = array<i64: 128, 128>}, {pipeline_mode = #tpu.pipeline_mode<synchronous>, transform_indices = @transform_7, window_bounds = array<i64: 1, 128>}, {transform_indices = @transform_8, window_bounds = array<i64: 1, 16, 16, 128>}]} {
    %c0 = arith.constant 0 : index
    %c0_0 = arith.constant 0 : index
    %c0_1 = arith.constant 0 : index
    %c0_2 = arith.constant 0 : index
    %0 = vector.load %arg2[%c0, %c0_0, %c0_1, %c0_2] : memref<1x16x16x128xbf16, #tpu.memory_space<vmem>>, vector<1x16x16x128xbf16>
    %1 = vector.shape_cast %0 : vector<1x16x16x128xbf16> to vector<16x16x128xbf16>
    %2 = vector.shape_cast %1 : vector<16x16x128xbf16> to vector<256x128xbf16>
    %c0_3 = arith.constant 0 : index
    %c0_4 = arith.constant 0 : index
    %3 = vector.load %arg4[%c0_3, %c0_4] : memref<128x128xbf16, #tpu.memory_space<vmem>>, vector<128x128xbf16>
    %cst = arith.constant dense<0.000000e+00> : vector<256x128xf32>
    %4 = tpu.matmul %2, %3, %cst {dimension_numbers = #tpu.dot_dimension_numbers<[1], [0], [0], [1], [0, 0, 1, 1], [], []>} : vector<256x128xbf16>, vector<128x128xbf16>, vector<256x128xf32> -> vector<256x128xf32>
    %c0_5 = arith.constant 0 : index
    %c0_6 = arith.constant 0 : index
    %5 = vector.load %arg5[%c0_5, %c0_6] : memref<1x128xf32, #tpu.memory_space<vmem>>, vector<1x128xf32>
    %6 = vector.broadcast %5 : vector<1x128xf32> to vector<256x128xf32>
    %7 = arith.addf %4, %6 : vector<256x128xf32>
    %cst_7 = arith.constant 0.000000e+00 : f32
    %8 = vector.broadcast %cst_7 : f32 to vector<256x128xf32>
    %9 = arith.maximumf %7, %8 : vector<256x128xf32>
    %c0_8 = arith.constant 0 : index
    %c0_9 = arith.constant 0 : index
    %c0_10 = arith.constant 0 : index
    %c0_11 = arith.constant 0 : index
    %10 = vector.load %arg3[%c0_8, %c0_9, %c0_10, %c0_11] : memref<1x2x16x128xbf16, #tpu.memory_space<vmem>>, vector<1x2x16x128xbf16>
    %11 = vector.shape_cast %10 : vector<1x2x16x128xbf16> to vector<2x16x128xbf16>
    %12 = vector.shape_cast %11 : vector<2x16x128xbf16> to vector<32x128xbf16>
    %c0_12 = arith.constant 0 : index
    %c0_13 = arith.constant 0 : index
    %13 = vector.load %arg4[%c0_12, %c0_13] : memref<128x128xbf16, #tpu.memory_space<vmem>>, vector<128x128xbf16>
    %cst_14 = arith.constant dense<0.000000e+00> : vector<32x128xf32>
    %14 = tpu.matmul %12, %13, %cst_14 {dimension_numbers = #tpu.dot_dimension_numbers<[1], [0], [0], [1], [0, 0, 1, 1], [], []>} : vector<32x128xbf16>, vector<128x128xbf16>, vector<32x128xf32> -> vector<32x128xf32>
    %c0_15 = arith.constant 0 : index
    %c0_16 = arith.constant 0 : index
    %15 = vector.load %arg5[%c0_15, %c0_16] : memref<1x128xf32, #tpu.memory_space<vmem>>, vector<1x128xf32>
    %16 = vector.broadcast %15 : vector<1x128xf32> to vector<32x128xf32>
    %17 = arith.addf %14, %16 : vector<32x128xf32>
    %cst_17 = arith.constant 0.000000e+00 : f32
    %18 = vector.broadcast %cst_17 : f32 to vector<32x128xf32>
    %19 = arith.maximumf %17, %18 : vector<32x128xf32>
    %c0_i32 = arith.constant 0 : i32
    %20 = arith.cmpi sgt, %arg1, %c0_i32 : i32
    %21 = arith.extui %20 : i1 to i32
    %22 = arith.sitofp %21 : i32 to f32
    %c1_i32 = arith.constant 1 : i32
    %23 = arith.addi %arg1, %c1_i32 : i32
    %c16_i32 = arith.constant 16 : i32
    %24 = arith.muli %23, %c16_i32 : i32
    %c16_i32_18 = arith.constant 16 : i32
    %25 = arith.cmpi slt, %24, %c16_i32_18 : i32
    %26 = arith.extui %25 : i1 to i32
    %27 = arith.sitofp %26 : i32 to f32
    %28 = vector.extract_strided_slice %19 {offsets = [0, 0], sizes = [16, 128], strides = [1, 1]} : vector<32x128xf32> to vector<16x128xf32>
    %29 = vector.broadcast %22 : f32 to vector<16x128xf32>
    %30 = arith.mulf %28, %29 : vector<16x128xf32>
    %31 = vector.extract_strided_slice %19 {offsets = [16, 0], sizes = [16, 128], strides = [1, 1]} : vector<32x128xf32> to vector<16x128xf32>
    %32 = vector.broadcast %27 : f32 to vector<16x128xf32>
    %33 = arith.mulf %31, %32 : vector<16x128xf32>
    %34 = tpu.concatenate %30, %9, %33 in 0 : vector<16x128xf32>, vector<256x128xf32>, vector<16x128xf32> -> vector<288x128xf32>
    %35 = tpu.iota {dimensions = array<i32: 0>} : vector<256x128xi32>
    %c16_i32_19 = arith.constant 16 : i32
    %c0_i32_20 = arith.constant 0 : i32
    %36 = arith.cmpi eq, %c16_i32_19, %c0_i32_20 : i32
    %c1_i32_21 = arith.constant 1 : i32
    %37 = arith.select %36, %c1_i32_21, %c16_i32_19 : i32
    %38 = vector.broadcast %37 : i32 to vector<256x128xi32>
    %39 = arith.remsi %35, %38 : vector<256x128xi32>
    %c0_i32_22 = arith.constant 0 : i32
    %40 = vector.broadcast %c0_i32_22 : i32 to vector<256x128xi32>
    %41 = arith.cmpi ne, %39, %40 : vector<256x128xi32>
    %c0_i32_23 = arith.constant 0 : i32
    %42 = vector.broadcast %c0_i32_23 : i32 to vector<256x128xi32>
    %43 = arith.cmpi slt, %39, %42 : vector<256x128xi32>
    %c0_i32_24 = arith.constant 0 : i32
    %44 = arith.cmpi slt, %37, %c0_i32_24 : i32
    %45 = vector.broadcast %44 : i1 to vector<256x128xi1>
    %46 = vector.broadcast %45 : vector<256x128xi1> to vector<256x128xi1>
    %47 = arith.xori %43, %46 : vector<256x128xi1>
    %48 = arith.andi %47, %41 : vector<256x128xi1>
    %49 = vector.broadcast %37 : i32 to vector<256x128xi32>
    %50 = arith.addi %39, %49 : vector<256x128xi32>
    %51 = arith.select %48, %50, %39 : vector<256x128xi1>, vector<256x128xi32>
    %c1_i32_25 = arith.constant 1 : i32
    %52 = vector.broadcast %c1_i32_25 : i32 to vector<256x128xi32>
    %53 = arith.cmpi sge, %51, %52 : vector<256x128xi32>
    %c14_i32 = arith.constant 14 : i32
    %54 = vector.broadcast %c14_i32 : i32 to vector<256x128xi32>
    %55 = arith.cmpi sle, %51, %54 : vector<256x128xi32>
    %56 = vector.extract_strided_slice %34 {offsets = [0, 0], sizes = [256, 128], strides = [1, 1]} : vector<288x128xf32> to vector<256x128xf32>
    %c1_i32_26 = arith.constant 1 : i32
    %57 = tpu.dynamic_rotate %56 by %c1_i32_26 dim 0 : vector<256x128xf32>, i32 -> vector<256x128xf32>
    %cst_27 = arith.constant 0.000000e+00 : f32
    %58 = vector.broadcast %cst_27 : f32 to vector<256x128xf32>
    %59 = arith.select %53, %57, %58 : vector<256x128xi1>, vector<256x128xf32>
    %c255_i32 = arith.constant 255 : i32
    %60 = tpu.dynamic_rotate %56 by %c255_i32 dim 0 : vector<256x128xf32>, i32 -> vector<256x128xf32>
    %cst_28 = arith.constant 0.000000e+00 : f32
    %61 = vector.broadcast %cst_28 : f32 to vector<256x128xf32>
    %62 = arith.select %55, %60, %61 : vector<256x128xi1>, vector<256x128xf32>
    %63 = arith.truncf %59 : vector<256x128xf32> to vector<256x128xbf16>
    %64 = arith.truncf %56 : vector<256x128xf32> to vector<256x128xbf16>
    %65 = arith.truncf %62 : vector<256x128xf32> to vector<256x128xbf16>
    %66 = vector.extract_strided_slice %34 {offsets = [16, 0], sizes = [256, 128], strides = [1, 1]} : vector<288x128xf32> to vector<256x128xf32>
    %c1_i32_29 = arith.constant 1 : i32
    %67 = tpu.dynamic_rotate %66 by %c1_i32_29 dim 0 : vector<256x128xf32>, i32 -> vector<256x128xf32>
    %cst_30 = arith.constant 0.000000e+00 : f32
    %68 = vector.broadcast %cst_30 : f32 to vector<256x128xf32>
    %69 = arith.select %53, %67, %68 : vector<256x128xi1>, vector<256x128xf32>
    %c255_i32_31 = arith.constant 255 : i32
    %70 = tpu.dynamic_rotate %66 by %c255_i32_31 dim 0 : vector<256x128xf32>, i32 -> vector<256x128xf32>
    %cst_32 = arith.constant 0.000000e+00 : f32
    %71 = vector.broadcast %cst_32 : f32 to vector<256x128xf32>
    %72 = arith.select %55, %70, %71 : vector<256x128xi1>, vector<256x128xf32>
    %73 = arith.truncf %69 : vector<256x128xf32> to vector<256x128xbf16>
    %74 = arith.truncf %66 : vector<256x128xf32> to vector<256x128xbf16>
    %75 = arith.truncf %72 : vector<256x128xf32> to vector<256x128xbf16>
    %76 = vector.extract_strided_slice %34 {offsets = [32, 0], sizes = [256, 128], strides = [1, 1]} : vector<288x128xf32> to vector<256x128xf32>
    %c1_i32_33 = arith.constant 1 : i32
    %77 = tpu.dynamic_rotate %76 by %c1_i32_33 dim 0 : vector<256x128xf32>, i32 -> vector<256x128xf32>
    %cst_34 = arith.constant 0.000000e+00 : f32
    %78 = vector.broadcast %cst_34 : f32 to vector<256x128xf32>
    %79 = arith.select %53, %77, %78 : vector<256x128xi1>, vector<256x128xf32>
    %c255_i32_35 = arith.constant 255 : i32
    %80 = tpu.dynamic_rotate %76 by %c255_i32_35 dim 0 : vector<256x128xf32>, i32 -> vector<256x128xf32>
    %cst_36 = arith.constant 0.000000e+00 : f32
    %81 = vector.broadcast %cst_36 : f32 to vector<256x128xf32>
    %82 = arith.select %55, %80, %81 : vector<256x128xi1>, vector<256x128xf32>
    %83 = arith.truncf %79 : vector<256x128xf32> to vector<256x128xbf16>
    %84 = arith.truncf %76 : vector<256x128xf32> to vector<256x128xbf16>
    %85 = arith.truncf %82 : vector<256x128xf32> to vector<256x128xbf16>
    %86 = tpu.concatenate %63, %64, %65, %73, %74, %75, %83, %84, %85 in 1 : vector<256x128xbf16>, vector<256x128xbf16>, vector<256x128xbf16>, vector<256x128xbf16>, vector<256x128xbf16>, vector<256x128xbf16>, vector<256x128xbf16>, vector<256x128xbf16>, vector<256x128xbf16> -> vector<256x1152xbf16>
    %c0_37 = arith.constant 0 : index
    %c0_38 = arith.constant 0 : index
    %87 = vector.load %arg6[%c0_37, %c0_38] : memref<1152x128xbf16, #tpu.memory_space<vmem>>, vector<1152x128xbf16>
    %cst_39 = arith.constant dense<0.000000e+00> : vector<256x128xf32>
    %88 = tpu.matmul %86, %87, %cst_39 {dimension_numbers = #tpu.dot_dimension_numbers<[1], [0], [0], [1], [0, 0, 1, 1], [], []>} : vector<256x1152xbf16>, vector<1152x128xbf16>, vector<256x128xf32> -> vector<256x128xf32>
    %c0_40 = arith.constant 0 : index
    %c0_41 = arith.constant 0 : index
    %89 = vector.load %arg7[%c0_40, %c0_41] : memref<1x128xf32, #tpu.memory_space<vmem>>, vector<1x128xf32>
    %90 = vector.broadcast %89 : vector<1x128xf32> to vector<256x128xf32>
    %91 = arith.addf %88, %90 : vector<256x128xf32>
    %cst_42 = arith.constant 0.000000e+00 : f32
    %92 = vector.broadcast %cst_42 : f32 to vector<256x128xf32>
    %93 = arith.maximumf %91, %92 : vector<256x128xf32>
    %94 = arith.truncf %93 : vector<256x128xf32> to vector<256x128xbf16>
    %c0_43 = arith.constant 0 : index
    %c0_44 = arith.constant 0 : index
    %95 = vector.load %arg8[%c0_43, %c0_44] : memref<128x128xbf16, #tpu.memory_space<vmem>>, vector<128x128xbf16>
    %cst_45 = arith.constant dense<0.000000e+00> : vector<256x128xf32>
    %96 = tpu.matmul %94, %95, %cst_45 {dimension_numbers = #tpu.dot_dimension_numbers<[1], [0], [0], [1], [0, 0, 1, 1], [], []>} : vector<256x128xbf16>, vector<128x128xbf16>, vector<256x128xf32> -> vector<256x128xf32>
    %c0_46 = arith.constant 0 : index
    %c0_47 = arith.constant 0 : index
    %97 = vector.load %arg9[%c0_46, %c0_47] : memref<1x128xf32, #tpu.memory_space<vmem>>, vector<1x128xf32>
    %98 = vector.broadcast %97 : vector<1x128xf32> to vector<256x128xf32>
    %99 = arith.addf %96, %98 : vector<256x128xf32>
    %100 = arith.extf %2 : vector<256x128xbf16> to vector<256x128xf32>
    %101 = arith.addf %99, %100 : vector<256x128xf32>
    %cst_48 = arith.constant 0.000000e+00 : f32
    %102 = vector.broadcast %cst_48 : f32 to vector<256x128xf32>
    %103 = arith.maximumf %101, %102 : vector<256x128xf32>
    %104 = vector.shape_cast %103 : vector<256x128xf32> to vector<16x16x128xf32>
    %c0_49 = arith.constant 0 : index
    %c0_50 = arith.constant 0 : index
    %c0_51 = arith.constant 0 : index
    %c0_52 = arith.constant 0 : index
    %105 = vector.load %arg10[%c0_49, %c0_50, %c0_51, %c0_52] : memref<1x16x16x128xf32, #tpu.memory_space<vmem>>, vector<1x16x16x128xf32>
    %106 = vector.shape_cast %105 : vector<1x16x16x128xf32> to vector<16x16x128xf32>
    %107 = vector.shape_cast %104 : vector<16x16x128xf32> to vector<1x16x16x128xf32>
    tpu.vector_store %arg10[%c0_49, %c0_50, %c0_51, %c0_52], %107 {strides = array<i32>} : memref<1x16x16x128xf32, #tpu.memory_space<vmem>>, vector<1x16x16x128xf32>,
    return
  }
  func.func @transform_0(%arg0: i32, %arg1: i32) -> (i32, i32, i32, i32) {
    %c0_i32 = arith.constant 0 : i32
    %c0_i32_0 = arith.constant 0 : i32
    %c0_i32_1 = arith.constant 0 : i32
    return %arg0, %arg1, %c0_i32, %c0_i32_0 : i32, i32, i32, i32
  }
  func.func @transform_1(%arg0: i32, %arg1: i32) -> (i32, i32, i32, i32) {
    %c0_i32 = arith.constant 0 : i32
    %c0_i32_0 = arith.constant 0 : i32
    %c0_i32_1 = arith.constant 0 : i32
    return %arg0, %arg1, %c0_i32, %c0_i32_0 : i32, i32, i32, i32
  }
  func.func @transform_2(%arg0: i32, %arg1: i32) -> (i32, i32) {
    %c0_i32 = arith.constant 0 : i32
    %c0_i32_0 = arith.constant 0 : i32
    %c0_i32_1 = arith.constant 0 : i32
    return %c0_i32, %c0_i32_0 : i32, i32
  }
  func.func @transform_3(%arg0: i32, %arg1: i32) -> (i32, i32) {
    %c0_i32 = arith.constant 0 : i32
    %c0_i32_0 = arith.constant 0 : i32
    %c0_i32_1 = arith.constant 0 : i32
    return %c0_i32, %c0_i32_0 : i32, i32
  }
  func.func @transform_4(%arg0: i32, %arg1: i32) -> (i32, i32) {
    %c0_i32 = arith.constant 0 : i32
    %c0_i32_0 = arith.constant 0 : i32
    %c0_i32_1 = arith.constant 0 : i32
    return %c0_i32, %c0_i32_0 : i32, i32
  }
  func.func @transform_5(%arg0: i32, %arg1: i32) -> (i32, i32) {
    %c0_i32 = arith.constant 0 : i32
    %c0_i32_0 = arith.constant 0 : i32
    %c0_i32_1 = arith.constant 0 : i32
    return %c0_i32, %c0_i32_0 : i32, i32
  }
  func.func @transform_6(%arg0: i32, %arg1: i32) -> (i32, i32) {
    %c0_i32 = arith.constant 0 : i32
    %c0_i32_0 = arith.constant 0 : i32
    %c0_i32_1 = arith.constant 0 : i32
    return %c0_i32, %c0_i32_0 : i32, i32
  }
  func.func @transform_7(%arg0: i32, %arg1: i32) -> (i32, i32) {
    %c0_i32 = arith.constant 0 : i32
    %c0_i32_0 = arith.constant 0 : i32
    %c0_i32_1 = arith.constant 0 : i32
    return %c0_i32, %c0_i32_0 : i32, i32
  }
  func.func @transform_8(%arg0: i32, %arg1: i32) -> (i32, i32, i32, i32) {
    %c0_i32 = arith.constant 0 : i32
    %c0_i32_0 = arith.constant 0 : i32
    %c0_i32_1 = arith.constant 0 : i32
    return %arg0, %arg1, %c0_i32, %c0_i32_0 : i32, i32, i32, i32
  }
}

</mosaic_0001>

<bundles_post_ra>
// kernel: tpu_custom_call.1
= control target key start
LH: loop header
LB: loop body
LE: loop exit
PB: predicated region body
PF: predicated region fallthrough
CT: control target
= control target key end

     0   :  { %s7261_s0 = inlined_call_operand.hbm [shape: bf16[2,16,16,128], index: 0, kind: input, shape index: {}]   ;;  %s7262_s1 = inlined_call_operand.hbm [shape: bf16[2,2,16,128], index: 1, kind: input, shape index: {}]   ;;  %s7263_s2 = inlined_call_operand.hbm [shape: bf16[128,128], index: 2, kind: input, shape index: {}]   ;;  %s7264_s3 = inlined_call_operand.vmem [shape: f32[1,128], index: 3, kind: input, shape index: {}]   ;;  %s7265_s4 = inlined_call_operand.hbm [shape: bf16[1152,128], index: 4, kind: input, shape index: {}]   ;;  %s7266_s5 = inlined_call_operand.vmem [shape: f32[1,128], index: 5, kind: input, shape index: {}]   ;;  %s7267_s6 = inlined_call_operand.hbm [shape: bf16[128,128], index: 6, kind: input, shape index: {}]   ;;  %s7268_s7 = inlined_call_operand.vmem [shape: f32[1,128], index: 7, kind: input, shape index: {}]   ;;  %s7269_s8 = inlined_call_operand.hbm [shape: f32[2,16,16,128], index: 8, kind: output, shape index: {}]  }
   0x1   :  { %7360 = sst [smem:[#allocation52_spill]] %s7261_s0 }
   0x2   :  { %7361 = sst [smem:[#allocation53_spill]] %s7263_s2 }
   0x3   :  { %7362 = sst [smem:[#allocation54_spill]] %s7265_s4 }
   0x4   :  { %7363 = sst [smem:[#allocation55_spill]] %s7267_s6 }
   0x5   :  { %7364 = sst [smem:[#allocation56_spill]] %s7269_s8 }
   0x6   :  { %13 = vsyncpa [#allocation3], 0 }
   0x7   :  { %15 = vsyncpa [#allocation3 + $0x1], 0 }
   0x8   :  { %16 = vsyncpa [#allocation6], 0 }
   0x9   :  { %18 = vsyncpa [#allocation6 + $0x1], 0 }
   0xa   :  { %19 = vsyncpa [#allocation9], 0 }
   0xb   :  { %20 = vsyncpa [#allocation4], 0 }
   0xc   :  { %22 = vsyncpa [#allocation4 + $0x1], 0  ;;  %s5473_s27 = smov 0   ;;  %s5475_s28 = smov 0  }
   0xd   :  { %s5477_s29 = smov 0   ;;  %s5479_s30 = smov 0  }
   0xe   :  { %s5481_s9 = smov 0   ;;  %s5483_s10 = smov 0  }
   0xf LB: > { %7365 = sst [smem:[#allocation17_spill]] %s5395_s27  ;;  %s5504_s11 = sadd.s32 4294967295, %s5415_s10   ;;  %s5415_s10 = sphi %s5483_s10, %s28_s10   ;;  %s5411_s9 = sphi %s5481_s9, %s7601_s9   ;;  %s5407_s30 = sphi %s5479_s30, %s7600_s30   ;;  %s5403_s29 = sphi %s5477_s29, %s7599_s29   ;;  %s5399_s28 = sphi %s5475_s28, %s7598_s28   ;;  %s5395_s27 = sphi %s5473_s27, %s7597_s27  }
  0x10   : > { %7366 = sst [smem:[#allocation18_spill]] %s5407_s30  ;;  %s3802_s12 = sadd.s32 4294967294, %s5415_s10  }
  0x11   : > { %p62_p0 = scmp.ne.s32.totalorder %s5399_s28, %s5395_s27  ;;  %p7270_p1 = scmp.eq.s32.totalorder %s5504_s11, 0 }
  0x12   : > { %p248_p3 = scmp.eq.s32.totalorder %s3802_s12, 1  ;;  %p3803_p5 = scmp.ge.s32.totalorder %s5415_s10, 1 }
  0x13   : > { %p5513_p4 = por %p7270_p1, %p62_p0  ;;  %p255_p7 = scmp.lt.s32.totalorder %s5415_s10, 3 }
  0x14   : > { %p5518_p6 = por %p248_p3, %p62_p0  ;;  %s5417_s16 = smov [#allocation7]  }
  0x15   : > { %s7367_s13 = scalar_select %p5513_p4, 1, 0 }
  0x16   : > { %s7368_s14 = scalar_select %p5518_p6, 1, 0 }
  0x17   : > { %p5523_p8 = pnand %p3803_p5, %p255_p7  ;;  %s267_s17 = sshll.u32 %s5417_s16, 4  ;;  %s5527_s17 = int_to_ptr.vmem [resolvable:$true] %s267_s17 }
  0x18   : > { %7369 = sst [smem:[#allocation19_spill]] %s7368_s14  ;;  %s5418_s19 = smov [#allocation8]  }
  0x19   : > { %s7370_s15 = scalar_select %p5523_p8, 1, 0 }
  0x1a   : > { %p4954_p9 = pneg %p5523_p8  ;;  %s283_s20 = sshll.u32 %s5418_s19, 4  ;;  %s5538_s20 = int_to_ptr.vmem [resolvable:$true] %s283_s20 }
  0x1b   : > { %s5419_s21 = smov [#allocation10]   ;;  %s7372_s2 = sld [smem:[#allocation53_spill]] }
  0x1c   : > { %p5534_p11 = pnand %p4954_p9, %p7270_p1  ;;  %s5540_s22 = sshll.u32 %s5419_s21, 4  ;;  %s300_s22 = int_to_ptr.vmem [resolvable:$true] %s5540_s22 }
  0x1e   : > { %p5550_p13 = pneg %p5534_p11 }
  0x21   : > { %s5177_s25 = scalar_lea.hbm %s7372_s2, 1024 }
  0x22   : > { %p5178_p12 = scmp.ne.s32.totalorder %s7372_s2, %s5177_s25  ;;  %p5184_p5 = scmp.lt.u32.totalorder %s5177_s25, %s7372_s2 }
  0x24   : > { %p5180_p0 = pnand %p5550_p13, %p5178_p12 }
  0x26   : > { %p5181_p3 = pneg %p5180_p0 }
  0x28   : > { %p5186_p7 = pnand %p5184_p5, %p5181_p3 }
  0x2a   : > { %5189 = shalt.err (!%p5186_p7)
}
  0x2b   : > { %s5190_s23 = scalar_lea.vmem %s5527_s17, 1024  ;;  %p5198_p2 = scmp.lt.s32.totalorder %s5527_s17, %s5527_s17 }
  0x2c   : > { %p5191_p9 = scmp.ne.s32.totalorder %s5527_s17, %s5190_s23  ;;  %p5199_p6 = scmp.lt.s32.totalorder %s5190_s23, %s5190_s23 }
  0x2e   : > { %p5193_p10 = pnand %p5191_p9, %p5550_p13  ;;  %p5200_p12 = por %p5199_p6, %p5198_p2 }
  0x30   : > { %p5194_p1 = pneg %p5193_p10 }
  0x32   : > { %p5201_p0 = pnand %p5200_p12, %p5194_p1 }
  0x34   : > { %5204 = shalt.err (!%p5201_p0)
}
  0x35   : > { %s7276_s24 = smov 64   ;;  %s7278_s25 = smov 4  }
  0x36   : > { %4957 = dma.hbm_to_vmem [thread:$0]  (!%p5534_p11), %s7372_s2, 1024, %s5527_s17, [#allocation6], %s7276_s24, %s7276_s24, %s7278_s25  }
  0x37   : > { %s7374_s4 = sld [smem:[#allocation54_spill]] }
  0x3d   : > { %s5205_s23 = scalar_lea.hbm %s7374_s4, 9216 }
  0x3e   : > { %p5206_p1 = scmp.ne.s32.totalorder %s7374_s4, %s5205_s23  ;;  %p5212_p10 = scmp.lt.u32.totalorder %s5205_s23, %s7374_s4 }
  0x40   : > { %p5208_p2 = pnand %p5206_p1, %p5550_p13 }
  0x42   : > { %p5209_p6 = pneg %p5208_p2 }
  0x44   : > { %p5214_p3 = pnand %p5212_p10, %p5209_p6 }
  0x46   : > { %5217 = shalt.err (!%p5214_p3)
}
  0x47   : > { %s5218_s17 = scalar_lea.vmem %s5538_s20, 9216  ;;  %p5226_p12 = scmp.lt.s32.totalorder %s5538_s20, %s5538_s20 }
  0x48   : > { %p5219_p5 = scmp.ne.s32.totalorder %s5538_s20, %s5218_s17  ;;  %p5227_p0 = scmp.lt.s32.totalorder %s5218_s17, %s5218_s17 }
  0x4a   : > { %p5221_p7 = pnand %p5219_p5, %p5550_p13  ;;  %p5228_p1 = por %p5227_p0, %p5226_p12 }
  0x4c   : > { %p5222_p9 = pneg %p5221_p7 }
  0x4e   : > { %p5229_p2 = pnand %p5228_p1, %p5222_p9 }
  0x50   : > { %5232 = shalt.err (!%p5229_p2)
}
  0x51   : > { %4960 = dma.hbm_to_vmem [thread:$0]  (!%p5534_p11), %s7374_s4, 9216, %s5538_s20, [#allocation9], %s7276_s24, %s7276_s24, %s7278_s25  }
  0x52   : > { %s7375_s6 = sld [smem:[#allocation55_spill]] }
  0x58   : > { %s5233_s26 = scalar_lea.hbm %s7375_s6, 1024 }
  0x59   : > { %p5234_p6 = scmp.ne.s32.totalorder %s7375_s6, %s5233_s26  ;;  %p5240_p5 = scmp.lt.u32.totalorder %s5233_s26, %s7375_s6 }
  0x5b   : > { %p5236_p10 = pnand %p5234_p6, %p5550_p13 }
  0x5d   : > { %p5237_p3 = pneg %p5236_p10 }
  0x5f   : > { %p5242_p7 = pnand %p5240_p5, %p5237_p3 }
  0x61   : > { %5245 = shalt.err (!%p5242_p7)
}
  0x62   : > { %s5246_s17 = scalar_lea.vmem %s300_s22, 1024  ;;  %p5254_p1 = scmp.lt.s32.totalorder %s300_s22, %s300_s22 }
  0x63   : > { %p5247_p9 = scmp.ne.s32.totalorder %s300_s22, %s5246_s17  ;;  %p5255_p2 = scmp.lt.s32.totalorder %s5246_s17, %s5246_s17 }
  0x65   : > { %p5249_p12 = pnand %p5247_p9, %p5550_p13  ;;  %p5256_p4 = por %p5255_p2, %p5254_p1 }
  0x67   : > { %p5250_p0 = pneg %p5249_p12 }
  0x69   : > { %p5257_p8 = pnand %p5256_p4, %p5250_p0 }
  0x6b   : > { %5260 = shalt.err (!%p5257_p8)
}
  0x6c   : > { %4963 = dma.hbm_to_vmem [thread:$0]  (!%p5534_p11), %s7375_s6, 1024, %s300_s22, [#allocation9], %s7276_s24, %s7276_s24, %s7278_s25  }
  0x6d   : > { %s49_s16 = sadd.s32 1, %s5403_s29  ;;  %s40_s18 = sadd.s32 1, %s5411_s9 }
  0x6e   : > { %p56_p4 = scmp.ne.s32.totalorder %s5403_s29, %s5399_s28  ;;  %p42_p8 = scmp.ge.s32.totalorder %s40_s18, 2 }
  0x6f   : > { %p57_p13 = scmp.eq.s32.totalorder %s5415_s10, 0  ;;  %p7376_p6 = scmp.eq.s32.totalorder %s5504_s11, 1 }
  0x70   : > { %p4978_p3 = scmp.lt.s32.totalorder %s5415_s10, 2  ;;  %s7603_s18 = smov (%p42_p8, %s40_s18), 0 }
  0x71   : > { %p5629_p10 = por %p7376_p6, %p56_p4  ;;  %p58_p5 = por %p57_p13, %p56_p4 }
  0x72   : > { %s5637_s30 = sand.u32 1, %s5403_s29   ;;  %s44_s22 = ssub.s32 %s5411_s9, %s7603_s18 }
  0x73   : > { %p47_p11 = scmp.eq.s32.totalorder %s44_s22, 0  ;;  %s3808_s14 = sshll.u32 %s5637_s30, 7 }
  0x74   : > { %s4223_s26 = sshll.u32 %s5411_s9, 11  ;;  %s7378_s0 = sld [smem:[#allocation52_spill]] }
  0x75   : > { %s5644_s12 = scalar_select %p47_p11, %s5403_s29, %s49_s16  }
  0x76   : > { %s320_s17 = scalar_lea.vmem [#allocation2], %s3808_s14  ;;  %p5655_p7 = pnand %p4978_p3, %p58_p5 }
  0x77   : > { %s330_s20 = sshll.u32 %s320_s17, 4  ;;  %s3811_s22 = sshll.u32 %s5637_s30, 4  ;;  %s5651_s20 = int_to_ptr.vmem [resolvable:$true] %s330_s20 }
  0x78   : > { %s317_s19 = scalar_lea.sflag [#allocation3], %s5637_s30  ;;  %p5263_p12 = pneg %p5655_p7 }
  0x7a   : > { %s5649_s23 = scalar_lea.hbm %s7378_s0, %s4223_s26  ;;  %s5266_s17 = scalar_lea.hbm %s7378_s0, 4096 }
  0x7b   : > { %s5261_s26 = scalar_lea.hbm %s5649_s23, 2048  ;;  %p5267_p2 = scmp.lt.u32.totalorder %s5649_s23, %s7378_s0 }
  0x7c   : > { %p5262_p9 = scmp.ne.s32.totalorder %s5649_s23, %s5261_s26  ;;  %p5268_p4 = scmp.lt.u32.totalorder %s5266_s17, %s5261_s26 }
  0x7d   : > { %p5270_p13 = scmp.lt.u32.totalorder %s5261_s26, %s5649_s23 }
  0x7e   : > { %p5264_p0 = pnand %p5263_p12, %p5262_p9  ;;  %p5269_p8 = por %p5268_p4, %p5267_p2 }
  0x80   : > { %p5265_p1 = pneg %p5264_p0  ;;  %p5271_p6 = por %p5270_p13, %p5269_p8 }
  0x82   : > { %p5272_p3 = pnand %p5271_p6, %p5265_p1 }
  0x84   : > { %5275 = shalt.err (!%p5272_p3)
}
  0x85   : > { %s5276_s16 = scalar_lea.vmem %s5651_s20, 2048  ;;  %s5422_s14 = smov [#allocation2]  }
  0x86   : > { %p5277_p5 = scmp.ne.s32.totalorder %s5651_s20, %s5276_s16  ;;  %s5281_s21 = sshll.u32 %s5422_s14, 4  ;;  %s5282_s21 = int_to_ptr.vmem [resolvable:$false] %s5281_s21 }
  0x87   : > { %s5283_s24 = scalar_lea.vmem %s5282_s21, 4096  ;;  %p5284_p0 = scmp.lt.s32.totalorder %s5651_s20, %s5282_s21 }
  0x88   : > { %p5279_p11 = pnand %p5277_p5, %p5263_p12  ;;  %p5285_p2 = scmp.lt.s32.totalorder %s5283_s24, %s5276_s16 }
  0x8a   : > { %p5280_p9 = pneg %p5279_p11  ;;  %p5286_p4 = por %p5285_p2, %p5284_p0 }
  0x8c   : > { %p5287_p8 = pnand %p5286_p4, %p5280_p9 }
  0x8e   : > { %5290 = shalt.err (!%p5287_p8)
}
  0x8f   : > { %s7380_s25 = smov 4   ;;  %s7381_s26 = smov 64  }
  0x90   : > { %4967 = dma.hbm_to_vmem [thread:$0]  (!%p5655_p7), %s5649_s23, 2048, %s5651_s20, %s317_s19, %s7381_s26, %s7381_s26, %s7380_s25  }
  0x91   : > { %s4224_s17 = sshll.u32 %s5411_s9, 8  ;;  %s344_s24 = scalar_lea.vmem [#allocation5], %s3811_s22 }
  0x92   : > { %s5696_s21 = scalar_lea.hbm %s7262_s1, %s4224_s17  ;;  %s354_s0 = sshll.u32 %s344_s24, 4  ;;  %s5700_s0 = int_to_ptr.vmem [resolvable:$true] %s354_s0 }
  0x93   : > { %s7382_s2 = sand.u32 1, %s5415_s10   ;;  %s5291_s6 = scalar_lea.hbm %s5696_s21, 256 }
  0x94   : > { %s5704_s4 = scalar_lea.sflag [#allocation6], %s7382_s2  ;;  %p5292_p1 = scmp.ne.s32.totalorder %s5696_s21, %s5291_s6 }
  0x95   : > { %s5296_s30 = scalar_lea.hbm %s7262_s1, 512  ;;  %p5297_p3 = scmp.lt.u32.totalorder %s5696_s21, %s7262_s1 }
  0x96   : > { %p5294_p13 = pnand %p5292_p1, %p5263_p12  ;;  %p5298_p5 = scmp.lt.u32.totalorder %s5296_s30, %s5291_s6 }
  0x97   : > { %p5300_p9 = scmp.lt.u32.totalorder %s5291_s6, %s5696_s21 }
  0x98   : > { %p5295_p6 = pneg %p5294_p13  ;;  %p5299_p11 = por %p5298_p5, %p5297_p3 }
  0x9a   : > { %p5301_p0 = por %p5300_p9, %p5299_p11 }
  0x9c   : > { %p5302_p2 = pnand %p5301_p0, %p5295_p6 }
  0x9e   : > { %5305 = shalt.err (!%p5302_p2)
}
  0x9f   : > { %s5306_s2 = scalar_lea.vmem %s5700_s0, 256  ;;  %s5423_s22 = smov [#allocation5]  }
  0xa0   : > { %p5307_p4 = scmp.ne.s32.totalorder %s5700_s0, %s5306_s2  ;;  %s5311_s14 = sshll.u32 %s5423_s22, 4  ;;  %s5312_s14 = int_to_ptr.vmem [resolvable:$false] %s5311_s14 }
  0xa1   : > { %s5313_s16 = scalar_lea.vmem %s5312_s14, 512  ;;  %p5314_p13 = scmp.lt.s32.totalorder %s5700_s0, %s5312_s14 }
  0xa2   : > { %p5309_p8 = pnand %p5307_p4, %p5263_p12  ;;  %p5315_p3 = scmp.lt.s32.totalorder %s5313_s16, %s5306_s2 }
  0xa4   : > { %p5310_p1 = pneg %p5309_p8  ;;  %p5316_p5 = por %p5315_p3, %p5314_p13 }
  0xa6   : > { %p5317_p11 = pnand %p5316_p5, %p5310_p1 }
  0xa8   : > { %5320 = shalt.err (!%p5317_p11)
}
  0xa9   : > { %4970 = dma.hbm_to_vmem [thread:$0]  (!%p5655_p7), %s5696_s21, 256, %s5700_s0, %s5704_s4, %s7381_s26, %s7381_s26, %s7380_s25  }
  0xaa   : > { %p7383_p12 = scmp.ne.s32.totalorder %s7370_s15, 0 }
  0xac   : > { %366 = sbr.rel (%p7383_p12) target bundleno = 1275 (0x4fb), region = 52 }
  0xb3   : > { %s5736_s6 = sand.u32 1, %s5399_s28   ;;  %p7384_p6 = scmp.ne.s32.totalorder %s7367_s13, 0 }
  0xb4   : > { %s3815_s24 = sshll.u32 %s5736_s6, 7  ;;  %s369_s23 = scalar_lea.sflag [#allocation3], %s5736_s6 }
  0xb5   : > { %s5740_s20 = scalar_lea.vmem [#allocation2], %s3815_s24 }
  0xb6   : > { %5374 = dma.done.wait (%p7384_p6), %s369_s23, 2048  }
  0xb7   : > { %5376 = vsyncadd (%p7384_p6), %s369_s23, 4294965248  ;;  %s377_s0 = sand.u32 1, %s5504_s11   ;;  %s3816_s4 = sshll.u32 %s5736_s6, 4 }
  0xb8   : > { %s378_s15 = scalar_lea.sflag [#allocation6], %s377_s0  ;;  %s5748_s8 = scalar_lea.vmem [#allocation5], %s3816_s4 }
  0xb9   : > { %5378 = dma.done.wait (%p7384_p6), %s378_s15, 256  }
  0xba   : > { %5380 = vsyncadd (%p7384_p6), %s378_s15, 4294967040  ;;  %p7385_p7 = scmp.eq.s32.totalorder %s5504_s11, 0 }
  0xbc   : > { %5382 = dma.done.wait (%p7385_p7), [#allocation6], 1024   ;;  %p7386_p9 = pmov %p7385_p7 }
  0xbd   : > { %p7387_p0 = pmov %p7385_p7 }
  0xbe   : > { %5384 = vsyncadd (%p7386_p9), [#allocation6], 4294966272 }
  0xbf   : > { %5386 = dma.done.wait (%p7387_p0), [#allocation9], 10240   ;;  %p7388_p2 = pmov %p7387_p0 }
  0xc0   : > { %v5039_v0 = vld [vmem:[#allocation7] sm:$0xff]   ;;  %v5040_v1 = vld [vmem:[#allocation7 + $0x8] sm:$0xff]   ;;  %v5041_v2 = vld [vmem:[#allocation7 + $0x10] sm:$0xff]   ;;  %v910_v60 = vlaneseq  ;;  %vm5424_vm6 = vmmov 1   ;;  %s3820_s19 = sshll.u32 %s5736_s6, 8  ;;  %s7591_s2 = sld [smem:[#allocation18_spill]] }
  0xc1   : > { %5388 = vsyncadd (%p7388_p2), [#allocation9], 4294957056  ;;  %4756 = vmatprep.subr.bf16.mxu0 %v5039_v0  ;;  %4804 = vmatprep.subr.bf16.mxu1 %v5039_v0  ;;  %v5042_v3 = vld [vmem:[#allocation7 + $0x18] sm:$0xff]   ;;  %v435_v4 = vld [vmem:[%s5740_s20] sm:$0xff]   ;;  %s7129_s17 = scalar_lea.vmem [#allocation11], %s3820_s19  ;;  %s7592_s23 = sld [smem:[#allocation56_spill]] }
  0xc2   : > { %4757 = vmatpush3.bf16.msra.mxu0 %v5039_v0  ;;  %4805 = vmatpush3.bf16.msra.mxu1 %v5039_v0  ;;  %v5048_v5 = vld [vmem:[%s5748_s8] sm:$0xff]   ;;  %v5044_v7 = vld [vmem:[#allocation7 + $0x28] sm:$0xff]   ;;  %v5046_v9 = vld [vmem:[#allocation7 + $0x38] sm:$0xff]   ;;  %s3660_s14 = sshll.u32 %s7129_s17, 4  ;;  %s3644_s0 = scalar_lea.sflag [#allocation4], %s5736_s6  ;;  %s7209_s14 = int_to_ptr.vmem [resolvable:$true] %s3660_s14 }
  0xc3   : > { %4758 = vmatprep.subr.bf16.mxu0 %v5040_v1  ;;  %4806 = vmatprep.subr.bf16.mxu1 %v5040_v1  ;;  %v5043_v6 = vld [vmem:[#allocation7 + $0x20] sm:$0xff]   ;;  %v5045_v8 = vld [vmem:[#allocation7 + $0x30] sm:$0xff]   ;;  %v437_v10 = vld [vmem:[%s5740_s20 + $0x8] sm:$0xff]   ;;  %s5321_s4 = scalar_lea.vmem %s7209_s14, 4096  ;;  %s5425_s15 = smov [#allocation11]  }
  0xc4   : > { %4772 = vmatprep.mubr.bf16.mxu0 %v435_v4  ;;  %4820 = vmatprep.mubr.bf16.mxu1 %v5048_v5  ;;  %v439_v11 = vld [vmem:[%s5740_s20 + $0x10] sm:$0xff]   ;;  %v5050_v12 = vld [vmem:[%s5748_s8 + $0x8] sm:$0xff]   ;;  %v443_v14 = vld [vmem:[%s5740_s20 + $0x20] sm:$0xff]   ;;  %p5322_p4 = scmp.ne.s32.totalorder %s7209_s14, %s5321_s4  ;;  %s5325_s8 = sshll.u32 %s5425_s15, 4  ;;  %s5326_s8 = int_to_ptr.vmem [resolvable:$false] %s5325_s8 }
  0xc5   : > { %v441_v13 = vld [vmem:[%s5740_s20 + $0x18] sm:$0xff]   ;;  %v445_v15 = vld [vmem:[%s5740_s20 + $0x28] sm:$0xff]   ;;  %v447_v16 = vld [vmem:[%s5740_s20 + $0x30] sm:$0xff]   ;;  %s5327_s11 = scalar_lea.vmem %s5326_s8, 8192  ;;  %p5328_p13 = scmp.lt.s32.totalorder %s7209_s14, %s5326_s8 }
  0xc6   : > { %4759 = vmatpush3.bf16.msra.mxu0 %v5040_v1  ;;  %4807 = vmatpush3.bf16.msra.mxu1 %v5040_v1  ;;  %v449_v17 = vld [vmem:[%s5740_s20 + $0x38] sm:$0xff]   ;;  %v451_v18 = vld [vmem:[%s5740_s20 + $0x40] sm:$0xff]   ;;  %v453_v19 = vld [vmem:[%s5740_s20 + $0x48] sm:$0xff]   ;;  %s4225_s22 = sshll.u32 %s7591_s2, 12  ;;  %p5323_p8 = pnand %p5322_p4, %p5629_p10 }
  0xc7   : > { %4760 = vmatprep.subr.bf16.mxu0 %v5041_v2  ;;  %4808 = vmatprep.subr.bf16.mxu1 %v5041_v2  ;;  %v455_v20 = vld [vmem:[%s5740_s20 + $0x50] sm:$0xff]   ;;  %v457_v21 = vld [vmem:[%s5740_s20 + $0x58] sm:$0xff]   ;;  %v459_v22 = vld [vmem:[%s5740_s20 + $0x60] sm:$0xff]   ;;  %p5329_p3 = scmp.lt.s32.totalorder %s5327_s11, %s5321_s4 }
  0xc8   : > { %v461_v23 = vld [vmem:[%s5740_s20 + $0x68] sm:$0xff]   ;;  %v463_v24 = vld [vmem:[%s5740_s20 + $0x70] sm:$0xff]   ;;  %v465_v25 = vld [vmem:[%s5740_s20 + $0x78] sm:$0xff]   ;;  %p5324_p1 = pneg %p5323_p8 }
  0xc9   : > { %v5065_v26 = vld [vmem:[#allocation8 + $0x40] sm:$0xff]   ;;  %v5069_v30 = vld [vmem:[#allocation8 + $0x48] sm:$0xff]   ;;  %v5073_v34 = vld [vmem:[#allocation8 + $0x50] sm:$0xff]   ;;  %p5330_p5 = por %p5329_p3, %p5328_p13 }
  0xca   : > { %4761 = vmatpush3.bf16.msra.mxu0 %v5041_v2  ;;  %4809 = vmatpush3.bf16.msra.mxu1 %v5041_v2  ;;  %v5067_v27 = vld [vmem:[#allocation8 + $0xc0] sm:$0xff]   ;;  %v5071_v31 = vld [vmem:[#allocation8 + $0xc8] sm:$0xff]   ;;  %v5075_v35 = vld [vmem:[#allocation8 + $0xd0] sm:$0xff]  }
  0xcb   : > { %4762 = vmatprep.subr.bf16.mxu0 %v5042_v3  ;;  %4810 = vmatprep.subr.bf16.mxu1 %v5042_v3  ;;  %v5066_v28 = vld [vmem:[#allocation8] sm:$0xff]   ;;  %v5070_v32 = vld [vmem:[#allocation8 + $0x8] sm:$0xff]   ;;  %v5074_v36 = vld [vmem:[#allocation8 + $0x10] sm:$0xff]   ;;  %p5331_p11 = pnand %p5330_p5, %p5324_p1 }
  0xcc   : > { %v5068_v29 = vld [vmem:[#allocation8 + $0x80] sm:$0xff]   ;;  %v5072_v33 = vld [vmem:[#allocation8 + $0x88] sm:$0xff]   ;;  %v5076_v37 = vld [vmem:[#allocation8 + $0x90] sm:$0xff]  }
  0xcd   : > { %v5077_v38 = vld [vmem:[#allocation8 + $0x58] sm:$0xff]   ;;  %v5081_v42 = vld [vmem:[#allocation8 + $0x60] sm:$0xff]   ;;  %v5085_v46 = vld [vmem:[#allocation8 + $0x68] sm:$0xff]  }
  0xce   : > { %4763 = vmatpush3.bf16.msra.mxu0 %v5042_v3  ;;  %4811 = vmatpush3.bf16.msra.mxu1 %v5042_v3  ;;  %v5079_v39 = vld [vmem:[#allocation8 + $0xd8] sm:$0xff]   ;;  %v5083_v43 = vld [vmem:[#allocation8 + $0xe0] sm:$0xff]   ;;  %v5087_v47 = vld [vmem:[#allocation8 + $0xe8] sm:$0xff]  }
  0xcf   : > { %4764 = vmatprep.subr.bf16.mxu0 %v5043_v6  ;;  %4812 = vmatprep.subr.bf16.mxu1 %v5043_v6  ;;  %v5078_v40 = vld [vmem:[#allocation8 + $0x18] sm:$0xff]   ;;  %v5082_v44 = vld [vmem:[#allocation8 + $0x20] sm:$0xff]   ;;  %v5086_v48 = vld [vmem:[#allocation8 + $0x28] sm:$0xff]  }
  0xd0   : > { %v5080_v41 = vld [vmem:[#allocation8 + $0x98] sm:$0xff]   ;;  %v5084_v45 = vld [vmem:[#allocation8 + $0xa0] sm:$0xff]   ;;  %v5088_v49 = vld [vmem:[#allocation8 + $0xa8] sm:$0xff]  }
  0xd1   : > { %v5089_v50 = vld [vmem:[#allocation8 + $0x70] sm:$0xff]   ;;  %v5093_v54 = vld [vmem:[#allocation8 + $0x78] sm:$0xff]   ;;  %v5097_v58 = vld [vmem:[#allocation8 + $0x140] sm:$0xff]  }
  0xd2   : > { %4765 = vmatpush3.bf16.msra.mxu0 %v5043_v6  ;;  %4813 = vmatpush3.bf16.msra.mxu1 %v5043_v6  ;;  %v5091_v51 = vld [vmem:[#allocation8 + $0xf0] sm:$0xff]   ;;  %v5095_v55 = vld [vmem:[#allocation8 + $0xf8] sm:$0xff]   ;;  %v5783_v59 = vld [vmem:[%s7264_s3] ss:$0 sm:$0xff] }
  0xd3   : > { %4766 = vmatprep.subr.bf16.mxu0 %v5044_v7  ;;  %4814 = vmatprep.subr.bf16.mxu1 %v5044_v7  ;;  %v5090_v52 = vld [vmem:[#allocation8 + $0x30] sm:$0xff]   ;;  %v5094_v56 = vld [vmem:[#allocation8 + $0x38] sm:$0xff]   ;;  %v5105_v61 = vld [vmem:[#allocation8 + $0x1c0] sm:$0xff]  }
  0xd4   : > { %v5092_v53 = vld [vmem:[#allocation8 + $0xb0] sm:$0xff]   ;;  %v5096_v57 = vld [vmem:[#allocation8 + $0xb8] sm:$0xff]  }
  0xd6   : > { %4767 = vmatpush3.bf16.msra.mxu0 %v5044_v7  ;;  %4815 = vmatpush3.bf16.msra.mxu1 %v5044_v7 }
  0xd7   : > { %4768 = vmatprep.subr.bf16.mxu0 %v5045_v8  ;;  %4816 = vmatprep.subr.bf16.mxu1 %v5045_v8 }
  0xda   : > { %4769 = vmatpush3.bf16.msra.mxu0 %v5045_v8  ;;  %4817 = vmatpush3.bf16.msra.mxu1 %v5045_v8  ;;  %v5791_v8 = vshrl.u32 %v910_v60, 7 }
  0xdb   : > { %4770 = vmatprep.subr.bf16.mxu0 %v5046_v9  ;;  %4818 = vmatprep.subr.bf16.mxu1 %v5046_v9 }
  0xdc   : > { %vm1423_vm0 = vcmp.lt.s32.totalorder %v5791_v8, 1  ;;  %vm1520_vm1 = vcmp.lt.s32.totalorder %v5791_v8, 7 }
  0xde   : > { %4771 = vmatpush3.bf16.msra.mxu0 %v5046_v9  ;;  %4819 = vmatpush3.bf16.msra.mxu1 %v5046_v9 }
  0xdf   : > { %4260 = vmatprep.subr.bf16.mxu1 %v5065_v26  ;;  %4372 = vmatprep.subr.bf16.mxu0 %v5067_v27 }
  0xe1   : > { %4773 = vmatmul.mubr.bf16.vlgmr.msra.gmra.mrb[0].mxu0 %v437_v10  ;;  %4821 = vmatmul.mubr.bf16.vlgmr.msra.gmra.mrb[0].mxu1 %v5050_v12 }
  0xe2   : > { %4776 = vmatprep.mubr.bf16.mxu0 %v439_v11  ;;  %4261 = vmatpush3.bf16.msra.mxu1 %v5066_v28 }
  0xe3   : > { %4373 = vmatpush3.bf16.msra.mxu0 %v5068_v29  ;;  %4262 = vmatprep.subr.bf16.mxu1 %v5069_v30 }
  0xe4   : > { %4374 = vmatprep.subr.bf16.mxu0 %v5071_v31 }
  0xe6   : > { %4263 = vmatpush3.bf16.msra.mxu1 %v5070_v32 }
  0xe7   : > { %4375 = vmatpush3.bf16.msra.mxu0 %v5072_v33  ;;  %4264 = vmatprep.subr.bf16.mxu1 %v5073_v34 }
  0xe8   : > { %4376 = vmatprep.subr.bf16.mxu0 %v5075_v35 }
  0xe9   : > { %4777 = vmatmul.mubr.bf16.gmra.mrb[4].mxu0 %v441_v13 }
  0xea   : > { %4780 = vmatprep.mubr.bf16.mxu0 %v443_v14  ;;  %4265 = vmatpush3.bf16.msra.mxu1 %v5074_v36 }
  0xeb   : > { %4377 = vmatpush3.bf16.msra.mxu0 %v5076_v37  ;;  %4266 = vmatprep.subr.bf16.mxu1 %v5077_v38 }
  0xec   : > { %4378 = vmatprep.subr.bf16.mxu0 %v5079_v39 }
  0xee   : > { %4267 = vmatpush3.bf16.msra.mxu1 %v5078_v40 }
  0xef   : > { %4379 = vmatpush3.bf16.msra.mxu0 %v5080_v41  ;;  %4268 = vmatprep.subr.bf16.mxu1 %v5081_v42 }
  0xf0   : > { %4380 = vmatprep.subr.bf16.mxu0 %v5083_v43 }
  0xf1   : > { %4781 = vmatmul.mubr.bf16.gmra.mrb[8].mxu0 %v445_v15 }
  0xf2   : > { %4784 = vmatprep.mubr.bf16.mxu0 %v447_v16  ;;  %4269 = vmatpush3.bf16.msra.mxu1 %v5082_v44 }
  0xf3   : > { %4381 = vmatpush3.bf16.msra.mxu0 %v5084_v45  ;;  %4270 = vmatprep.subr.bf16.mxu1 %v5085_v46 }
  0xf4   : > { %4382 = vmatprep.subr.bf16.mxu0 %v5087_v47 }
  0xf6   : > { %4271 = vmatpush3.bf16.msra.mxu1 %v5086_v48 }
  0xf7   : > { %4383 = vmatpush3.bf16.msra.mxu0 %v5088_v49  ;;  %4272 = vmatprep.subr.bf16.mxu1 %v5089_v50 }
  0xf8   : > { %4384 = vmatprep.subr.bf16.mxu0 %v5091_v51 }
  0xf9   : > { %4785 = vmatmul.mubr.bf16.gmra.mrb[12].mxu0 %v449_v17 }
  0xfa   : > { %4788 = vmatprep.mubr.bf16.mxu0 %v451_v18  ;;  %4273 = vmatpush3.bf16.msra.mxu1 %v5090_v52 }
  0xfb   : > { %4385 = vmatpush3.bf16.msra.mxu0 %v5092_v53  ;;  %4274 = vmatprep.subr.bf16.mxu1 %v5093_v54 }
  0xfc   : > { %4386 = vmatprep.subr.bf16.mxu0 %v5095_v55 }
  0xfe   : > { %4275 = vmatpush3.bf16.msra.mxu1 %v5094_v56 }
  0xff   : > { %4387 = vmatpush3.bf16.msra.mxu0 %v5096_v57  ;;  %4484 = vmatprep.subr.bf16.mxu1 %v5097_v58 }
 0x100   : > { %4596 = vmatprep.subr.bf16.mxu0 %v5105_v61 }
 0x101   : > { %4789 = vmatmul.mubr.bf16.gmra.mrb[16].mxu0 %v453_v19 }
 0x102   : > { %4792 = vmatprep.mubr.bf16.mxu0 %v455_v20 }
 0x109   : > { %4793 = vmatmul.mubr.bf16.gmra.mrb[20].mxu0 %v457_v21 }
 0x10a   : > { %4796 = vmatprep.mubr.bf16.mxu0 %v459_v22 }
 0x111   : > { %4797 = vmatmul.mubr.bf16.gmra.mrb[24].mxu0 %v461_v23 }
 0x112   : > { %4800 = vmatprep.mubr.bf16.mxu0 %v463_v24 }
 0x119   : > { %4801 = vmatmul.mubr.bf16.gmra.mrb[28].mxu0 %v465_v25 }
 0x1b4   : > { %v4774_v62 = vpop.f32.mrb[0].mxu0  ;;  %v4822_v63 = vpop.f32.mrb[0].mxu1 }
 0x1b5   : > { %v677_v0 = vadd.f32 %v4774_v62, %v5783_v59  ;;  %v5787_v1 = vadd.f32 %v4822_v63, %v5783_v59  ;;  %v668_v2 = vpop.f32.mrb[1].mxu0  ;;  %v877_v3 = vpop.f32.mrb[1].mxu1 }
 0x1b6   : > { %v669_v4 = vadd.f32 %v5783_v59, %v668_v2  ;;  %v878_v5 = vadd.f32 %v5783_v59, %v877_v3  ;;  %v4775_v6 = vpop.f32.mrb[2].mxu0  ;;  %v4823_v7 = vpop.f32.mrb[2].mxu1 }
 0x1b7   : > { %v797_v9 = vmax.f32 %v677_v0, 0.0  ;;  %v680_v10 = vadd.f32 %v4775_v6, %v5783_v59  ;;  %v889_v11 = vadd.f32 %v4823_v7, %v5783_v59  ;;  %v671_v12 = vpop.f32.mrb[3].mxu0  ;;  %v880_v13 = vpop.f32.mrb[3].mxu1 }
 0x1b8   : > { %v795_v14 = vmax.f32 %v669_v4, 0.0  ;;  %v892_v15 = vmax.f32 %v878_v5, 0.0  ;;  %v672_v16 = vadd.f32 %v5783_v59, %v671_v12  ;;  %v881_v18 = vadd.f32 %v5783_v59, %v880_v13 }
 0x1b9   : > { %v5796_v17 = vmax.f32 %v680_v10, 0.0  ;;  %v895_v20 = vmax.f32 %v889_v11, 0.0  ;;  %v1395_v21 = vrot.slane %v797_v9, 7  ;;  %v5835_v46 = vrot.slane %v797_v9, 1 }
 0x1ba   : > { %v5799_v19 = vmul.f32 0.0, %v892_v15  ;;  %v5803_v23 = vrot.slane %v795_v14, 7  ;;  %v796_v25 = vmax.f32 %v672_v16, 0.0  ;;  %v893_v27 = vmax.f32 %v881_v18, 0.0 }
 0x1bb   : > { %v1396_v22 = vrot.slane %v5796_v17, 7  ;;  %v5805_v24 = vmul.f32 0.0, %v895_v20  ;;  %v5816_v31 = vpack.c.bf16 %v5796_v17, %v797_v9  ;;  %v5837_v47 = vrot.slane %v795_v14, 1 }
 0x1bc   : > { %v4778_v26 = vpop.f32.mrb[4].mxu0  ;;  %v7282_v32 = vrot.slane %v5799_v19, 7  ;;  %v7281_v33 = vrot.slane %v5799_v19, 1  ;;  %v1394_v35 = vrot.slane %v796_v25, 7  ;;  %v906_v37 = vmul.f32 0.0, %v893_v27 }
 0x1bd   : > { %7389 = vst [vmem:[#allocation20_spill] sm:$0xff] %v5805_v24  ;;  %v693_v28 = vadd.f32 %v4778_v26, %v5783_v59  ;;  %v684_v29 = vpop.f32.mrb[5].mxu0  ;;  %v5813_v30 = vsel %vm1423_vm0, %v1395_v21, %v1396_v22  ;;  %v7280_v34 = vrot.slane %v5805_v24, 7  ;;  %v5831_v44 = vpack.c.bf16 %v796_v25, %v795_v14 }
 0x1be   : > { %7390 = vst [vmem:[#allocation21_spill] sm:$0xff] %v5813_v30  ;;  %v4779_v36 = vpop.f32.mrb[6].mxu0  ;;  %v685_v39 = vadd.f32 %v5783_v59, %v684_v29  ;;  %v5829_v43 = vsel %vm1423_vm0, %v5803_v23, %v1394_v35  ;;  %v1451_v45 = vsel %vm1423_vm0, %v1394_v35, %v1395_v21  ;;  %v1392_v48 = vrot.slane %v906_v37, 7 }
 0x1bf   : > { %v5821_v38 = vmax.f32 %v693_v28, 0.0  ;;  %v696_v40 = vadd.f32 %v4779_v36, %v5783_v59  ;;  %v687_v41 = vpop.f32.mrb[7].mxu0  ;;  %v1489_v49 = vrot.slane %v906_v37, 1  ;;  %v1491_v50 = vrot.slane %v796_v25, 1 }
 0x1c0   : > { %v688_v42 = vadd.f32 %v5783_v59, %v687_v41  ;;  %v799_v51 = vmax.f32 %v685_v39, 0.0  ;;  %v1601_v53 = vpack.c.bf16 %v906_v37, %v5799_v19  ;;  %v5844_v54 = vsel %vm1423_vm0, %v7282_v32, %v1392_v48 }
 0x1c1   : > { %v5849_v55 = vsel %vm1520_vm1, %v1489_v49, %v5837_v47  ;;  %v5855_v56 = vsel %vm1520_vm1, %v7281_v33, %v1489_v49  ;;  %v5861_v57 = vsel %vm1423_vm0, %v7280_v34, %v1395_v21  ;;  %v1493_v58 = vrot.slane %v5796_v17, 1 }
 0x1c2   : > { %v800_v52 = vmax.f32 %v688_v42, 0.0  ;;  %7391 = vst [vmem:[#allocation22_spill] sm:$0xff] %v5861_v57  ;;  %v1399_v61 = vrot.slane %v5821_v38, 7  ;;  %v5867_v62 = vmax.f32 %v696_v40, 0.0  ;;  %2462 = vmatprep.mubr.bf16.mxu1 %v1601_v53  ;;  %v1397_v0 = vrot.slane %v799_v51, 7 }
 0x1c3   : > { %v1494_v2 = vrot.slane %v799_v51, 1  ;;  %v5872_v9 = vpack.c.bf16 %v5813_v30, %v1451_v45  ;;  %v5879_v11 = vsel %vm1423_vm0, %v1392_v48, %v5803_v23  ;;  %v1548_v16 = vsel %vm1520_vm1, %v1491_v50, %v5835_v46 }
 0x1c4   : > { %v4782_v63 = vpop.f32.mrb[8].mxu0  ;;  %v1398_v3 = vrot.slane %v800_v52, 7  ;;  %v1549_v21 = vsel %vm1520_vm1, %v5837_v47, %v1491_v50  ;;  %v1496_v26 = vrot.slane %v5821_v38, 1  ;;  %v1400_v27 = vrot.slane %v5867_v62, 7 }
 0x1c5   : > { %v709_v4 = vadd.f32 %v4782_v63, %v5783_v59  ;;  %v700_v5 = vpop.f32.mrb[9].mxu0  ;;  %v1497_v28 = vrot.slane %v5867_v62, 1  ;;  %v5900_v29 = vpack.c.bf16 %v1548_v16, %v1549_v21  ;;  %v1495_v35 = vrot.slane %v800_v52, 1 }
 0x1c6   : > { %v701_v6 = vadd.f32 %v5783_v59, %v700_v5  ;;  %v4783_v7 = vpop.f32.mrb[10].mxu0  ;;  %v1448_v25 = vsel %vm1423_vm0, %v1397_v0, %v1398_v3  ;;  %v1449_v39 = vsel %vm1423_vm0, %v1396_v22, %v1397_v0  ;;  %v1546_v45 = vsel %vm1520_vm1, %v1493_v58, %v1494_v2 }
 0x1c7   : > { %v5881_v12 = vmax.f32 %v709_v4, 0.0  ;;  %v712_v13 = vadd.f32 %v4783_v7, %v5783_v59  ;;  %v703_v14 = vpop.f32.mrb[11].mxu0  ;;  %v5910_v42 = vpack.c.bf16 %v1448_v25, %v1449_v39  ;;  %v1547_v17 = vsel %vm1520_vm1, %v5835_v46, %v1493_v58 }
 0x1c8   : > { %v5889_v18 = vmax.f32 %v701_v6, 0.0  ;;  %v704_v20 = vadd.f32 %v5783_v59, %v703_v14  ;;  %v5918_v53 = vpack.c.bf16 %v800_v52, %v799_v51  ;;  %v5921_v0 = vpack.c.bf16 %v1546_v45, %v1547_v17 }
 0x1c9   : > { %v1403_v36 = vrot.slane %v5881_v12, 7  ;;  %v5908_v41 = vmax.f32 %v712_v13, 0.0  ;;  %v1446_v4 = vsel %vm1423_vm0, %v1399_v61, %v1400_v27  ;;  %v1447_v5 = vsel %vm1423_vm0, %v1398_v3, %v1399_v61 }
 0x1ca   : > { %v804_v37 = vmax.f32 %v704_v20, 0.0  ;;  %v1401_v40 = vrot.slane %v5889_v18, 7  ;;  %v1498_v48 = vrot.slane %v5889_v18, 1  ;;  %v5928_v13 = vpack.c.bf16 %v1446_v4, %v1447_v5 }
 0x1cb   : > { %v1544_v51 = vsel %vm1520_vm1, %v1495_v35, %v1496_v26  ;;  %v1545_v52 = vsel %vm1520_vm1, %v1494_v2, %v1495_v35  ;;  %v1404_v58 = vrot.slane %v5908_v41, 7  ;;  %v5940_v61 = vpack.c.bf16 %v5867_v62, %v5821_v38 }
 0x1cc   : > { %v1402_v49 = vrot.slane %v804_v37, 7  ;;  %v4786_v50 = vpop.f32.mrb[12].mxu0  ;;  %v5936_v20 = vpack.c.bf16 %v1544_v51, %v1545_v52  ;;  %v1445_v2 = vsel %vm1423_vm0, %v1400_v27, %v1401_v40  ;;  %v1500_v35 = vrot.slane %v5881_v12, 1 }
 0x1cd   : > { %v725_v22 = vadd.f32 %v4786_v50, %v5783_v59  ;;  %v716_v63 = vpop.f32.mrb[13].mxu0  ;;  %v1499_v39 = vrot.slane %v804_v37, 1  ;;  %v1501_v17 = vrot.slane %v5908_v41, 1  ;;  %v1543_v27 = vsel %vm1520_vm1, %v1496_v26, %v1497_v28 }
 0x1ce   : > { %v717_v6 = vadd.f32 %v5783_v59, %v716_v63  ;;  %v4787_v7 = vpop.f32.mrb[14].mxu0  ;;  %v1444_v25 = vsel %vm1423_vm0, %v1401_v40, %v1402_v49  ;;  %v1542_v63 = vsel %vm1520_vm1, %v1497_v28, %v1498_v48  ;;  %v5960_v40 = vpack.c.bf16 %v804_v37, %v5889_v18 }
 0x1cf   : > { %v728_v14 = vadd.f32 %v4787_v7, %v5783_v59  ;;  %v719_v16 = vpop.f32.mrb[15].mxu0  ;;  %v5950_v50 = vpack.c.bf16 %v1444_v25, %v1445_v2  ;;  %v5953_v38 = vmax.f32 %v725_v22, 0.0  ;;  %v5963_v52 = vpack.c.bf16 %v1542_v63, %v1543_v27 }
 0x1d0   : > { %v807_v3 = vmax.f32 %v717_v6, 0.0  ;;  %v720_v21 = vadd.f32 %v5783_v59, %v719_v16  ;;  %v1442_v22 = vsel %vm1423_vm0, %v1403_v36, %v1404_v58  ;;  %v1540_v26 = vsel %vm1520_vm1, %v1499_v39, %v1500_v35 }
 0x1d1   : > { %v5948_v45 = vmax.f32 %v728_v14, 0.0  ;;  %v1541_v18 = vsel %vm1520_vm1, %v1498_v48, %v1499_v39  ;;  %v5981_v63 = vpack.c.bf16 %v5908_v41, %v5881_v12  ;;  %v1407_v12 = vrot.slane %v5953_v38, 7 }
 0x1d2   : > { %v808_v62 = vmax.f32 %v720_v21, 0.0  ;;  %v1405_v4 = vrot.slane %v807_v3, 7  ;;  %v1502_v5 = vrot.slane %v807_v3, 1  ;;  %v1443_v21 = vsel %vm1423_vm0, %v1402_v49, %v1403_v36 }
 0x1d3   : > { %v1408_v6 = vrot.slane %v5948_v45, 7  ;;  %v5975_v25 = vpack.c.bf16 %v1442_v22, %v1443_v21  ;;  %v5977_v2 = vpack.c.bf16 %v1540_v26, %v1541_v18  ;;  %7392 = vst [vmem:[#allocation23_spill] sm:$0xff] %v5981_v63  ;;  %v1504_v41 = vrot.slane %v5953_v38, 1 }
 0x1d4   : > { %v1406_v7 = vrot.slane %v808_v62, 7  ;;  %v4790_v51 = vpop.f32.mrb[16].mxu0  ;;  %v1503_v27 = vrot.slane %v808_v62, 1  ;;  %v1441_v48 = vsel %vm1423_vm0, %v1404_v58, %v1405_v4  ;;  %v1538_v21 = vsel %vm1520_vm1, %v1501_v17, %v1502_v5 }
 0x1d5   : > { %v741_v14 = vadd.f32 %v4790_v51, %v5783_v59  ;;  %v732_v16 = vpop.f32.mrb[17].mxu0  ;;  %v1539_v26 = vsel %vm1520_vm1, %v1500_v35, %v1501_v17  ;;  %v1505_v18 = vrot.slane %v5948_v45, 1 }
 0x1d6   : > { %v733_v28 = vadd.f32 %v5783_v59, %v732_v16  ;;  %v4791_v37 = vpop.f32.mrb[18].mxu0  ;;  %v1440_v51 = vsel %vm1423_vm0, %v1405_v4, %v1406_v7  ;;  %v5998_v58 = vpack.c.bf16 %v1538_v21, %v1539_v26  ;;  %v1439_v35 = vsel %vm1423_vm0, %v1406_v7, %v1407_v12 }
 0x1d7   : > { %v744_v36 = vadd.f32 %v4791_v37, %v5783_v59  ;;  %v735_v49 = vpop.f32.mrb[19].mxu0  ;;  %v5989_v16 = vpack.c.bf16 %v1440_v51, %v1441_v48  ;;  %v6000_v4 = vmax.f32 %v741_v14, 0.0  ;;  %v1438_v51 = vsel %vm1423_vm0, %v1407_v12, %v1408_v6 }
 0x1d8   : > { %v811_v39 = vmax.f32 %v733_v28, 0.0  ;;  %v736_v22 = vadd.f32 %v5783_v59, %v735_v49  ;;  %7394 = vst [vmem:[#allocation25_spill] sm:$0xff] %v5998_v58  ;;  %v6004_v49 = vpack.c.bf16 %v808_v62, %v807_v3  ;;  %v1536_v17 = vsel %vm1520_vm1, %v1503_v27, %v1504_v41 }
 0x1d9   : > { %7393 = vst [vmem:[#allocation24_spill] sm:$0xff] %v5989_v16  ;;  %v6002_v28 = vmax.f32 %v744_v36, 0.0  ;;  %v6013_v21 = vpack.c.bf16 %v1438_v51, %v1439_v35  ;;  %v1537_v3 = vsel %vm1520_vm1, %v1502_v5, %v1503_v27  ;;  %v6019_v62 = vpack.c.bf16 %v5948_v45, %v5953_v38 }
 0x1da   : > { %v1409_v37 = vrot.slane %v811_v39, 7  ;;  %v812_v10 = vmax.f32 %v736_v22, 0.0  ;;  %7395 = vst [vmem:[#allocation26_spill] sm:$0xff] %v6004_v49  ;;  %v1506_v48 = vrot.slane %v811_v39, 1  ;;  %v6022_v15 = vpack.c.bf16 %v1536_v17, %v1537_v3 }
 0x1db   : > { %7396 = vst [vmem:[#allocation27_spill] sm:$0xff] %v6013_v21  ;;  %7397 = vst [vmem:[#allocation28_spill] sm:$0xff] %v6019_v62  ;;  %v1412_v5 = vrot.slane %v6002_v28, 7  ;;  %v1535_v27 = vsel %vm1520_vm1, %v1504_v41, %v1505_v18  ;;  %v7419_v16 = vrot.slane %v5799_v19, 7 }
 0x1dc   : > { %v1410_v34 = vrot.slane %v812_v10, 7  ;;  %v4794_v33 = vpop.f32.mrb[20].mxu0  ;;  %7398 = vst [vmem:[#allocation29_spill] sm:$0xff] %v6022_v15  ;;  %v1534_v38 = vsel %vm1520_vm1, %v1505_v18, %v1506_v48  ;;  %v1507_v17 = vrot.slane %v812_v10, 1 }
 0x1dd   : > { %v757_v22 = vadd.f32 %v4794_v33, %v5783_v59  ;;  %v748_v14 = vpop.f32.mrb[21].mxu0  ;;  %v1437_v33 = vsel %vm1423_vm0, %v1408_v6, %v1409_v37  ;;  %v6038_v3 = vpack.c.bf16 %v1534_v38, %v1535_v27  ;;  %v1508_v6 = vrot.slane %v6000_v4, 1 }
 0x1de   : > { %v749_v36 = vadd.f32 %v5783_v59, %v748_v14  ;;  %v4795_v26 = vpop.f32.mrb[22].mxu0  ;;  %v1436_v7 = vsel %vm1423_vm0, %v1409_v37, %v1410_v34  ;;  %v1411_v14 = vrot.slane %v6000_v4, 7  ;;  %v913_v38 = vadd.s32 16, %v5791_v8 }
 0x1df   : > { %v760_v12 = vadd.f32 %v4795_v26, %v5783_v59  ;;  %v751_v51 = vpop.f32.mrb[23].mxu0  ;;  %v6029_v35 = vpack.c.bf16 %v1436_v7, %v1437_v33  ;;  %7400 = vst [vmem:[#allocation31_spill] sm:$0xff] %v6038_v3  ;;  %v6045_v7 = vpack.c.bf16 %v812_v10, %v811_v39  ;;  %v1533_v57 = vsel %vm1520_vm1, %v1506_v48, %v1507_v17 }
 0x1e0   : > { %v752_v45 = vadd.f32 %v5783_v59, %v751_v51  ;;  %v6041_v37 = vmax.f32 %v749_v36, 0.0  ;;  %v912_v51 = vadd.s32 8, %v5791_v8  ;;  %v1434_v60 = vsel %vm1423_vm0, %v1411_v14, %v1412_v5 }
 0x1e1   : > { %7399 = vst [vmem:[#allocation30_spill] sm:$0xff] %v6029_v35  ;;  %7401 = vst [vmem:[#allocation32_spill] sm:$0xff] %v6045_v7  ;;  %v1435_v27 = vsel %vm1423_vm0, %v1410_v34, %v1411_v14  ;;  %v1532_v36 = vsel %vm1520_vm1, %v1507_v17, %v1508_v6  ;;  %v6067_v3 = vmax.f32 %v760_v12, 0.0  ;;  %v1509_v48 = vrot.slane %v6002_v28, 1 }
 0x1e2   : > { %v6043_v26 = vmax.f32 %v752_v45, 0.0  ;;  %v947_v45 = vand.u32 15, %v5791_v8  ;;  %v6058_v32 = vpack.c.bf16 %v1434_v60, %v1435_v27  ;;  %v6065_v14 = vpack.c.bf16 %v1532_v36, %v1533_v57 }
 0x1e3   : > { %v954_v35 = vand.u32 15, %v912_v51  ;;  %v6072_v60 = vpack.c.bf16 %v6002_v28, %v6000_v4  ;;  %v1510_v17 = vrot.slane %v6041_v37, 1  ;;  %v961_v27 = vand.u32 15, %v913_v38 }
 0x1e4   : > { %v4798_v33 = vpop.f32.mrb[24].mxu0  ;;  %7402 = vst [vmem:[#allocation33_spill] sm:$0xff] %v6058_v32  ;;  %v1414_v30 = vrot.slane %v6043_v26, 7  ;;  %7403 = vst [vmem:[#allocation34_spill] sm:$0xff] %v6065_v14  ;;  %v914_v32 = vadd.s32 24, %v5791_v8  ;;  %vm6079_vm2 = vcmp.ge.s32.totalorder %v947_v45, 1 }
 0x1e5   : > { %v773_v41 = vadd.f32 %v4798_v33, %v5783_v59  ;;  %v764_v18 = vpop.f32.mrb[25].mxu0  ;;  %v1413_v33 = vrot.slane %v6041_v37, 7  ;;  %7404 = vst [vmem:[#allocation35_spill] sm:$0xff] %v6072_v60  ;;  %v1416_v51 = vrot.slane %v6067_v3, 7  ;;  %vm6088_vm3 = vcmp.le.s32.totalorder %v954_v35, 14  ;;  %vm6170_vm7 = vmpackc.low %vm5424_vm6, %vm6079_vm2 }
 0x1e6   : > { %v765_v10 = vadd.f32 %v5783_v59, %v764_v18  ;;  %v4799_v39 = vpop.f32.mrb[26].mxu0  ;;  %vm6100_vm4 = vcmp.ge.s32.totalorder %v961_v27, 1  ;;  %v1530_v35 = vsel %vm1520_vm1, %v1509_v48, %v1510_v17  ;;  %v6114_v27 = vpack.c.bf16 %v6043_v26, %v6041_v37  ;;  %vm6191_vm8 = vmpackc.low %vm6088_vm3, %vm5424_vm6 }
 0x1e7   : > { %v776_v7 = vadd.f32 %v4799_v39, %v5783_v59  ;;  %v767_v34 = vpop.f32.mrb[27].mxu0  ;;  %v6077_v39 = vmax.f32 %v757_v22, 0.0  ;;  %v1432_v12 = vsel %vm1423_vm0, %v1413_v33, %v1414_v30  ;;  %v1433_v4 = vsel %vm1423_vm0, %v1412_v5, %v1413_v33  ;;  %vm6209_vm9 = vmpackc.low %vm5424_vm6, %vm6100_vm4 }
 0x1e8   : > { %v768_v18 = vadd.f32 %v5783_v59, %v767_v34  ;;  %v6093_v22 = vadd.s32 32, %v5791_v8  ;;  %v6095_v38 = vpack.c.bf16 %v1432_v12, %v1433_v4  ;;  %v968_v5 = vand.u32 15, %v914_v32  ;;  %7413 = vst [vmem:[#allocation38_spill] sm:$0xff] %v6114_v27 }
 0x1e9   : > { %v1531_v33 = vsel %vm1520_vm1, %v1508_v6, %v1509_v48  ;;  %v1415_v14 = vrot.slane %v6077_v39, 7  ;;  %v6117_v32 = vmax.f32 %v765_v10, 0.0  ;;  %v6122_v48 = vmax.f32 %v773_v41, 0.0 }
 0x1ea   : > { %7409 = vst [vmem:[#allocation36_spill] sm:$0xff] %v6095_v38  ;;  %v6110_v38 = vpack.c.bf16 %v1530_v35, %v1531_v33  ;;  %v6119_v62 = vmax.f32 %v768_v18, 0.0  ;;  %v6129_v33 = vmax.f32 %v776_v7, 0.0  ;;  %v975_v10 = vand.u32 15, %v6093_v22 }
 0x1eb   : > { %v1430_v35 = vsel %vm1423_vm0, %v1415_v14, %v1416_v51  ;;  %v1431_v37 = vsel %vm1423_vm0, %v1414_v30, %v1415_v14  ;;  %v6135_v18 = vadd.s32 40, %v5791_v8  ;;  %v1512_v41 = vrot.slane %v6077_v39, 1 }
 0x1ec   : > { %v4802_v28 = vpop.f32.mrb[28].mxu0  ;;  %7412 = vst [vmem:[#allocation37_spill] sm:$0xff] %v6110_v38  ;;  %v1417_v30 = vrot.slane %v6117_v32, 7  ;;  %v1418_v7 = vrot.slane %v6119_v62, 7  ;;  %vm6149_vm5 = vcmp.le.s32.totalorder %v968_v5, 14  ;;  %v6153_v22 = vpack.c.bf16 %v1430_v35, %v1431_v37  ;;  %v5134_v35 = vld [vmem:[#allocation8 + $0x228] sm:$0xff]  }
 0x1ed   : > { %v6098_v45 = vadd.f32 %v4802_v28, %v5783_v59  ;;  %v780_v34 = vpop.f32.mrb[29].mxu0  ;;  %v1511_v28 = vrot.slane %v6043_v26, 1  ;;  %v1419_v27 = vrot.slane %v6122_v48, 7  ;;  %v1420_v49 = vrot.slane %v6129_v33, 7  ;;  %vm6274_vm11 = vmpackc.low %vm6149_vm5, %vm5424_vm6  ;;  %v7551_v14 = vld [vmem:[#allocation35_spill] sm:$0xff] }
 0x1ee   : > { %v781_v12 = vadd.f32 %v5783_v59, %v780_v34  ;;  %v4803_v4 = vpop.f32.mrb[30].mxu0  ;;  %7416 = vst [vmem:[#allocation39_spill] sm:$0xff] %v6153_v22  ;;  %v6178_v22 = vpack.c.bf16 %v6067_v3, %v6077_v39  ;;  %v1515_v39 = vrot.slane %v6119_v62, 1  ;;  %v894_v36 = vmax.f32 %v5787_v1, 0.0 }
 0x1ef   : > { %v792_v15 = vadd.f32 %v4803_v4, %v5783_v59  ;;  %v783_v6 = vpop.f32.mrb[31].mxu0  ;;  %v1513_v4 = vrot.slane %v6067_v3, 1  ;;  %v1528_v21 = vsel %vm1520_vm1, %v1511_v28, %v1512_v41  ;;  %v1529_v37 = vsel %vm1520_vm1, %v1510_v17, %v1511_v28  ;;  %v5098_v17 = vld [vmem:[#allocation8 + $0x100] sm:$0xff]   ;;  %v5099_v28 = vld [vmem:[#allocation8 + $0x148] sm:$0xff]  }
 0x1f0   : > { %v784_v34 = vadd.f32 %v5783_v59, %v783_v6  ;;  %v6142_v6 = vadd.s32 48, %v5791_v8  ;;  %v6180_v58 = vmax.f32 %v781_v12, 0.0  ;;  %v6195_v3 = vpack.c.bf16 %v1528_v21, %v1529_v37  ;;  %v5106_v37 = vld [vmem:[#allocation8 + $0x180] sm:$0xff]  }
 0x1f1   : > { %v6131_v26 = vmax.f32 %v792_v15, 0.0  ;;  %v1516_v1 = vrot.slane %v6122_v48, 1  ;;  %v7424_v60 = vpack.c.bf16 %v5849_v55, %v5855_v56  ;;  %v5100_v55 = vld [vmem:[#allocation8 + $0x108] sm:$0xff]   ;;  %vm6252_vm10 = vcmp.ge.s32.totalorder %v975_v10, 1 }
 0x1f2   : > { %v6139_v59 = vmax.f32 %v784_v34, 0.0  ;;  %v1514_v34 = vrot.slane %v6117_v32, 1  ;;  %vm6290_vm13 = vmpackc.low %vm5424_vm6, %vm6252_vm10 }
 0x1f3   : > { %v6147_v15 = vrot.slane %v6131_v26, 7 }
 0x1f4   : > { %v6158_v38 = vrot.slane %v6139_v59, 7 }
 0x1f5   : > { %v1637_v5 = vsel %vm1423_vm0, %v6147_v15, %v5803_v23 }
 0x1f6   : > { %v1455_v23 = vsel %vm1423_vm0, %v6158_v38, %v7419_v16  ;;  %v3970_v57 = vpack.c.bf16 %v5829_v43, %v1637_v5  ;;  %v1428_v16 = vsel %vm1423_vm0, %v1417_v30, %v1418_v7  ;;  %v1429_v5 = vsel %vm1423_vm0, %v1416_v51, %v1417_v30  ;;  %v5109_v30 = vld [vmem:[#allocation8 + $0x1c8] sm:$0xff]  }
 0x1f7   : > { %v3922_v12 = vpack.c.bf16 %v5844_v54, %v1455_v23  ;;  %v982_v54 = vand.u32 15, %v6135_v18  ;;  %v6214_v23 = vpack.c.bf16 %v1428_v16, %v1429_v5  ;;  %v1526_v51 = vsel %vm1520_vm1, %v1513_v4, %v1514_v34 }
 0x1f8   : > { %3971 = vmatprep.mubr.msk.bf16.mxu0 %vm6170_vm7, %v3970_v57  ;;  %v1527_v18 = vsel %vm1520_vm1, %v1512_v41, %v1513_v4  ;;  %v6230_v57 = vpack.c.bf16 %v6119_v62, %v6117_v32  ;;  %v1426_v16 = vsel %vm1423_vm0, %v1419_v27, %v1420_v49  ;;  %v1421_v5 = vrot.slane %v6180_v58, 7  ;;  %v5101_v32 = vld [vmem:[#allocation8 + $0x150] sm:$0xff]  }
 0x1f9   : > { %3923 = vmatmul.mubr.msk.bf16.vlgmr.msra.gmra.mrb[4].mxu1 %vm6170_vm7, %v3922_v12  ;;  %3974 = vmatmul.mubr.msk.bf16.vlgmr.msra.gmra.mrb[32].mxu0 %vm6191_vm8, %v7424_v60  ;;  %v1518_v12 = vrot.slane %v6180_v58, 1  ;;  %v6237_v56 = vpack.c.bf16 %v1526_v51, %v1527_v18  ;;  %v1427_v41 = vsel %vm1423_vm0, %v1418_v7, %v1419_v27  ;;  %v1517_v4 = vrot.slane %v6129_v33, 1  ;;  %v5114_v60 = vld [vmem:[#allocation8 + $0x190] sm:$0xff]  }
 0x1fa   : > { %4485 = vmatpush3.bf16.msra.mxu1 %v5098_v17  ;;  %2470 = vmatprep.mubr.bf16.mxu1 %v5831_v44  ;;  %v6243_v62 = vmax.f32 %v6098_v45, 0.0  ;;  %v6248_v17 = vpack.c.bf16 %v1426_v16, %v1427_v41  ;;  %v1524_v51 = vsel %vm1520_vm1, %v1515_v39, %v1516_v1  ;;  %v989_v27 = vand.u32 15, %v6142_v6  ;;  %v5110_v45 = vld [vmem:[#allocation8 + $0x188] sm:$0xff]  }
 0x1fb   : > { %3977 = vmatprep.mubr.msk.bf16.mxu0 %vm6209_vm9, %v5872_v9  ;;  %4486 = vmatprep.subr.bf16.mxu1 %v5099_v28  ;;  %v1525_v7 = vsel %vm1520_vm1, %v1514_v34, %v1515_v39  ;;  %v6261_v28 = vpack.c.bf16 %v6129_v33, %v6122_v48  ;;  %v1519_v18 = vrot.slane %v6139_v59, 1  ;;  %v1424_v10 = vsel %vm1423_vm0, %v1421_v5, %v6158_v38 }
 0x1fc   : > { %4597 = vmatpush3.bf16.msra.mxu0 %v5106_v37  ;;  %v6264_v16 = vpack.c.bf16 %v1524_v51, %v1525_v7  ;;  %v6269_v41 = vmul.f32 0.0, %v894_v36  ;;  %vm6278_vm12 = vcmp.le.s32.totalorder %v982_v54, 14  ;;  %v1425_v33 = vsel %vm1423_vm0, %v1420_v49, %v1421_v5  ;;  %v5102_v36 = vld [vmem:[#allocation8 + $0x110] sm:$0xff]   ;;  %v5111_v51 = vld [vmem:[#allocation8 + $0x168] sm:$0xff]  }
 0x1fd   : > { %4598 = vmatprep.subr.bf16.mxu0 %v5109_v30  ;;  %v1522_v34 = vsel %vm1520_vm1, %v1517_v4, %v1518_v12  ;;  %v1633_v39 = vrot.slane %v6243_v62, 7  ;;  %v5113_v54 = vld [vmem:[#allocation8 + $0x1d0] sm:$0xff]   ;;  %v6294_v37 = vpack.c.bf16 %v1424_v10, %v1425_v33  ;;  %v1523_v49 = vsel %vm1520_vm1, %v1516_v1, %v1517_v4  ;;  %vm6376_vm15 = vmpackc.low %vm6278_vm12, %vm5424_vm6 }
 0x1fe   : > { %7427 = vst [vmem:[#allocation40_spill] sm:$0xff] %v6269_v41  ;;  %4487 = vmatpush3.bf16.msra.mxu1 %v5100_v55  ;;  %v6300_v30 = vpack.c.bf16 %v6139_v59, %v6180_v58  ;;  %v1740_v5 = vrot.slane %v6269_v41, 7  ;;  %v1671_v55 = vrot.slane %v6131_v26, 1  ;;  %vm6304_vm14 = vcmp.ge.s32.totalorder %v989_v27, 1  ;;  %v5117_v58 = vld [vmem:[#allocation8 + $0x1d8] sm:$0xff]  }
 0x1ff   : > { %4488 = vmatprep.subr.bf16.mxu1 %v5101_v32  ;;  %v5103_v32 = vld [vmem:[#allocation8 + $0x158] sm:$0xff]   ;;  %v6308_v7 = vpack.c.bf16 %v1522_v34, %v1523_v49  ;;  %v1670_v10 = vrot.slane %v6243_v62, 1  ;;  %v7436_v1 = vpack.c.bf16 %v5829_v43, %v5879_v11  ;;  %v1635_v59 = vsel %vm1423_vm0, %v1633_v39, %v6147_v15  ;;  %vm6401_vm2 = vmpackc.low %vm5424_vm6, %vm6304_vm14 }
 0x200   : > { %4599 = vmatpush3.bf16.msra.mxu0 %v5110_v45  ;;  %v1636_v4 = vsel %vm1423_vm0, %v6158_v38, %v1633_v39  ;;  %v6327_v27 = vsel %vm1520_vm1, %v1518_v12, %v1519_v18  ;;  %v1777_v43 = vrot.slane %v6269_v41, 1  ;;  %v1778_v11 = vrot.slane %v5805_v24, 1  ;;  %v5104_v34 = vld [vmem:[#allocation8 + $0x118] sm:$0xff]  }
 0x201   : > { %3926 = vmatmul.mubr.msk.bf16.gmra.mrb[8].mxu1 %vm6209_vm9, %v7436_v1  ;;  %3980 = vmatmul.mubr.msk.bf16.gmra.mrb[36].mxu0 %vm6274_vm11, %v5900_v29  ;;  %v6335_v45 = vpack.c.bf16 %v1635_v59, %v1636_v4  ;;  %v7437_v33 = vrot.slane %v5799_v19, 1  ;;  %v918_v12 = vadd.s32 56, %v5791_v8  ;;  %v1673_v49 = vsel %vm1520_vm1, %v1519_v18, %v1670_v10  ;;  %v5107_v59 = vld [vmem:[#allocation8 + $0x160] sm:$0xff]   ;;  %v5118_v4 = vld [vmem:[#allocation8 + $0x198] sm:$0xff]  }
 0x202   : > { %2478 = vmatprep.mubr.bf16.mxu1 %v5816_v31  ;;  %3983 = vmatprep.mubr.msk.bf16.mxu0 %vm6290_vm13, %v5910_v42  ;;  %v6350_v1 = vpack.c.bf16 %v6131_v26, %v6243_v62  ;;  %v919_v19 = vadd.s32 64, %v5791_v8  ;;  %v7442_v62 = vrot.slane %v5805_v24, 7  ;;  %v6396_v48 = vsel %vm1520_vm1, %v1778_v11, %v5835_v46 }
 0x203   : > { %v6341_v38 = vsel %vm1520_vm1, %v1519_v18, %v7437_v33  ;;  %4489 = vmatpush3.bf16.msra.mxu1 %v5102_v36  ;;  %4600 = vmatprep.subr.bf16.mxu0 %v5113_v54  ;;  %v6354_v36 = vpack.c.bf16 %v1673_v49, %v6327_v27  ;;  %v6358_v54 = vsel %vm1520_vm1, %v1670_v10, %v1671_v55  ;;  %v7486_v24 = vmov 0  ;;  %v7556_v33 = vld [vmem:[#allocation38_spill] sm:$0xff] }
 0x204   : > { %7438 = vst [vmem:[#allocation41_spill] sm:$0xff] %v6350_v1  ;;  %4490 = vmatprep.subr.bf16.mxu1 %v5103_v32  ;;  %4601 = vmatpush3.bf16.msra.mxu0 %v5114_v60  ;;  %7440 = vst [vmem:[#allocation43_spill] sm:$0xff] %v6358_v54  ;;  %v6363_v18 = vsel %vm1520_vm1, %v1671_v55, %v5837_v47  ;;  %v6371_v32 = vsel %vm1423_vm0, %v1740_v5, %v7442_v62  ;;  %v5122_v62 = vld [vmem:[#allocation8 + $0x1a0] sm:$0xff]   ;;  %v7482_v54 = vld [vmem:[#allocation30_spill] sm:$0xff] }
 0x205   : > { %7439 = vst [vmem:[#allocation42_spill] sm:$0xff] %v6354_v36  ;;  %7441 = vst [vmem:[#allocation44_spill] sm:$0xff] %v6363_v18  ;;  %4602 = vmatprep.subr.bf16.mxu0 %v5117_v58  ;;  %v6383_v47 = vsel %vm1423_vm0, %v6147_v15, %v1740_v5  ;;  %v6387_v10 = vsel %vm1520_vm1, %v1671_v55, %v1777_v43  ;;  %v6391_v58 = vsel %vm1520_vm1, %v1777_v43, %v1778_v11  ;;  %v5108_v5 = vld [vmem:[#allocation8 + $0x120] sm:$0xff]   ;;  %v7491_v36 = vld [vmem:[#allocation33_spill] sm:$0xff] }
 0x206   : > { %7443 = vst [vmem:[#allocation45_spill] sm:$0xff] %v6371_v32  ;;  %7446 = vst [vmem:[#allocation46_spill] sm:$0xff] %v6383_v47  ;;  %v996_v15 = vand.u32 15, %v918_v12  ;;  %v5121_v55 = vld [vmem:[#allocation8 + $0x1e0] sm:$0xff]   ;;  %v1003_v11 = vand.u32 15, %v919_v19  ;;  %v5123_v12 = vld [vmem:[#allocation8 + $0x1e8] sm:$0xff]  }
 0x207   : > { %7447 = vst [vmem:[#allocation47_spill] sm:$0xff] %v6387_v10  ;;  %7448 = vst [vmem:[#allocation48_spill] sm:$0xff] %v6391_v58  ;;  %4491 = vmatpush3.bf16.msra.mxu1 %v5104_v34  ;;  %v920_v34 = vadd.s32 72, %v5791_v8  ;;  %v5112_v19 = vld [vmem:[#allocation8 + $0x128] sm:$0xff]   ;;  %v7473_v58 = vld [vmem:[#allocation27_spill] sm:$0xff]  ;;  %v7477_v10 = vmov 0 }
 0x208   : > { %7449 = vst [vmem:[#allocation49_spill] sm:$0xff] %v6396_v48  ;;  %4492 = vmatprep.subr.bf16.mxu1 %v5107_v59  ;;  %4603 = vmatpush3.bf16.msra.mxu0 %v5118_v4  ;;  %vm1366_vm0 = vcmp.le.s32.totalorder %v996_v15, 14  ;;  %vm1335_vm1 = vcmp.ge.s32.totalorder %v1003_v11, 1  ;;  %v5115_v59 = vld [vmem:[#allocation8 + $0x170] sm:$0xff]   ;;  %v5124_v4 = vld [vmem:[#allocation8 + $0x1a8] sm:$0xff]   ;;  %v7454_v15 = vmov 0 }
 0x209   : > { %3929 = vmatmul.mubr.msk.bf16.gmra.mrb[12].mxu1 %vm6290_vm13, %v5872_v9  ;;  %3986 = vmatmul.mubr.msk.bf16.gmra.mrb[40].mxu0 %vm6376_vm15, %v5921_v0  ;;  %v921_v9 = vadd.s32 80, %v5791_v8  ;;  %vm6424_vm3 = vmpackc.low %vm1366_vm0, %vm5424_vm6  ;;  %v5125_v11 = vld [vmem:[#allocation8 + $0x1f0] sm:$0xff]   ;;  %v928_v48 = vadd.s32 136, %v5791_v8  ;;  %v930_v18 = vadd.s32 152, %v5791_v8 }
 0x20a   : > { %2486 = vmatprep.mubr.bf16.mxu1 %v5918_v53  ;;  %3989 = vmatprep.mubr.msk.bf16.mxu0 %vm6401_vm2, %v5928_v13  ;;  %vm6429_vm4 = vmpackc.low %vm5424_vm6, %vm1335_vm1 }
 0x20b   : > { %4493 = vmatpush3.bf16.msra.mxu1 %v5108_v5  ;;  %4604 = vmatprep.subr.bf16.mxu0 %v5121_v55  ;;  %v7455_v15 = vsel %vm6429_vm4, 4294967295, %v7454_v15  ;;  %v1010_v5 = vand.u32 15, %v920_v34  ;;  %v5116_v55 = vld [vmem:[#allocation8 + $0x130] sm:$0xff]   ;;  %v1017_v49 = vand.u32 15, %v921_v9  ;;  %v922_v34 = vadd.s32 88, %v5791_v8 }
 0x20c   : > { %4494 = vmatprep.subr.bf16.mxu1 %v5111_v51  ;;  %4605 = vmatpush3.bf16.msra.mxu0 %v5122_v62  ;;  %v5119_v51 = vld [vmem:[#allocation8 + $0x178] sm:$0xff]   ;;  %v5126_v62 = vld [vmem:[#allocation8 + $0x1b0] sm:$0xff]   ;;  %v923_v9 = vadd.s32 96, %v5791_v8  ;;  %v1066_v47 = vand.u32 15, %v928_v48  ;;  %v931_v48 = vadd.s32 160, %v5791_v8  ;;  %v1080_v41 = vand.u32 15, %v930_v18 }
 0x20d   : > { %4606 = vmatprep.subr.bf16.mxu0 %v5123_v12  ;;  %v5127_v12 = vld [vmem:[#allocation8 + $0x1f8] sm:$0xff]   ;;  %vm1368_vm5 = vcmp.le.s32.totalorder %v1010_v5, 14  ;;  %vm1337_vm10 = vcmp.ge.s32.totalorder %v1017_v49, 1  ;;  %v7458_v5 = vmov 0  ;;  %v933_v18 = vadd.s32 176, %v5791_v8 }
 0x20e   : > { %vm6448_vm12 = vmpackc.low %vm1368_vm5, %vm5424_vm6  ;;  %v1031_v49 = vand.u32 15, %v923_v9  ;;  %v7464_v9 = vld [vmem:[#allocation23_spill] sm:$0xff]  ;;  %v1087_v1 = vand.u32 15, %v931_v48  ;;  %v7492_v48 = vmov 0 }
 0x20f   : > { %4495 = vmatpush3.bf16.msra.mxu1 %v5112_v19  ;;  %v5120_v19 = vld [vmem:[#allocation8 + $0x138] sm:$0xff]   ;;  %vm6453_vm14 = vmpackc.low %vm5424_vm6, %vm1337_vm10 }
 0x210   : > { %4496 = vmatprep.subr.bf16.mxu1 %v5115_v59  ;;  %4607 = vmatpush3.bf16.msra.mxu0 %v5124_v4  ;;  %v5128_v59 = vld [vmem:[#allocation8 + $0x1b8] sm:$0xff]   ;;  %v6445_v4 = vld [vmem:[#allocation8 + $0x200] sm:$0xff]   ;;  %v7459_v5 = vsel %vm6453_vm14, 4294967295, %v7458_v5  ;;  %vm1339_vm1 = vcmp.ge.s32.totalorder %v1031_v49, 1  ;;  %v927_v49 = vadd.s32 128, %v5791_v8 }
 0x211   : > { %3932 = vmatmul.mubr.msk.bf16.gmra.mrb[16].mxu1 %vm6401_vm2, %v5910_v42  ;;  %3992 = vmatmul.mubr.msk.bf16.gmra.mrb[44].mxu0 %vm6424_vm3, %v5936_v20  ;;  %vm6476_vm10 = vmpackc.low %vm5424_vm6, %vm1339_vm1 }
 0x212   : > { %2494 = vmatprep.mubr.bf16.mxu1 %v5940_v61  ;;  %3995 = vmatprep.mubr.msk.bf16.mxu0 %vm6429_vm4, %v5950_v50  ;;  %v1059_v39 = vand.u32 15, %v927_v49  ;;  %v7474_v49 = vmov 0 }
 0x213   : > { %4497 = vmatpush3.bf16.msra.mxu1 %v5116_v55  ;;  %4608 = vmatprep.subr.bf16.mxu0 %v5125_v11  ;;  %v1024_v55 = vand.u32 15, %v922_v34  ;;  %v924_v11 = vadd.s32 104, %v5791_v8 }
 0x214   : > { %4498 = vmatprep.subr.bf16.mxu1 %v5119_v51  ;;  %4609 = vmatpush3.bf16.msra.mxu0 %v5126_v62  ;;  %v925_v51 = vadd.s32 112, %v5791_v8  ;;  %v7460_v62 = vmov 0 }
 0x215   : > { %4610 = vmatprep.subr.bf16.mxu0 %v5127_v12  ;;  %vm1370_vm0 = vcmp.le.s32.totalorder %v1024_v55, 14  ;;  %v7462_v12 = vmov 0  ;;  %v1038_v34 = vand.u32 15, %v924_v11  ;;  %v926_v55 = vadd.s32 120, %v5791_v8 }
 0x216   : > { %vm6471_vm5 = vmpackc.low %vm1370_vm0, %vm5424_vm6  ;;  %v7463_v12 = vsel %vm6476_vm10, 4294967295, %v7462_v12  ;;  %v7466_v11 = vmov 0 }
 0x217   : > { %4499 = vmatpush3.bf16.msra.mxu1 %v5120_v19  ;;  %v7461_v62 = vsel %vm6471_vm5, 4294967295, %v7460_v62  ;;  %v1045_v19 = vand.u32 15, %v925_v51  ;;  %vm1372_vm0 = vcmp.le.s32.totalorder %v1038_v34, 14  ;;  %v7468_v51 = vmov 0  ;;  %v7471_v34 = vld [vmem:[#allocation25_spill] sm:$0xff] }
 0x218   : > { %4611 = vmatpush3.bf16.msra.mxu0 %v5128_v59  ;;  %4824 = vmatprep.subr.bf16.mxu1 %v6445_v4  ;;  %v7465_v59 = vld [vmem:[#allocation24_spill] sm:$0xff]  ;;  %v1052_v26 = vand.u32 15, %v926_v55  ;;  %v929_v55 = vadd.s32 144, %v5791_v8 }
 0x219   : > { %3935 = vmatmul.mubr.msk.bf16.gmra.mrb[20].mxu1 %vm6429_vm4, %v5928_v13  ;;  %3998 = vmatmul.mubr.msk.bf16.gmra.mrb[48].mxu0 %vm6448_vm12, %v5963_v52  ;;  %vm1341_vm1 = vcmp.ge.s32.totalorder %v1045_v19, 1  ;;  %vm6493_vm4 = vmpackc.low %vm1372_vm0, %vm5424_vm6  ;;  %v7472_v19 = vld [vmem:[#allocation26_spill] sm:$0xff] }
 0x21a   : > { %2502 = vmatprep.mubr.bf16.mxu1 %v5960_v40  ;;  %4001 = vmatprep.mubr.msk.bf16.mxu0 %vm6453_vm14, %v5975_v25  ;;  %v7467_v11 = vsel %vm6493_vm4, 4294967295, %v7466_v11  ;;  %vm1374_vm0 = vcmp.le.s32.totalorder %v1052_v26, 14  ;;  %v1073_v32 = vand.u32 15, %v929_v55  ;;  %v7480_v26 = vld [vmem:[#allocation29_spill] sm:$0xff]  ;;  %v7483_v55 = vmov 0 }
 0x221   : > { %3938 = vmatmul.mubr.msk.bf16.gmra.mrb[24].mxu1 %vm6453_vm14, %v5950_v50  ;;  %4004 = vmatmul.mubr.msk.bf16.gmra.mrb[52].mxu0 %vm6471_vm5, %v5977_v2  ;;  %vm6498_vm14 = vmpackc.low %vm5424_vm6, %vm1341_vm1  ;;  %vm1343_vm1 = vcmp.ge.s32.totalorder %v1059_v39, 1  ;;  %v7481_v39 = vld [vmem:[#allocation28_spill] sm:$0xff] }
 0x222   : > { %2510 = vmatprep.mubr.bf16.mxu1 %v7464_v9  ;;  %4007 = vmatprep.mubr.msk.bf16.mxu0 %vm6476_vm10, %v7465_v59  ;;  %v7469_v51 = vsel %vm6498_vm14, 4294967295, %v7468_v51  ;;  %vm6515_vm5 = vmpackc.low %vm1374_vm0, %vm5424_vm6  ;;  %vm1376_vm0 = vcmp.le.s32.totalorder %v1066_v47, 14  ;;  %v7489_v47 = vld [vmem:[#allocation31_spill] sm:$0xff] }
 0x223   : > { %7470 = vst [vmem:[#allocation23_spill] sm:$0xff] %v7469_v51  ;;  %v7475_v49 = vsel %vm6515_vm5, 4294967295, %v7474_v49  ;;  %v932_v51 = vadd.s32 168, %v5791_v8 }
 0x224   : > { %7476 = vst [vmem:[#allocation24_spill] sm:$0xff] %v7475_v49  ;;  %v7500_v49 = vld [vmem:[#allocation36_spill] sm:$0xff] }
 0x229   : > { %3941 = vmatmul.mubr.msk.bf16.gmra.mrb[28].mxu1 %vm6476_vm10, %v5975_v25  ;;  %4010 = vmatmul.mubr.msk.bf16.gmra.mrb[56].mxu0 %vm6493_vm4, %v7471_v34  ;;  %vm6520_vm10 = vmpackc.low %vm5424_vm6, %vm1343_vm1  ;;  %vm1345_vm1 = vcmp.ge.s32.totalorder %v1073_v32, 1  ;;  %v7490_v32 = vld [vmem:[#allocation32_spill] sm:$0xff] }
 0x22a   : > { %2518 = vmatprep.mubr.bf16.mxu1 %v7472_v19  ;;  %4013 = vmatprep.mubr.msk.bf16.mxu0 %vm6498_vm14, %v7473_v58  ;;  %v7478_v10 = vsel %vm6520_vm10, 4294967295, %v7477_v10  ;;  %vm6537_vm4 = vmpackc.low %vm1376_vm0, %vm5424_vm6  ;;  %vm1378_vm0 = vcmp.le.s32.totalorder %v1080_v41, 14  ;;  %v7498_v41 = vld [vmem:[#allocation34_spill] sm:$0xff] }
 0x22b   : > { %7479 = vst [vmem:[#allocation25_spill] sm:$0xff] %v7478_v10  ;;  %v7484_v55 = vsel %vm6537_vm4, 4294967295, %v7483_v55  ;;  %v7495_v10 = vmov 0 }
 0x22c   : > { %7485 = vst [vmem:[#allocation26_spill] sm:$0xff] %v7484_v55  ;;  %v1094_v55 = vand.u32 15, %v932_v51  ;;  %v935_v51 = vadd.s32 192, %v5791_v8 }
 0x231   : > { %3944 = vmatmul.mubr.msk.bf16.gmra.mrb[32].mxu1 %vm6498_vm14, %v7465_v59  ;;  %4016 = vmatmul.mubr.msk.bf16.gmra.mrb[60].mxu0 %vm6515_vm5, %v7480_v26  ;;  %vm6542_vm14 = vmpackc.low %vm5424_vm6, %vm1345_vm1  ;;  %vm1347_vm1 = vcmp.ge.s32.totalorder %v1087_v1, 1  ;;  %v7499_v1 = vld [vmem:[#allocation35_spill] sm:$0xff] }
 0x232   : > { %2526 = vmatprep.mubr.bf16.mxu1 %v7481_v39  ;;  %4019 = vmatprep.mubr.msk.bf16.mxu0 %vm6520_vm10, %v7482_v54  ;;  %v7487_v24 = vsel %vm6542_vm14, 4294967295, %v7486_v24  ;;  %vm6559_vm5 = vmpackc.low %vm1378_vm0, %vm5424_vm6  ;;  %vm1380_vm0 = vcmp.le.s32.totalorder %v1094_v55, 14  ;;  %v7507_v55 = vld [vmem:[#allocation37_spill] sm:$0xff] }
 0x233   : > { %7488 = vst [vmem:[#allocation27_spill] sm:$0xff] %v7487_v24  ;;  %v7493_v48 = vsel %vm6559_vm5, 4294967295, %v7492_v48  ;;  %v7504_v24 = vmov 0  ;;  %v7549_v21 = vld [vmem:[#allocation26_spill] sm:$0xff] }
 0x234   : > { %7494 = vst [vmem:[#allocation29_spill] sm:$0xff] %v7493_v48 }
 0x239   : > { %3947 = vmatmul.mubr.msk.bf16.gmra.mrb[36].mxu1 %vm6520_vm10, %v7473_v58  ;;  %4022 = vmatmul.mubr.msk.bf16.gmra.mrb[64].mxu0 %vm6537_vm4, %v7489_v47  ;;  %vm6564_vm10 = vmpackc.low %vm5424_vm6, %vm1347_vm1  ;;  %v934_v47 = vadd.s32 184, %v5791_v8 }
 0x23a   : > { %2534 = vmatprep.mubr.bf16.mxu1 %v7490_v32  ;;  %4025 = vmatprep.mubr.msk.bf16.mxu0 %vm6542_vm14, %v7491_v36  ;;  %v7496_v10 = vsel %vm6564_vm10, 4294967295, %v7495_v10  ;;  %v1101_v32 = vand.u32 15, %v933_v18  ;;  %vm6581_vm4 = vmpackc.low %vm1380_vm0, %vm5424_vm6  ;;  %v7501_v18 = vmov 0 }
 0x23b   : > { %7497 = vst [vmem:[#allocation28_spill] sm:$0xff] %v7496_v10  ;;  %v7502_v18 = vsel %vm6581_vm4, 4294967295, %v7501_v18  ;;  %v1108_v48 = vand.u32 15, %v934_v47  ;;  %v937_v47 = vadd.s32 208, %v5791_v8  ;;  %v7513_v10 = vmov 0 }
 0x23c   : > { %vm1349_vm1 = vcmp.ge.s32.totalorder %v1101_v32, 1  ;;  %7503 = vst [vmem:[#allocation33_spill] sm:$0xff] %v7502_v18  ;;  %v7508_v32 = vld [vmem:[#allocation38_spill] sm:$0xff] }
 0x23d   : > { %vm1382_vm0 = vcmp.le.s32.totalorder %v1108_v48, 14  ;;  %v938_v48 = vadd.s32 216, %v5791_v8 }
 0x241   : > { %3950 = vmatmul.mubr.msk.bf16.gmra.mrb[40].mxu1 %vm6542_vm14, %v7482_v54  ;;  %4028 = vmatmul.mubr.msk.bf16.gmra.mrb[68].mxu0 %vm6559_vm5, %v7498_v41  ;;  %vm6586_vm14 = vmpackc.low %vm5424_vm6, %vm1349_vm1  ;;  %v7509_v41 = vld [vmem:[#allocation39_spill] sm:$0xff]  ;;  %v936_v54 = vadd.s32 200, %v5791_v8 }
 0x242   : > { %2542 = vmatprep.mubr.bf16.mxu1 %v7499_v1  ;;  %4031 = vmatprep.mubr.msk.bf16.mxu0 %vm6564_vm10, %v7500_v49  ;;  %v7505_v24 = vsel %vm6586_vm14, 4294967295, %v7504_v24  ;;  %v1115_v1 = vand.u32 15, %v935_v51  ;;  %vm6603_vm5 = vmpackc.low %vm1382_vm0, %vm5424_vm6  ;;  %v7510_v51 = vmov 0 }
 0x243   : > { %7506 = vst [vmem:[#allocation36_spill] sm:$0xff] %v7505_v24  ;;  %v7511_v51 = vsel %vm6603_vm5, 4294967295, %v7510_v51  ;;  %v1122_v18 = vand.u32 15, %v936_v54  ;;  %v939_v54 = vadd.s32 224, %v5791_v8  ;;  %v1136_v24 = vand.u32 15, %v938_v48 }
 0x244   : > { %vm1351_vm1 = vcmp.ge.s32.totalorder %v1115_v1, 1  ;;  %7512 = vst [vmem:[#allocation37_spill] sm:$0xff] %v7511_v51  ;;  %v7516_v1 = vmov 0 }
 0x245   : > { %vm1384_vm0 = vcmp.le.s32.totalorder %v1122_v18, 14  ;;  %v1143_v51 = vand.u32 15, %v939_v54  ;;  %v940_v18 = vadd.s32 232, %v5791_v8  ;;  %v7523_v54 = vmov 0 }
 0x249   : > { %3953 = vmatmul.mubr.msk.bf16.gmra.mrb[44].mxu1 %vm6564_vm10, %v7491_v36  ;;  %4034 = vmatmul.mubr.msk.bf16.gmra.mrb[72].mxu0 %vm6581_vm4, %v7507_v55  ;;  %vm6608_vm10 = vmpackc.low %vm5424_vm6, %vm1351_vm1 }
 0x24a   : > { %2550 = vmatprep.mubr.bf16.mxu1 %v7508_v32  ;;  %4037 = vmatprep.mubr.msk.bf16.mxu0 %vm6586_vm14, %v7509_v41  ;;  %v7514_v10 = vsel %vm6608_vm10, 4294967295, %v7513_v10  ;;  %v1129_v32 = vand.u32 15, %v937_v47  ;;  %vm6625_vm4 = vmpackc.low %vm1384_vm0, %vm5424_vm6  ;;  %v7519_v47 = vmov 0  ;;  %vm1386_vm0 = vcmp.le.s32.totalorder %v1136_v24, 14 }
 0x24b   : > { %7515 = vst [vmem:[#allocation39_spill] sm:$0xff] %v7514_v10  ;;  %v7517_v1 = vsel %vm6625_vm4, 4294967295, %v7516_v1  ;;  %v1150_v10 = vand.u32 15, %v940_v18  ;;  %v942_v24 = vadd.s32 248, %v5791_v8 }
 0x24c   : > { %vm1353_vm1 = vcmp.ge.s32.totalorder %v1129_v32, 1  ;;  %7518 = vst [vmem:[#allocation50_spill] sm:$0xff] %v7517_v1  ;;  %v941_v32 = vadd.s32 240, %v5791_v8 }
 0x24e   : > { %v1157_v1 = vand.u32 15, %v941_v32  ;;  %v1164_v32 = vand.u32 15, %v942_v24  ;;  %v7533_v24 = vld [vmem:[#allocation21_spill] sm:$0xff] }
 0x251   : > { %3956 = vmatmul.mubr.msk.bf16.gmra.mrb[48].mxu1 %vm6586_vm14, %v7500_v49  ;;  %4040 = vmatmul.mubr.msk.bf16.gmra.mrb[76].mxu0 %vm6603_vm5, %v6195_v3  ;;  %vm6630_vm14 = vmpackc.low %vm5424_vm6, %vm1353_vm1  ;;  %vm1355_vm1 = vcmp.ge.s32.totalorder %v1143_v51, 1 }
 0x252   : > { %2558 = vmatprep.mubr.bf16.mxu1 %v6178_v22  ;;  %4043 = vmatprep.mubr.msk.bf16.mxu0 %vm6608_vm10, %v6214_v23  ;;  %v7520_v47 = vsel %vm6630_vm14, 4294967295, %v7519_v47  ;;  %vm6647_vm5 = vmpackc.low %vm1386_vm0, %vm5424_vm6  ;;  %vm1388_vm0 = vcmp.le.s32.totalorder %v1150_v10, 14  ;;  %v7532_v10 = vpack.c.bf16 %v6341_v38, %v6327_v27  ;;  %v5132_v27 = vld [vmem:[#allocation8 + $0x218] sm:$0xff]   ;;  %v7552_v38 = vld [vmem:[#allocation25_spill] sm:$0xff] }
 0x259   : > { %3959 = vmatmul.mubr.msk.bf16.gmra.mrb[52].mxu1 %vm6608_vm10, %v7509_v41  ;;  %4046 = vmatmul.mubr.msk.bf16.gmra.mrb[80].mxu0 %vm6625_vm4, %v6237_v56  ;;  %vm6652_vm10 = vmpackc.low %vm5424_vm6, %vm1355_vm1  ;;  %vm1357_vm1 = vcmp.ge.s32.totalorder %v1157_v1, 1  ;;  %v5130_v1 = vld [vmem:[#allocation8 + $0x208] sm:$0xff]  }
 0x25a   : > { %2566 = vmatprep.mubr.bf16.mxu1 %v6230_v57  ;;  %4049 = vmatprep.mubr.msk.bf16.mxu0 %vm6630_vm14, %v6248_v17  ;;  %v7524_v54 = vsel %vm6652_vm10, 4294967295, %v7523_v54  ;;  %vm6668_vm4 = vmpackc.low %vm1388_vm0, %vm5424_vm6  ;;  %vm1390_vm0 = vcmp.le.s32.totalorder %v1164_v32, 14  ;;  %v7534_v32 = vld [vmem:[#allocation22_spill] sm:$0xff] }
 0x25b   : > { %7525 = vst [vmem:[#allocation51_spill] sm:$0xff] %v7524_v54  ;;  %v7535_v54 = vpack.c.bf16 %v7533_v24, %v7534_v32 }
 0x261   : > { %3962 = vmatmul.mubr.msk.bf16.gmra.mrb[56].mxu1 %vm6630_vm14, %v6214_v23  ;;  %4052 = vmatmul.mubr.msk.bf16.gmra.mrb[84].mxu0 %vm6647_vm5, %v6264_v16  ;;  %vm6673_vm14 = vmpackc.low %vm5424_vm6, %vm1357_vm1 }
 0x262   : > { %2574 = vmatprep.mubr.bf16.mxu1 %v6261_v28  ;;  %4055 = vmatprep.mubr.msk.bf16.mxu0 %vm6652_vm10, %v6294_v37  ;;  %vm6688_vm1 = vmpackc.low %vm1390_vm0, %vm5424_vm6  ;;  %vm7536_vm6 = vnez %v7455_v15  ;;  %v7557_v15 = vld [vmem:[#allocation27_spill] sm:$0xff] }
 0x269   : > { %3965 = vmatmul.mubr.msk.bf16.gmra.mrb[60].mxu1 %vm6652_vm10, %v6248_v17  ;;  %4058 = vmatmul.mubr.msk.bf16.gmra.mrb[88].mxu0 %vm6668_vm4, %v6308_v7 }
 0x26a   : > { %2582 = vmatprep.mubr.bf16.mxu1 %v6300_v30  ;;  %4061 = vmatprep.mubr.msk.bf16.mxu0 %vm6673_vm14, %v6335_v45 }
 0x271   : > { %3968 = vmatmul.mubr.msk.bf16.gmra.mrb[64].mxu1 %vm6673_vm14, %v6294_v37  ;;  %4064 = vmatmul.mubr.msk.bf16.gmra.mrb[92].mxu0 %vm6688_vm1, %v7532_v10 }
 0x272   : > { %4067 = vmatprep.mubr.msk.bf16.mxu1 %vm6191_vm8, %v5900_v29  ;;  %2945 = vmatprep.mubr.bf16.mxu0 %v5816_v31  ;;  %v5131_v29 = vld [vmem:[#allocation8 + $0x210] sm:$0xff]  }
 0x279   : > { %2785 = vmatmul.mubr.bf16.vlgmr.msra.gmra.mrb[68].mxu1 %v5831_v44  ;;  %4115 = vmatmul.mubr.msk.bf16.vlgmr.msra.gmra.mrb[96].mxu0 %vm6170_vm7, %v7535_v54  ;;  %v5133_v44 = vld [vmem:[#allocation8 + $0x220] sm:$0xff]   ;;  %vm7537_vm7 = vnez %v7461_v62 }
 0x27a   : > { %4825 = vmatpush3.bf16.msra.mxu1 %v6445_v4  ;;  %4070 = vmatprep.mubr.msk.bf16.mxu1 %vm6274_vm11, %v5921_v0  ;;  %v7559_v4 = vld [vmem:[#allocation33_spill] sm:$0xff] }
 0x27b   : > { %2953 = vmatprep.mubr.bf16.mxu0 %v5918_v53  ;;  %4826 = vmatprep.subr.bf16.mxu1 %v5130_v1 }
 0x27e   : > { %4827 = vmatpush3.bf16.msra.mxu1 %v5130_v1 }
 0x27f   : > { %4828 = vmatprep.subr.bf16.mxu1 %v5131_v29 }
 0x281   : > { %2793 = vmatmul.mubr.bf16.gmra.mrb[72].mxu1 %v5816_v31  ;;  %4118 = vmatmul.mubr.msk.bf16.gmra.mrb[100].mxu0 %vm6209_vm9, %v5910_v42  ;;  %v5135_v31 = vld [vmem:[#allocation8 + $0x230] sm:$0xff]   ;;  %v5136_v42 = vld [vmem:[#allocation8 + $0x238] sm:$0xff]   ;;  %vm7538_vm9 = vnez %v7459_v5  ;;  %v7563_v5 = vld [vmem:[#allocation37_spill] sm:$0xff] }
 0x282   : > { %4073 = vmatprep.mubr.msk.bf16.mxu1 %vm6376_vm15, %v5936_v20  ;;  %2961 = vmatprep.mubr.bf16.mxu0 %v5940_v61 }
 0x283   : > { %4829 = vmatpush3.bf16.msra.mxu1 %v5131_v29 }
 0x284   : > { %4830 = vmatprep.subr.bf16.mxu1 %v5132_v27 }
 0x287   : > { %4831 = vmatpush3.bf16.msra.mxu1 %v5132_v27 }
 0x288   : > { %4832 = vmatprep.subr.bf16.mxu1 %v5133_v44 }
 0x289   : > { %2801 = vmatmul.mubr.bf16.gmra.mrb[76].mxu1 %v5918_v53  ;;  %4121 = vmatmul.mubr.msk.bf16.gmra.mrb[104].mxu0 %vm6290_vm13, %v5928_v13  ;;  %vm7539_vm13 = vnez %v7467_v11  ;;  %v7541_v53 = vld [vmem:[#allocation31_spill] sm:$0xff]  ;;  %v7542_v13 = vld [vmem:[#allocation24_spill] sm:$0xff] }
 0x28a   : > { %4076 = vmatprep.mubr.msk.bf16.mxu1 %vm6424_vm3, %v5963_v52  ;;  %2969 = vmatprep.mubr.bf16.mxu0 %v5960_v40  ;;  %vm7543_vm0 = vnez %v7542_v13 }
 0x28b   : > { %4833 = vmatpush3.bf16.msra.mxu1 %v5133_v44  ;;  %v7565_v44 = vld [vmem:[#allocation36_spill] sm:$0xff] }
 0x28c   : > { %4834 = vmatprep.subr.bf16.mxu1 %v5134_v35 }
 0x28f   : > { %4835 = vmatpush3.bf16.msra.mxu1 %v5134_v35 }
 0x290   : > { %4836 = vmatprep.subr.bf16.mxu1 %v5135_v31 }
 0x291   : > { %2809 = vmatmul.mubr.bf16.gmra.mrb[80].mxu1 %v5940_v61  ;;  %4124 = vmatmul.mubr.msk.bf16.gmra.mrb[108].mxu0 %vm6401_vm2, %v5950_v50  ;;  %vm7540_vm2 = vnez %v7463_v12  ;;  %v7544_v61 = vld [vmem:[#allocation32_spill] sm:$0xff]  ;;  %v7545_v50 = vld [vmem:[#allocation30_spill] sm:$0xff] }
 0x292   : > { %4079 = vmatprep.mubr.msk.bf16.mxu1 %vm6448_vm12, %v5977_v2  ;;  %2977 = vmatprep.mubr.bf16.mxu0 %v7464_v9 }
 0x293   : > { %4837 = vmatpush3.bf16.msra.mxu1 %v5135_v31 }
 0x294   : > { %4838 = vmatprep.subr.bf16.mxu1 %v5136_v42 }
 0x297   : > { %4839 = vmatpush3.bf16.msra.mxu1 %v5136_v42  ;;  %v7567_v42 = vld [vmem:[#allocation50_spill] sm:$0xff] }
 0x299   : > { %2817 = vmatmul.mubr.bf16.gmra.mrb[84].mxu1 %v5960_v40  ;;  %4127 = vmatmul.mubr.msk.bf16.gmra.mrb[112].mxu0 %vm7536_vm6, %v5975_v25  ;;  %v7546_v40 = vld [vmem:[#allocation23_spill] sm:$0xff]  ;;  %v7548_v25 = vld [vmem:[#allocation34_spill] sm:$0xff] }
 0x29a   : > { %4082 = vmatprep.mubr.msk.bf16.mxu1 %vm7537_vm7, %v7471_v34  ;;  %2985 = vmatprep.mubr.bf16.mxu0 %v7472_v19  ;;  %vm7547_vm6 = vnez %v7546_v40 }
 0x2a1   : > { %2825 = vmatmul.mubr.bf16.gmra.mrb[88].mxu1 %v7464_v9  ;;  %4130 = vmatmul.mubr.msk.bf16.gmra.mrb[116].mxu0 %vm7538_vm9, %v7465_v59  ;;  %vm7550_vm9 = vnez %v7549_v21  ;;  %v6798_v59 = vld [vmem:[%s7266_s5] ss:$0 sm:$0xff] }
 0x2a2   : > { %4085 = vmatprep.mubr.msk.bf16.mxu1 %vm7539_vm13, %v7480_v26  ;;  %2993 = vmatprep.mubr.bf16.mxu0 %v7481_v39 }
 0x2a9   : > { %2833 = vmatmul.mubr.bf16.gmra.mrb[92].mxu1 %v7472_v19  ;;  %4133 = vmatmul.mubr.msk.bf16.gmra.mrb[120].mxu0 %vm7540_vm2, %v7473_v58  ;;  %vm7553_vm2 = vnez %v7552_v38  ;;  %v7554_v58 = vld [vmem:[#allocation29_spill] sm:$0xff] }
 0x2aa   : > { %4088 = vmatprep.mubr.msk.bf16.mxu1 %vm7543_vm0, %v7541_v53  ;;  %3001 = vmatprep.mubr.bf16.mxu0 %v7544_v61  ;;  %vm7555_vm0 = vnez %v7554_v58 }
 0x2b1   : > { %2841 = vmatmul.mubr.bf16.gmra.mrb[96].mxu1 %v7481_v39  ;;  %4136 = vmatmul.mubr.msk.bf16.gmra.mrb[124].mxu0 %vm7547_vm6, %v7545_v50  ;;  %vm7558_vm6 = vnez %v7557_v15 }
 0x2b2   : > { %4091 = vmatprep.mubr.msk.bf16.mxu1 %vm7550_vm9, %v7548_v25  ;;  %3009 = vmatprep.mubr.bf16.mxu0 %v7551_v14  ;;  %vm7560_vm9 = vnez %v7559_v4 }
 0x2b9   : > { %2849 = vmatmul.mubr.bf16.gmra.mrb[100].mxu1 %v7544_v61  ;;  %4139 = vmatmul.mubr.msk.bf16.gmra.mrb[128].mxu0 %vm7553_vm2, %v7491_v36  ;;  %v7561_v36 = vld [vmem:[#allocation28_spill] sm:$0xff] }
 0x2ba   : > { %4094 = vmatprep.mubr.msk.bf16.mxu1 %vm7555_vm0, %v7507_v55  ;;  %3017 = vmatprep.mubr.bf16.mxu0 %v7556_v33  ;;  %vm7562_vm2 = vnez %v7561_v36  ;;  %vm7564_vm0 = vnez %v7563_v5 }
 0x2c1   : > { %2857 = vmatmul.mubr.bf16.gmra.mrb[104].mxu1 %v7551_v14  ;;  %4142 = vmatmul.mubr.msk.bf16.gmra.mrb[132].mxu0 %vm7558_vm6, %v7500_v49  ;;  %vm7566_vm6 = vnez %v7565_v44 }
 0x2c2   : > { %4097 = vmatprep.mubr.msk.bf16.mxu1 %vm7560_vm9, %v6195_v3  ;;  %3025 = vmatprep.mubr.bf16.mxu0 %v6178_v22 }
 0x2c9   : > { %2865 = vmatmul.mubr.bf16.gmra.mrb[108].mxu1 %v7556_v33  ;;  %4145 = vmatmul.mubr.msk.bf16.gmra.mrb[136].mxu0 %vm7562_vm2, %v7509_v41  ;;  %vm7568_vm2 = vnez %v7567_v42 }
 0x2ca   : > { %4100 = vmatprep.mubr.msk.bf16.mxu1 %vm7564_vm0, %v6237_v56  ;;  %3033 = vmatprep.mubr.bf16.mxu0 %v6230_v57 }
 0x2cc   : > { %v4276_v12 = vpop.f32.mrb[4].mxu1  ;;  %v4388_v9 = vpop.f32.mrb[32].mxu0 }
 0x2cd   : > { %v4277_v19 = vpop.f32.mrb[5].mxu1  ;;  %v4389_v49 = vpop.f32.mrb[33].mxu0 }
 0x2ce   : > { %v4278_v39 = vadd.f32 %v4277_v19, %v4276_v12  ;;  %v4390_v54 = vadd.f32 %v4389_v49, %v4388_v9  ;;  %v4279_v10 = vpop.f32.mrb[6].mxu1  ;;  %v4391_v1 = vpop.f32.mrb[34].mxu0 }
 0x2cf   : > { %v4280_v41 = vpop.f32.mrb[7].mxu1  ;;  %v4392_v24 = vpop.f32.mrb[35].mxu0 }
 0x2d0   : > { %v2465_v32 = vadd.f32 %v4278_v39, %v6798_v59  ;;  %v4281_v29 = vadd.f32 %v4280_v41, %v4279_v10  ;;  %v4393_v27 = vadd.f32 %v4392_v24, %v4391_v1  ;;  %v7569_v39 = vld [vmem:[#allocation39_spill] sm:$0xff] }
 0x2d1   : > { %2873 = vmatmul.mubr.bf16.gmra.mrb[112].mxu1 %v6178_v22  ;;  %4148 = vmatmul.mubr.msk.bf16.gmra.mrb[140].mxu0 %vm7566_vm6, %v6214_v23  ;;  %vm7570_vm6 = vnez %v7569_v39 }
 0x2d2   : > { %v6805_v35 = vadd.f32 %v4390_v54, %v2465_v32  ;;  %v2468_v31 = vadd.f32 %v4281_v29, %v6798_v59  ;;  %4103 = vmatprep.mubr.msk.bf16.mxu1 %vm7568_vm2, %v6264_v16  ;;  %3041 = vmatprep.mubr.bf16.mxu0 %v6261_v28 }
 0x2d4   : > { %v6812_v61 = vadd.f32 %v4393_v27, %v2468_v31  ;;  %v4282_v50 = vpop.f32.mrb[8].mxu1  ;;  %v4394_v40 = vpop.f32.mrb[36].mxu0 }
 0x2d5   : > { %v4283_v14 = vpop.f32.mrb[9].mxu1  ;;  %v4395_v22 = vpop.f32.mrb[37].mxu0 }
 0x2d6   : > { %v4284_v38 = vadd.f32 %v4283_v14, %v4282_v50  ;;  %v4396_v33 = vadd.f32 %v4395_v22, %v4394_v40  ;;  %v4285_v15 = vpop.f32.mrb[10].mxu1  ;;  %v4397_v23 = vpop.f32.mrb[38].mxu0 }
 0x2d7   : > { %v4286_v36 = vpop.f32.mrb[11].mxu1  ;;  %v4398_v12 = vpop.f32.mrb[39].mxu0 }
 0x2d8   : > { %v2473_v9 = vadd.f32 %v4284_v38, %v6798_v59  ;;  %v4287_v19 = vadd.f32 %v4286_v36, %v4285_v15  ;;  %v4399_v49 = vadd.f32 %v4398_v12, %v4397_v23  ;;  %v7572_v15 = vld [vmem:[#allocation42_spill] sm:$0xff]  ;;  %v7573_v23 = vld [vmem:[#allocation41_spill] sm:$0xff] }
 0x2d9   : > { %2881 = vmatmul.mubr.bf16.gmra.mrb[116].mxu1 %v6230_v57  ;;  %4151 = vmatmul.mubr.msk.bf16.gmra.mrb[144].mxu0 %vm7570_vm6, %v6248_v17  ;;  %vm7571_vm6 = vnez %v7520_v47 }
 0x2da   : > { %v6819_v54 = vadd.f32 %v4396_v33, %v2473_v9  ;;  %v2476_v10 = vadd.f32 %v4287_v19, %v6798_v59  ;;  %4106 = vmatprep.mubr.msk.bf16.mxu1 %vm6647_vm5, %v6308_v7  ;;  %3049 = vmatprep.mubr.bf16.mxu0 %v6300_v30 }
 0x2dc   : > { %v6826_v1 = vadd.f32 %v4399_v49, %v2476_v10  ;;  %v4288_v41 = vpop.f32.mrb[12].mxu1  ;;  %v4400_v24 = vpop.f32.mrb[40].mxu0 }
 0x2dd   : > { %v4289_v32 = vpop.f32.mrb[13].mxu1  ;;  %v4401_v57 = vpop.f32.mrb[41].mxu0 }
 0x2de   : > { %v4290_v29 = vadd.f32 %v4289_v32, %v4288_v41  ;;  %v4402_v27 = vadd.f32 %v4401_v57, %v4400_v24  ;;  %v4291_v44 = vpop.f32.mrb[14].mxu1  ;;  %v4403_v17 = vpop.f32.mrb[42].mxu0 }
 0x2df   : > { %v4292_v31 = vpop.f32.mrb[15].mxu1  ;;  %v4404_v50 = vpop.f32.mrb[43].mxu0 }
 0x2e0   : > { %v2481_v40 = vadd.f32 %v4290_v29, %v6798_v59  ;;  %v4293_v14 = vadd.f32 %v4292_v31, %v4291_v44  ;;  %v4405_v22 = vadd.f32 %v4404_v50, %v4403_v17  ;;  %v7574_v29 = vld [vmem:[#allocation40_spill] sm:$0xff] }
 0x2e1   : > { %2889 = vmatmul.mubr.bf16.gmra.mrb[120].mxu1 %v6261_v28  ;;  %4154 = vmatmul.mubr.msk.bf16.gmra.mrb[148].mxu0 %vm7571_vm6, %v6294_v37  ;;  %v5137_v17 = vld [vmem:[#allocation10] sm:$0xff]  }
 0x2e2   : > { %v6833_v38 = vadd.f32 %v4402_v27, %v2481_v40  ;;  %v2484_v33 = vadd.f32 %v4293_v14, %v6798_v59  ;;  %4109 = vmatprep.mubr.msk.bf16.mxu1 %vm6668_vm4, %v7572_v15  ;;  %3057 = vmatprep.mubr.bf16.mxu0 %v7573_v23  ;;  %v7575_v27 = vld [vmem:[#allocation20_spill] sm:$0xff] }
 0x2e3   : > { %v1830_v44 = vpack.c.bf16 %v7575_v27, %v7574_v29  ;;  %v7577_v14 = vld [vmem:[#allocation44_spill] sm:$0xff]  ;;  %4872 = vmatprep.subr.bf16.mxu0 %v5137_v17  ;;  %4920 = vmatprep.subr.bf16.mxu1 %v5137_v17  ;;  %v7580_v29 = vld [vmem:[#allocation45_spill] sm:$0xff] }
 0x2e4   : > { %v6840_v36 = vadd.f32 %v4405_v22, %v2484_v33  ;;  %v4294_v12 = vpop.f32.mrb[16].mxu1  ;;  %v4406_v9 = vpop.f32.mrb[44].mxu0  ;;  %v7578_v22 = vld [vmem:[#allocation43_spill] sm:$0xff]  ;;  %4873 = vmatpush3.bf16.msra.mxu0 %v5137_v17 }
 0x2e5   : > { %v4295_v19 = vpop.f32.mrb[17].mxu1  ;;  %v4407_v28 = vpop.f32.mrb[45].mxu0  ;;  %v7579_v33 = vpack.c.bf16 %v7577_v14, %v7578_v22 }
 0x2e6   : > { %v4296_v49 = vadd.f32 %v4295_v19, %v4294_v12  ;;  %v4408_v39 = vadd.f32 %v4407_v28, %v4406_v9  ;;  %v4297_v47 = vpop.f32.mrb[18].mxu1  ;;  %v4409_v37 = vpop.f32.mrb[46].mxu0 }
 0x2e7   : > { %v4298_v10 = vpop.f32.mrb[19].mxu1  ;;  %v4410_v41 = vpop.f32.mrb[47].mxu0 }
 0x2e8   : > { %v2489_v24 = vadd.f32 %v4296_v49, %v6798_v59  ;;  %v4299_v32 = vadd.f32 %v4298_v10, %v4297_v47  ;;  %v4411_v57 = vadd.f32 %v4410_v41, %v4409_v37 }
 0x2e9   : > { %2897 = vmatmul.mubr.bf16.gmra.mrb[124].mxu1 %v6300_v30  ;;  %4157 = vmatmul.mubr.msk.bf16.gmra.mrb[152].mxu0 %vm6652_vm10, %v6335_v45 }
 0x2ea   : > { %v6849_v50 = vadd.f32 %v4408_v39, %v2489_v24  ;;  %v2492_v40 = vadd.f32 %v4299_v32, %v6798_v59  ;;  %4112 = vmatprep.mubr.msk.bf16.mxu1 %vm6688_vm1, %v7579_v33  ;;  %3065 = vmatprep.mubr.bf16.mxu0 %v1830_v44 }
 0x2ec   : > { %v6857_v12 = vadd.f32 %v4411_v57, %v2492_v40  ;;  %v4300_v30 = vpop.f32.mrb[20].mxu1  ;;  %v4412_v9 = vpop.f32.mrb[48].mxu0  ;;  %v7581_v57 = vld [vmem:[#allocation46_spill] sm:$0xff] }
 0x2ed   : > { %v4301_v19 = vpop.f32.mrb[21].mxu1  ;;  %v4413_v45 = vpop.f32.mrb[49].mxu0  ;;  %v7582_v27 = vpack.c.bf16 %v7580_v29, %v7581_v57 }
 0x2ee   : > { %v4302_v28 = vadd.f32 %v4301_v19, %v4300_v30  ;;  %v4414_v49 = vadd.f32 %v4413_v45, %v4412_v9  ;;  %v4303_v39 = vpop.f32.mrb[22].mxu1  ;;  %v4415_v47 = vpop.f32.mrb[50].mxu0 }
 0x2ef   : > { %v4304_v37 = vpop.f32.mrb[23].mxu1  ;;  %v4416_v10 = vpop.f32.mrb[51].mxu0 }
 0x2f0   : > { %v2497_v41 = vadd.f32 %v4302_v28, %v6798_v59  ;;  %v4305_v24 = vadd.f32 %v4304_v37, %v4303_v39  ;;  %v4417_v32 = vadd.f32 %v4416_v10, %v4415_v47  ;;  %v5138_v10 = vld [vmem:[#allocation10 + $0x8] sm:$0xff]  }
 0x2f1   : > { %2905 = vmatmul.mubr.bf16.gmra.mrb[128].mxu1 %v7573_v23  ;;  %4160 = vmatmul.mubr.msk.bf16.gmra.mrb[156].mxu0 %vm6673_vm14, %v7582_v27 }
 0x2f2   : > { %v6866_v44 = vadd.f32 %v4414_v49, %v2497_v41  ;;  %v2500_v31 = vadd.f32 %v4305_v24, %v6798_v59  ;;  %4840 = vmatprep.mubr.msk.bf16.mxu1 %vm6191_vm8, %v5921_v0  ;;  %4874 = vmatprep.subr.bf16.mxu0 %v5138_v10  ;;  %vm7583_vm8 = vnez %v7542_v13 }
 0x2f3   : > { %4875 = vmatpush3.bf16.msra.mxu0 %v5138_v10 }
 0x2f4   : > { %v6872_v40 = vadd.f32 %v4417_v32, %v2500_v31  ;;  %v4306_v14 = vpop.f32.mrb[24].mxu1  ;;  %v4418_v33 = vpop.f32.mrb[52].mxu0 }
 0x2f5   : > { %v4307_v30 = vpop.f32.mrb[25].mxu1  ;;  %v4419_v23 = vpop.f32.mrb[53].mxu0 }
 0x2f6   : > { %v4308_v9 = vadd.f32 %v4307_v30, %v4306_v14  ;;  %v4420_v19 = vadd.f32 %v4419_v23, %v4418_v33  ;;  %v4309_v45 = vpop.f32.mrb[26].mxu1  ;;  %v4421_v28 = vpop.f32.mrb[54].mxu0 }
 0x2f7   : > { %v4310_v18 = vpop.f32.mrb[27].mxu1  ;;  %v4422_v39 = vpop.f32.mrb[55].mxu0 }
 0x2f8   : > { %v2505_v49 = vadd.f32 %v4308_v9, %v6798_v59  ;;  %v4311_v47 = vadd.f32 %v4310_v18, %v4309_v45  ;;  %v4423_v37 = vadd.f32 %v4422_v39, %v4421_v28 }
 0x2f9   : > { %4841 = vmatmul.mubr.msk.bf16.vlgmr.msra.gmra.mrb[132].mxu1 %vm6274_vm11, %v5936_v20  ;;  %vm7584_vm11 = vnez %v7549_v21 }
 0x2fa   : > { %v6878_v0 = vadd.f32 %v4420_v19, %v2505_v49  ;;  %v2508_v63 = vadd.f32 %v4311_v47, %v6798_v59  ;;  %4844 = vmatprep.mubr.msk.bf16.mxu1 %vm6376_vm15, %v5963_v52  ;;  %4928 = vmatpush3.bf16.msra.mxu1 %v5137_v17  ;;  %vm7585_vm15 = vnez %v7554_v58 }
 0x2fb   : > { %4921 = vmatprep.subr.bf16.mxu1 %v5138_v10 }
 0x2fc   : > { %v6884_v41 = vadd.f32 %v4423_v37, %v2508_v63  ;;  %v4312_v24 = vpop.f32.mrb[28].mxu1  ;;  %v4424_v32 = vpop.f32.mrb[56].mxu0 }
 0x2fd   : > { %v4313_v29 = vpop.f32.mrb[29].mxu1  ;;  %v4425_v57 = vpop.f32.mrb[57].mxu0 }
 0x2fe   : > { %v4314_v6 = vadd.f32 %v4313_v29, %v4312_v24  ;;  %v4426_v20 = vadd.f32 %v4425_v57, %v4424_v32  ;;  %v4315_v27 = vpop.f32.mrb[30].mxu1  ;;  %v4427_v31 = vpop.f32.mrb[58].mxu0  ;;  %4929 = vmatpush3.bf16.msra.mxu1 %v5138_v10  ;;  %v5139_v32 = vld [vmem:[#allocation10 + $0x10] sm:$0xff]  }
 0x2ff   : > { %v4316_v14 = vpop.f32.mrb[31].mxu1  ;;  %v4428_v33 = vpop.f32.mrb[59].mxu0  ;;  %4876 = vmatprep.subr.bf16.mxu0 %v5139_v32  ;;  %4922 = vmatprep.subr.bf16.mxu1 %v5139_v32 }
 0x300   : > { %v2513_v60 = vadd.f32 %v4314_v6, %v6798_v59  ;;  %v4317_v52 = vadd.f32 %v4316_v14, %v4315_v27  ;;  %v4429_v30 = vadd.f32 %v4428_v33, %v4427_v31  ;;  %4877 = vmatpush3.bf16.msra.mxu0 %v5139_v32 }
 0x301   : > { %4845 = vmatmul.mubr.msk.bf16.gmra.mrb[136].mxu1 %vm6424_vm3, %v5977_v2 }
 0x302   : > { %v6890_v17 = vadd.f32 %v4426_v20, %v2513_v60  ;;  %v2516_v23 = vadd.f32 %v4317_v52, %v6798_v59  ;;  %4848 = vmatprep.mubr.msk.bf16.mxu1 %vm6448_vm12, %v7471_v34  ;;  %4930 = vmatpush3.bf16.msra.mxu1 %v5139_v32 }
 0x304   : > { %v6896_v9 = vadd.f32 %v4429_v30, %v2516_v23  ;;  %v4318_v19 = vpop.f32.mrb[32].mxu1  ;;  %v4430_v45 = vpop.f32.mrb[60].mxu0 }
 0x305   : > { %v4319_v28 = vpop.f32.mrb[33].mxu1  ;;  %v4431_v18 = vpop.f32.mrb[61].mxu0 }
 0x306   : > { %v4320_v39 = vadd.f32 %v4319_v28, %v4318_v19  ;;  %v4432_v49 = vadd.f32 %v4431_v18, %v4430_v45  ;;  %v4321_v47 = vpop.f32.mrb[34].mxu1  ;;  %v4433_v37 = vpop.f32.mrb[62].mxu0 }
 0x307   : > { %v4322_v46 = vpop.f32.mrb[35].mxu1  ;;  %v4434_v2 = vpop.f32.mrb[63].mxu0 }
 0x308   : > { %v2521_v10 = vadd.f32 %v4320_v39, %v6798_v59  ;;  %v4323_v63 = vadd.f32 %v4322_v46, %v4321_v47  ;;  %v4435_v24 = vadd.f32 %v4434_v2, %v4433_v37 }
 0x309   : > { %4849 = vmatmul.mubr.msk.bf16.gmra.mrb[140].mxu1 %vm7537_vm7, %v7480_v26 }
 0x30a   : > { %v6902_v43 = vadd.f32 %v4432_v49, %v2521_v10  ;;  %v2524_v34 = vadd.f32 %v4323_v63, %v6798_v59  ;;  %4852 = vmatprep.mubr.msk.bf16.mxu1 %vm7539_vm13, %v7541_v53 }
 0x30c   : > { %v6908_v29 = vadd.f32 %v4435_v24, %v2524_v34  ;;  %v4324_v57 = vpop.f32.mrb[36].mxu1  ;;  %v4436_v6 = vpop.f32.mrb[64].mxu0  ;;  %v5140_v24 = vld [vmem:[#allocation10 + $0x18] sm:$0xff]  }
 0x30d   : > { %v4325_v20 = vpop.f32.mrb[37].mxu1  ;;  %v4437_v27 = vpop.f32.mrb[65].mxu0  ;;  %4878 = vmatprep.subr.bf16.mxu0 %v5140_v24  ;;  %4923 = vmatprep.subr.bf16.mxu1 %v5140_v24 }
 0x30e   : > { %v4326_v62 = vadd.f32 %v4325_v20, %v4324_v57  ;;  %v4438_v26 = vadd.f32 %v4437_v27, %v4436_v6  ;;  %v4327_v31 = vpop.f32.mrb[38].mxu1  ;;  %v4439_v14 = vpop.f32.mrb[66].mxu0  ;;  %4879 = vmatpush3.bf16.msra.mxu0 %v5140_v24  ;;  %4931 = vmatpush3.bf16.msra.mxu1 %v5140_v24 }
 0x30f   : > { %v4328_v33 = vpop.f32.mrb[39].mxu1  ;;  %v4440_v60 = vpop.f32.mrb[67].mxu0 }
 0x310   : > { %v2529_v52 = vadd.f32 %v4326_v62, %v6798_v59  ;;  %v4329_v11 = vadd.f32 %v4328_v33, %v4327_v31  ;;  %v4441_v53 = vadd.f32 %v4440_v60, %v4439_v14 }
 0x311   : > { %4853 = vmatmul.mubr.msk.bf16.gmra.mrb[144].mxu1 %vm7583_vm8, %v7548_v25 }
 0x312   : > { %v6914_v30 = vadd.f32 %v4438_v26, %v2529_v52  ;;  %v2532_v23 = vadd.f32 %v4329_v11, %v6798_v59  ;;  %4856 = vmatprep.mubr.msk.bf16.mxu1 %vm7584_vm11, %v7507_v55 }
 0x314   : > { %v6920_v19 = vadd.f32 %v4441_v53, %v2532_v23  ;;  %v4330_v45 = vpop.f32.mrb[40].mxu1  ;;  %v4442_v28 = vpop.f32.mrb[68].mxu0 }
 0x315   : > { %v4331_v18 = vpop.f32.mrb[41].mxu1  ;;  %v4443_v39 = vpop.f32.mrb[69].mxu0 }
 0x316   : > { %v4332_v49 = vadd.f32 %v4331_v18, %v4330_v45  ;;  %v4444_v47 = vadd.f32 %v4443_v39, %v4442_v28  ;;  %v4333_v37 = vpop.f32.mrb[42].mxu1  ;;  %v4445_v46 = vpop.f32.mrb[70].mxu0 }
 0x317   : > { %v4334_v13 = vpop.f32.mrb[43].mxu1  ;;  %v4446_v25 = vpop.f32.mrb[71].mxu0 }
 0x318   : > { %v2537_v2 = vadd.f32 %v4332_v49, %v6798_v59  ;;  %v4335_v10 = vadd.f32 %v4334_v13, %v4333_v37  ;;  %v4447_v63 = vadd.f32 %v4446_v25, %v4445_v46  ;;  %v5141_v13 = vld [vmem:[#allocation10 + $0x20] sm:$0xff]   ;;  %v7586_v25 = vld [vmem:[#allocation47_spill] sm:$0xff] }
 0x319   : > { %4857 = vmatmul.mubr.msk.bf16.gmra.mrb[148].mxu1 %vm7585_vm15, %v6195_v3  ;;  %4880 = vmatprep.subr.bf16.mxu0 %v5141_v13 }
 0x31a   : > { %v6926_v55 = vadd.f32 %v4444_v47, %v2537_v2  ;;  %v2540_v21 = vadd.f32 %v4335_v10, %v6798_v59  ;;  %4860 = vmatprep.mubr.msk.bf16.mxu1 %vm7560_vm9, %v6237_v56  ;;  %v7587_v2 = vpack.c.bf16 %v7586_v25, %v7578_v22  ;;  %4881 = vmatpush3.bf16.msra.mxu0 %v5141_v13 }
 0x31b   : > { %4924 = vmatprep.subr.bf16.mxu1 %v5141_v13 }
 0x31c   : > { %v6932_v32 = vadd.f32 %v4447_v63, %v2540_v21  ;;  %v4336_v34 = vpop.f32.mrb[44].mxu1  ;;  %v4448_v57 = vpop.f32.mrb[72].mxu0  ;;  %4932 = vmatpush3.bf16.msra.mxu1 %v5141_v13 }
 0x31d   : > { %v4337_v6 = vpop.f32.mrb[45].mxu1  ;;  %v4449_v20 = vpop.f32.mrb[73].mxu0 }
 0x31e   : > { %v4338_v58 = vadd.f32 %v4337_v6, %v4336_v34  ;;  %v4450_v3 = vadd.f32 %v4449_v20, %v4448_v57  ;;  %v4339_v27 = vpop.f32.mrb[46].mxu1  ;;  %v4451_v62 = vpop.f32.mrb[74].mxu0 }
 0x31f   : > { %v4340_v26 = vpop.f32.mrb[47].mxu1  ;;  %v4452_v31 = vpop.f32.mrb[75].mxu0 }
 0x320   : > { %v2545_v14 = vadd.f32 %v4338_v58, %v6798_v59  ;;  %v4341_v4 = vadd.f32 %v4340_v26, %v4339_v27  ;;  %v4453_v56 = vadd.f32 %v4452_v31, %v4451_v62  ;;  %v7588_v27 = vld [vmem:[#allocation49_spill] sm:$0xff]  ;;  %v7589_v62 = vld [vmem:[#allocation48_spill] sm:$0xff] }
 0x321   : > { %4861 = vmatmul.mubr.msk.bf16.gmra.mrb[152].mxu1 %vm7564_vm0, %v6264_v16  ;;  %v7590_v26 = vpack.c.bf16 %v7588_v27, %v7589_v62 }
 0x322   : > { %v6938_v33 = vadd.f32 %v4450_v3, %v2545_v14  ;;  %v2548_v60 = vadd.f32 %v4341_v4, %v6798_v59  ;;  %4864 = vmatprep.mubr.msk.bf16.mxu1 %vm7568_vm2, %v6308_v7 }
 0x324   : > { %v6944_v52 = vadd.f32 %v4453_v56, %v2548_v60  ;;  %v4342_v11 = vpop.f32.mrb[48].mxu1  ;;  %v4454_v53 = vpop.f32.mrb[76].mxu0 }
 0x325   : > { %v4343_v23 = vpop.f32.mrb[49].mxu1  ;;  %v4455_v45 = vpop.f32.mrb[77].mxu0 }
 0x326   : > { %v4344_v28 = vadd.f32 %v4343_v23, %v4342_v11  ;;  %v4456_v18 = vadd.f32 %v4455_v45, %v4454_v53  ;;  %v4345_v39 = vpop.f32.mrb[50].mxu1  ;;  %v4457_v49 = vpop.f32.mrb[78].mxu0 }
 0x327   : > { %v4346_v5 = vpop.f32.mrb[51].mxu1  ;;  %v4458_v16 = vpop.f32.mrb[79].mxu0 }
 0x328   : > { %v2553_v47 = vadd.f32 %v4344_v28, %v6798_v59  ;;  %v4347_v37 = vadd.f32 %v4346_v5, %v4345_v39  ;;  %v4459_v46 = vadd.f32 %v4458_v16, %v4457_v49 }
 0x329   : > { %4865 = vmatmul.mubr.msk.bf16.gmra.mrb[156].mxu1 %vm6647_vm5, %v7572_v15 }
 0x32a   : > { %v6950_v7 = vadd.f32 %v4456_v18, %v2553_v47  ;;  %v2556_v42 = vadd.f32 %v4347_v37, %v6798_v59  ;;  %4868 = vmatprep.mubr.msk.bf16.mxu1 %vm6668_vm4, %v7587_v2  ;;  %v5142_v47 = vld [vmem:[#allocation10 + $0x28] sm:$0xff]  }
 0x32b   : > { %4882 = vmatprep.subr.bf16.mxu0 %v5142_v47  ;;  %4925 = vmatprep.subr.bf16.mxu1 %v5142_v47 }
 0x32c   : > { %v6958_v10 = vadd.f32 %v4459_v46, %v2556_v42  ;;  %v4348_v63 = vpop.f32.mrb[52].mxu1  ;;  %v4460_v24 = vpop.f32.mrb[80].mxu0  ;;  %4883 = vmatpush3.bf16.msra.mxu0 %v5142_v47  ;;  %4933 = vmatpush3.bf16.msra.mxu1 %v5142_v47 }
 0x32d   : > { %v4349_v48 = vpop.f32.mrb[53].mxu1  ;;  %v4461_v15 = vpop.f32.mrb[81].mxu0 }
 0x32e   : > { %v4350_v21 = vadd.f32 %v4349_v48, %v4348_v63  ;;  %v4462_v34 = vadd.f32 %v4461_v15, %v4460_v24  ;;  %v4351_v57 = vpop.f32.mrb[54].mxu1  ;;  %v4463_v6 = vpop.f32.mrb[82].mxu0 }
 0x32f   : > { %v4352_v20 = vpop.f32.mrb[55].mxu1  ;;  %v4464_v58 = vpop.f32.mrb[83].mxu0 }
 0x330   : > { %v2561_v22 = vadd.f32 %v4350_v21, %v6798_v59  ;;  %v4353_v51 = vadd.f32 %v4352_v20, %v4351_v57  ;;  %v4465_v3 = vadd.f32 %v4464_v58, %v4463_v6 }
 0x331   : > { %4869 = vmatmul.mubr.msk.bf16.gmra.mrb[160].mxu1 %vm6688_vm1, %v7590_v26 }
 0x332   : > { %v6966_v31 = vadd.f32 %v4462_v34, %v2561_v22  ;;  %v2564_v14 = vadd.f32 %v4353_v51, %v6798_v59 }
 0x334   : > { %v6969_v4 = vadd.f32 %v4465_v3, %v2564_v14  ;;  %v4354_v56 = vpop.f32.mrb[56].mxu1  ;;  %v4466_v60 = vpop.f32.mrb[84].mxu0 }
 0x335   : > { %v4355_v11 = vpop.f32.mrb[57].mxu1  ;;  %v4467_v53 = vpop.f32.mrb[85].mxu0 }
 0x336   : > { %v4356_v23 = vadd.f32 %v4355_v11, %v4354_v56  ;;  %v4468_v45 = vadd.f32 %v4467_v53, %v4466_v60  ;;  %v4357_v28 = vpop.f32.mrb[58].mxu1  ;;  %v4469_v18 = vpop.f32.mrb[86].mxu0 }
 0x337   : > { %v4358_v39 = vpop.f32.mrb[59].mxu1  ;;  %v4470_v49 = vpop.f32.mrb[87].mxu0 }
 0x338   : > { %v2569_v5 = vadd.f32 %v4356_v23, %v6798_v59  ;;  %v4359_v8 = vadd.f32 %v4358_v39, %v4357_v28  ;;  %v4471_v16 = vadd.f32 %v4470_v49, %v4469_v18  ;;  %v5143_v49 = vld [vmem:[#allocation10 + $0x30] sm:$0xff]  }
 0x339   : > { %4884 = vmatprep.subr.bf16.mxu0 %v5143_v49  ;;  %4926 = vmatprep.subr.bf16.mxu1 %v5143_v49 }
 0x33a   : > { %v6972_v37 = vadd.f32 %v4468_v45, %v2569_v5  ;;  %v2572_v46 = vadd.f32 %v4359_v8, %v6798_v59  ;;  %4885 = vmatpush3.bf16.msra.mxu0 %v5143_v49  ;;  %4934 = vmatpush3.bf16.msra.mxu1 %v5143_v49 }
 0x33c   : > { %v6975_v13 = vadd.f32 %v4471_v16, %v2572_v46  ;;  %v4360_v42 = vpop.f32.mrb[60].mxu1  ;;  %v4472_v25 = vpop.f32.mrb[88].mxu0 }
 0x33d   : > { %v4361_v2 = vpop.f32.mrb[61].mxu1  ;;  %v4473_v63 = vpop.f32.mrb[89].mxu0 }
 0x33e   : > { %v4362_v24 = vadd.f32 %v4361_v2, %v4360_v42  ;;  %v4474_v48 = vadd.f32 %v4473_v63, %v4472_v25  ;;  %v4363_v15 = vpop.f32.mrb[62].mxu1  ;;  %v4475_v21 = vpop.f32.mrb[90].mxu0 }
 0x33f   : > { %v4364_v34 = vpop.f32.mrb[63].mxu1  ;;  %v4476_v57 = vpop.f32.mrb[91].mxu0 }
 0x340   : > { %v2577_v6 = vadd.f32 %v4362_v24, %v6798_v59  ;;  %v4365_v20 = vadd.f32 %v4364_v34, %v4363_v15  ;;  %v4477_v58 = vadd.f32 %v4476_v57, %v4475_v21 }
 0x342   : > { %v6978_v22 = vadd.f32 %v4474_v48, %v2577_v6  ;;  %v2580_v51 = vadd.f32 %v4365_v20, %v6798_v59 }
 0x344   : > { %v6981_v3 = vadd.f32 %v4477_v58, %v2580_v51  ;;  %v4366_v27 = vpop.f32.mrb[64].mxu1  ;;  %v4478_v62 = vpop.f32.mrb[92].mxu0 }
 0x345   : > { %v4367_v26 = vpop.f32.mrb[65].mxu1  ;;  %v4479_v14 = vpop.f32.mrb[93].mxu0 }
 0x346   : > { %v4368_v56 = vadd.f32 %v4367_v26, %v4366_v27  ;;  %v4480_v60 = vadd.f32 %v4479_v14, %v4478_v62  ;;  %v4369_v11 = vpop.f32.mrb[66].mxu1  ;;  %v4481_v53 = vpop.f32.mrb[94].mxu0  ;;  %v5144_v62 = vld [vmem:[#allocation10 + $0x38] sm:$0xff]  }
 0x347   : > { %v4370_v23 = vpop.f32.mrb[67].mxu1  ;;  %v4482_v45 = vpop.f32.mrb[95].mxu0  ;;  %4886 = vmatprep.subr.bf16.mxu0 %v5144_v62  ;;  %4927 = vmatprep.subr.bf16.mxu1 %v5144_v62 }
 0x348   : > { %v2585_v28 = vadd.f32 %v4368_v56, %v6798_v59  ;;  %v4371_v18 = vadd.f32 %v4370_v23, %v4369_v11  ;;  %v4483_v39 = vadd.f32 %v4482_v45, %v4481_v53  ;;  %4887 = vmatpush3.bf16.msra.mxu0 %v5144_v62  ;;  %4935 = vmatpush3.bf16.msra.mxu1 %v5144_v62 }
 0x34a   : > { %v6984_v5 = vadd.f32 %v4480_v60, %v2585_v28  ;;  %v2588_v8 = vadd.f32 %v4371_v18, %v6798_v59 }
 0x34c   : > { %v6987_v16 = vadd.f32 %v4483_v39, %v2588_v8  ;;  %v4500_v47 = vpop.f32.mrb[68].mxu1  ;;  %v4612_v46 = vpop.f32.mrb[96].mxu0 }
 0x34d   : > { %v4501_v42 = vpop.f32.mrb[69].mxu1  ;;  %v4613_v25 = vpop.f32.mrb[97].mxu0 }
 0x34e   : > { %v4502_v2 = vadd.f32 %v4501_v42, %v4500_v47  ;;  %v4614_v63 = vadd.f32 %v4613_v25, %v4612_v46  ;;  %v4503_v24 = vpop.f32.mrb[70].mxu1  ;;  %v4615_v48 = vpop.f32.mrb[98].mxu0 }
 0x34f   : > { %v4504_v15 = vpop.f32.mrb[71].mxu1  ;;  %v4616_v21 = vpop.f32.mrb[99].mxu0 }
 0x350   : > { %v2787_v34 = vadd.f32 %v4502_v2, %v6805_v35  ;;  %v4505_v57 = vadd.f32 %v4504_v15, %v4503_v24  ;;  %v4617_v59 = vadd.f32 %v4616_v21, %v4615_v48 }
 0x352   : > { %v2790_v6 = vadd.f32 %v4505_v57, %v6812_v61  ;;  %v6991_v20 = vadd.f32 %v4614_v63, %v2787_v34 }
 0x354   : > { %v4506_v58 = vpop.f32.mrb[72].mxu1  ;;  %v4618_v51 = vpop.f32.mrb[100].mxu0  ;;  %v6993_v27 = vadd.f32 %v4617_v59, %v2790_v6 }
 0x355   : > { %v4507_v26 = vpop.f32.mrb[73].mxu1  ;;  %v4619_v14 = vpop.f32.mrb[101].mxu0 }
 0x356   : > { %v4508_v56 = vadd.f32 %v4507_v26, %v4506_v58  ;;  %v4620_v60 = vadd.f32 %v4619_v14, %v4618_v51  ;;  %v4509_v11 = vpop.f32.mrb[74].mxu1  ;;  %v4621_v53 = vpop.f32.mrb[102].mxu0 }
 0x357   : > { %v4510_v35 = vpop.f32.mrb[75].mxu1  ;;  %v4622_v23 = vpop.f32.mrb[103].mxu0 }
 0x358   : > { %v2795_v61 = vadd.f32 %v4508_v56, %v6819_v54  ;;  %v4511_v45 = vadd.f32 %v4510_v35, %v4509_v11  ;;  %v4623_v28 = vadd.f32 %v4622_v23, %v4621_v53 }
 0x35a   : > { %v2798_v18 = vadd.f32 %v4511_v45, %v6826_v1  ;;  %v6997_v39 = vadd.f32 %v4620_v60, %v2795_v61 }
 0x35c   : > { %v4512_v49 = vpop.f32.mrb[76].mxu1  ;;  %v4624_v8 = vpop.f32.mrb[104].mxu0  ;;  %v6999_v47 = vadd.f32 %v4623_v28, %v2798_v18 }
 0x35d   : > { %v4513_v46 = vpop.f32.mrb[77].mxu1  ;;  %v4625_v42 = vpop.f32.mrb[105].mxu0 }
 0x35e   : > { %v4514_v25 = vadd.f32 %v4513_v46, %v4512_v49  ;;  %v4626_v2 = vadd.f32 %v4625_v42, %v4624_v8  ;;  %v4515_v63 = vpop.f32.mrb[78].mxu1  ;;  %v4627_v24 = vpop.f32.mrb[106].mxu0 }
 0x35f   : > { %v4516_v48 = vpop.f32.mrb[79].mxu1  ;;  %v4628_v15 = vpop.f32.mrb[107].mxu0 }
 0x360   : > { %v2803_v54 = vadd.f32 %v4514_v25, %v6833_v38  ;;  %v4517_v21 = vadd.f32 %v4516_v48, %v4515_v63  ;;  %v4629_v34 = vadd.f32 %v4628_v15, %v4627_v24 }
 0x362   : > { %v2806_v1 = vadd.f32 %v4517_v21, %v6840_v36  ;;  %v7003_v57 = vadd.f32 %v4626_v2, %v2803_v54 }
 0x364   : > { %v4518_v59 = vpop.f32.mrb[80].mxu1  ;;  %v4630_v6 = vpop.f32.mrb[108].mxu0  ;;  %v7005_v58 = vadd.f32 %v4629_v34, %v2806_v1 }
 0x365   : > { %v4519_v51 = vpop.f32.mrb[81].mxu1  ;;  %v4631_v62 = vpop.f32.mrb[109].mxu0 }
 0x366   : > { %v4520_v26 = vadd.f32 %v4519_v51, %v4518_v59  ;;  %v4632_v14 = vadd.f32 %v4631_v62, %v4630_v6  ;;  %v4521_v56 = vpop.f32.mrb[82].mxu1  ;;  %v4633_v60 = vpop.f32.mrb[110].mxu0 }
 0x367   : > { %v4522_v11 = vpop.f32.mrb[83].mxu1  ;;  %v4634_v53 = vpop.f32.mrb[111].mxu0 }
 0x368   : > { %v2811_v38 = vadd.f32 %v4520_v26, %v6849_v50  ;;  %v4523_v35 = vadd.f32 %v4522_v11, %v4521_v56  ;;  %v4635_v23 = vadd.f32 %v4634_v53, %v4633_v60 }
 0x36a   : > { %v2814_v36 = vadd.f32 %v4523_v35, %v6857_v12  ;;  %v7009_v61 = vadd.f32 %v4632_v14, %v2811_v38 }
 0x36c   : > { %v4524_v45 = vpop.f32.mrb[84].mxu1  ;;  %v4636_v28 = vpop.f32.mrb[112].mxu0  ;;  %v7011_v18 = vadd.f32 %v4635_v23, %v2814_v36 }
 0x36d   : > { %v4525_v49 = vpop.f32.mrb[85].mxu1  ;;  %v4637_v8 = vpop.f32.mrb[113].mxu0 }
 0x36e   : > { %v4526_v46 = vadd.f32 %v4525_v49, %v4524_v45  ;;  %v4638_v42 = vadd.f32 %v4637_v8, %v4636_v28  ;;  %v4527_v25 = vpop.f32.mrb[86].mxu1  ;;  %v4639_v2 = vpop.f32.mrb[114].mxu0 }
 0x36f   : > { %v4528_v63 = vpop.f32.mrb[87].mxu1  ;;  %v4640_v24 = vpop.f32.mrb[115].mxu0 }
 0x370   : > { %v2819_v50 = vadd.f32 %v4526_v46, %v6866_v44  ;;  %v4529_v48 = vadd.f32 %v4528_v63, %v4527_v25  ;;  %v4641_v15 = vadd.f32 %v4640_v24, %v4639_v2 }
 0x372   : > { %v2822_v12 = vadd.f32 %v4529_v48, %v6872_v40  ;;  %v7015_v54 = vadd.f32 %v4638_v42, %v2819_v50 }
 0x374   : > { %v4530_v21 = vpop.f32.mrb[88].mxu1  ;;  %v4642_v34 = vpop.f32.mrb[116].mxu0  ;;  %v7017_v1 = vadd.f32 %v4641_v15, %v2822_v12 }
 0x375   : > { %v4531_v59 = vpop.f32.mrb[89].mxu1  ;;  %v4643_v6 = vpop.f32.mrb[117].mxu0 }
 0x376   : > { %v4532_v51 = vadd.f32 %v4531_v59, %v4530_v21  ;;  %v4644_v62 = vadd.f32 %v4643_v6, %v4642_v34  ;;  %v4533_v26 = vpop.f32.mrb[90].mxu1  ;;  %v4645_v14 = vpop.f32.mrb[118].mxu0 }
 0x377   : > { %v4534_v56 = vpop.f32.mrb[91].mxu1  ;;  %v4646_v60 = vpop.f32.mrb[119].mxu0 }
 0x378   : > { %v2827_v44 = vadd.f32 %v4532_v51, %v6878_v0  ;;  %v4535_v11 = vadd.f32 %v4534_v56, %v4533_v26  ;;  %v4647_v53 = vadd.f32 %v4646_v60, %v4645_v14 }
 0x37a   : > { %v2830_v40 = vadd.f32 %v4535_v11, %v6884_v41  ;;  %v7021_v38 = vadd.f32 %v4644_v62, %v2827_v44 }
 0x37c   : > { %v4536_v35 = vpop.f32.mrb[92].mxu1  ;;  %v4648_v23 = vpop.f32.mrb[120].mxu0  ;;  %v7023_v36 = vadd.f32 %v4647_v53, %v2830_v40 }
 0x37d   : > { %v4537_v45 = vpop.f32.mrb[93].mxu1  ;;  %v4649_v28 = vpop.f32.mrb[121].mxu0 }
 0x37e   : > { %v4538_v49 = vadd.f32 %v4537_v45, %v4536_v35  ;;  %v4650_v8 = vadd.f32 %v4649_v28, %v4648_v23  ;;  %v4539_v46 = vpop.f32.mrb[94].mxu1  ;;  %v4651_v42 = vpop.f32.mrb[122].mxu0 }
 0x37f   : > { %v4540_v25 = vpop.f32.mrb[95].mxu1  ;;  %v4652_v2 = vpop.f32.mrb[123].mxu0 }
 0x380   : > { %v2835_v0 = vadd.f32 %v4538_v49, %v6890_v17  ;;  %v4541_v63 = vadd.f32 %v4540_v25, %v4539_v46  ;;  %v4653_v24 = vadd.f32 %v4652_v2, %v4651_v42 }
 0x382   : > { %v2838_v41 = vadd.f32 %v4541_v63, %v6896_v9  ;;  %v7027_v50 = vadd.f32 %v4650_v8, %v2835_v0 }
 0x384   : > { %v4542_v48 = vpop.f32.mrb[96].mxu1  ;;  %v4654_v15 = vpop.f32.mrb[124].mxu0  ;;  %v7029_v12 = vadd.f32 %v4653_v24, %v2838_v41 }
 0x385   : > { %v4543_v21 = vpop.f32.mrb[97].mxu1  ;;  %v4655_v34 = vpop.f32.mrb[125].mxu0 }
 0x386   : > { %v4544_v59 = vadd.f32 %v4543_v21, %v4542_v48  ;;  %v4656_v6 = vadd.f32 %v4655_v34, %v4654_v15  ;;  %v4545_v51 = vpop.f32.mrb[98].mxu1  ;;  %v4657_v62 = vpop.f32.mrb[126].mxu0 }
 0x387   : > { %v4546_v26 = vpop.f32.mrb[99].mxu1  ;;  %v4658_v14 = vpop.f32.mrb[127].mxu0 }
 0x388   : > { %v2843_v17 = vadd.f32 %v4544_v59, %v6902_v43  ;;  %v4547_v56 = vadd.f32 %v4546_v26, %v4545_v51  ;;  %v4659_v60 = vadd.f32 %v4658_v14, %v4657_v62 }
 0x38a   : > { %v2846_v9 = vadd.f32 %v4547_v56, %v6908_v29  ;;  %v7033_v44 = vadd.f32 %v4656_v6, %v2843_v17 }
 0x38c   : > { %v4548_v11 = vpop.f32.mrb[100].mxu1  ;;  %v4660_v53 = vpop.f32.mrb[128].mxu0  ;;  %v7035_v40 = vadd.f32 %v4659_v60, %v2846_v9 }
 0x38d   : > { %v4549_v35 = vpop.f32.mrb[101].mxu1  ;;  %v4661_v23 = vpop.f32.mrb[129].mxu0 }
 0x38e   : > { %v4550_v45 = vadd.f32 %v4549_v35, %v4548_v11  ;;  %v4662_v28 = vadd.f32 %v4661_v23, %v4660_v53  ;;  %v4551_v49 = vpop.f32.mrb[102].mxu1  ;;  %v4663_v8 = vpop.f32.mrb[130].mxu0 }
 0x38f   : > { %v4552_v46 = vpop.f32.mrb[103].mxu1  ;;  %v4664_v42 = vpop.f32.mrb[131].mxu0 }
 0x390   : > { %v2851_v43 = vadd.f32 %v4550_v45, %v6914_v30  ;;  %v4553_v25 = vadd.f32 %v4552_v46, %v4551_v49  ;;  %v4665_v2 = vadd.f32 %v4664_v42, %v4663_v8 }
 0x392   : > { %v2854_v29 = vadd.f32 %v4553_v25, %v6920_v19  ;;  %v7039_v0 = vadd.f32 %v4662_v28, %v2851_v43 }
 0x394   : > { %v4554_v63 = vpop.f32.mrb[104].mxu1  ;;  %v4666_v24 = vpop.f32.mrb[132].mxu0  ;;  %v7041_v41 = vadd.f32 %v4665_v2, %v2854_v29 }
 0x395   : > { %v4555_v48 = vpop.f32.mrb[105].mxu1  ;;  %v4667_v15 = vpop.f32.mrb[133].mxu0 }
 0x396   : > { %v4556_v21 = vadd.f32 %v4555_v48, %v4554_v63  ;;  %v4668_v34 = vadd.f32 %v4667_v15, %v4666_v24  ;;  %v4557_v59 = vpop.f32.mrb[106].mxu1  ;;  %v4669_v6 = vpop.f32.mrb[134].mxu0 }
 0x397   : > { %v4558_v51 = vpop.f32.mrb[107].mxu1  ;;  %v4670_v62 = vpop.f32.mrb[135].mxu0 }
 0x398   : > { %v2859_v30 = vadd.f32 %v4556_v21, %v6926_v55  ;;  %v4559_v26 = vadd.f32 %v4558_v51, %v4557_v59  ;;  %v4671_v14 = vadd.f32 %v4670_v62, %v4669_v6 }
 0x39a   : > { %v2862_v19 = vadd.f32 %v4559_v26, %v6932_v32  ;;  %v7045_v17 = vadd.f32 %v4668_v34, %v2859_v30 }
 0x39c   : > { %v4560_v56 = vpop.f32.mrb[108].mxu1  ;;  %v4672_v60 = vpop.f32.mrb[136].mxu0  ;;  %v7047_v9 = vadd.f32 %v4671_v14, %v2862_v19 }
 0x39d   : > { %v4561_v11 = vpop.f32.mrb[109].mxu1  ;;  %v4673_v53 = vpop.f32.mrb[137].mxu0 }
 0x39e   : > { %v4562_v35 = vadd.f32 %v4561_v11, %v4560_v56  ;;  %v4674_v23 = vadd.f32 %v4673_v53, %v4672_v60  ;;  %v4563_v45 = vpop.f32.mrb[110].mxu1  ;;  %v4675_v28 = vpop.f32.mrb[138].mxu0 }
 0x39f   : > { %v4564_v49 = vpop.f32.mrb[111].mxu1  ;;  %v4676_v8 = vpop.f32.mrb[139].mxu0 }
 0x3a0   : > { %v2867_v55 = vadd.f32 %v4562_v35, %v6938_v33  ;;  %v4565_v46 = vadd.f32 %v4564_v49, %v4563_v45  ;;  %v4677_v42 = vadd.f32 %v4676_v8, %v4675_v28 }
 0x3a2   : > { %v2870_v32 = vadd.f32 %v4565_v46, %v6944_v52  ;;  %v7051_v43 = vadd.f32 %v4674_v23, %v2867_v55 }
 0x3a4   : > { %v4566_v25 = vpop.f32.mrb[112].mxu1  ;;  %v4678_v2 = vpop.f32.mrb[140].mxu0  ;;  %v7053_v29 = vadd.f32 %v4677_v42, %v2870_v32 }
 0x3a5   : > { %v4567_v63 = vpop.f32.mrb[113].mxu1  ;;  %v4679_v24 = vpop.f32.mrb[141].mxu0 }
 0x3a6   : > { %v4568_v48 = vadd.f32 %v4567_v63, %v4566_v25  ;;  %v4680_v15 = vadd.f32 %v4679_v24, %v4678_v2  ;;  %v4569_v21 = vpop.f32.mrb[114].mxu1  ;;  %v4681_v34 = vpop.f32.mrb[142].mxu0 }
 0x3a7   : > { %v4570_v59 = vpop.f32.mrb[115].mxu1  ;;  %v4682_v6 = vpop.f32.mrb[143].mxu0 }
 0x3a8   : > { %v2875_v33 = vadd.f32 %v4568_v48, %v6950_v7  ;;  %v4571_v51 = vadd.f32 %v4570_v59, %v4569_v21  ;;  %v4683_v62 = vadd.f32 %v4682_v6, %v4681_v34 }
 0x3aa   : > { %v2878_v52 = vadd.f32 %v4571_v51, %v6958_v10  ;;  %v7057_v30 = vadd.f32 %v4680_v15, %v2875_v33 }
 0x3ac   : > { %v4572_v26 = vpop.f32.mrb[116].mxu1  ;;  %v4684_v14 = vpop.f32.mrb[144].mxu0  ;;  %v7059_v19 = vadd.f32 %v4683_v62, %v2878_v52 }
 0x3ad   : > { %v4573_v56 = vpop.f32.mrb[117].mxu1  ;;  %v4685_v60 = vpop.f32.mrb[145].mxu0 }
 0x3ae   : > { %v4574_v11 = vadd.f32 %v4573_v56, %v4572_v26  ;;  %v4686_v53 = vadd.f32 %v4685_v60, %v4684_v14  ;;  %v4575_v35 = vpop.f32.mrb[118].mxu1  ;;  %v4687_v23 = vpop.f32.mrb[146].mxu0 }
 0x3af   : > { %v4576_v45 = vpop.f32.mrb[119].mxu1  ;;  %v4688_v28 = vpop.f32.mrb[147].mxu0 }
 0x3b0   : > { %v2883_v7 = vadd.f32 %v4574_v11, %v6966_v31  ;;  %v4577_v49 = vadd.f32 %v4576_v45, %v4575_v35  ;;  %v4689_v8 = vadd.f32 %v4688_v28, %v4687_v23 }
 0x3b2   : > { %v2886_v10 = vadd.f32 %v4577_v49, %v6969_v4  ;;  %v7063_v55 = vadd.f32 %v4686_v53, %v2883_v7 }
 0x3b4   : > { %v4578_v46 = vpop.f32.mrb[120].mxu1  ;;  %v4690_v42 = vpop.f32.mrb[148].mxu0  ;;  %v7065_v32 = vadd.f32 %v4689_v8, %v2886_v10 }
 0x3b5   : > { %v4579_v25 = vpop.f32.mrb[121].mxu1  ;;  %v4691_v2 = vpop.f32.mrb[149].mxu0 }
 0x3b6   : > { %v4580_v63 = vadd.f32 %v4579_v25, %v4578_v46  ;;  %v4692_v24 = vadd.f32 %v4691_v2, %v4690_v42  ;;  %v4581_v48 = vpop.f32.mrb[122].mxu1  ;;  %v4693_v15 = vpop.f32.mrb[150].mxu0 }
 0x3b7   : > { %v4582_v21 = vpop.f32.mrb[123].mxu1  ;;  %v4694_v34 = vpop.f32.mrb[151].mxu0 }
 0x3b8   : > { %v2891_v31 = vadd.f32 %v4580_v63, %v6972_v37  ;;  %v4583_v59 = vadd.f32 %v4582_v21, %v4581_v48  ;;  %v4695_v6 = vadd.f32 %v4694_v34, %v4693_v15 }
 0x3ba   : > { %v2894_v4 = vadd.f32 %v4583_v59, %v6975_v13  ;;  %v7069_v33 = vadd.f32 %v4692_v24, %v2891_v31 }
 0x3bc   : > { %v4584_v51 = vpop.f32.mrb[124].mxu1  ;;  %v4696_v62 = vpop.f32.mrb[152].mxu0  ;;  %v7071_v52 = vadd.f32 %v4695_v6, %v2894_v4 }
 0x3bd   : > { %v4585_v26 = vpop.f32.mrb[125].mxu1  ;;  %v4697_v14 = vpop.f32.mrb[153].mxu0 }
 0x3be   : > { %v4586_v56 = vadd.f32 %v4585_v26, %v4584_v51  ;;  %v4698_v60 = vadd.f32 %v4697_v14, %v4696_v62  ;;  %v4587_v11 = vpop.f32.mrb[126].mxu1  ;;  %v4699_v53 = vpop.f32.mrb[154].mxu0 }
 0x3bf   : > { %v4588_v35 = vpop.f32.mrb[127].mxu1  ;;  %v4700_v23 = vpop.f32.mrb[155].mxu0 }
 0x3c0   : > { %v2899_v37 = vadd.f32 %v4586_v56, %v6978_v22  ;;  %v4589_v45 = vadd.f32 %v4588_v35, %v4587_v11  ;;  %v4701_v28 = vadd.f32 %v4700_v23, %v4699_v53 }
 0x3c2   : > { %v2902_v13 = vadd.f32 %v4589_v45, %v6981_v3  ;;  %v7075_v7 = vadd.f32 %v4698_v60, %v2899_v37 }
 0x3c4   : > { %v4590_v49 = vpop.f32.mrb[128].mxu1  ;;  %v4702_v8 = vpop.f32.mrb[156].mxu0  ;;  %v7077_v10 = vadd.f32 %v4701_v28, %v2902_v13 }
 0x3c5   : > { %v4591_v46 = vpop.f32.mrb[129].mxu1  ;;  %v4703_v42 = vpop.f32.mrb[157].mxu0 }
 0x3c6   : > { %v4592_v25 = vadd.f32 %v4591_v46, %v4590_v49  ;;  %v4704_v2 = vadd.f32 %v4703_v42, %v4702_v8  ;;  %v4593_v63 = vpop.f32.mrb[130].mxu1  ;;  %v4705_v24 = vpop.f32.mrb[158].mxu0 }
 0x3c7   : > { %v4594_v48 = vpop.f32.mrb[131].mxu1  ;;  %v4706_v15 = vpop.f32.mrb[159].mxu0 }
 0x3c8   : > { %v2907_v22 = vadd.f32 %v4592_v25, %v6984_v5  ;;  %v4595_v21 = vadd.f32 %v4594_v48, %v4593_v63  ;;  %v4707_v34 = vadd.f32 %v4706_v15, %v4705_v24 }
 0x3ca   : > { %v2910_v3 = vadd.f32 %v4595_v21, %v6987_v16  ;;  %v7081_v31 = vadd.f32 %v4704_v2, %v2907_v22 }
 0x3cc   : > { %v4842_v59 = vpop.f32.mrb[132].mxu1  ;;  %v7083_v6 = vadd.f32 %v4707_v34, %v2910_v3 }
 0x3cd   : > { %v3117_v4 = vadd.f32 %v4842_v59, %v6997_v39  ;;  %v3108_v51 = vpop.f32.mrb[133].mxu1 }
 0x3ce   : > { %v3109_v62 = vadd.f32 %v3108_v51, %v6991_v20  ;;  %v4843_v26 = vpop.f32.mrb[134].mxu1 }
 0x3cf   : > { %v3120_v14 = vadd.f32 %v4843_v26, %v6999_v47  ;;  %v3111_v56 = vpop.f32.mrb[135].mxu1  ;;  %v3237_v60 = vmax.f32 %v3117_v4, 0.0 }
 0x3d0   : > { %v3112_v5 = vadd.f32 %v3111_v56, %v6993_v27  ;;  %v3235_v53 = vmax.f32 %v3109_v62, 0.0 }
 0x3d1   : > { %v3238_v11 = vmax.f32 %v3120_v14, 0.0 }
 0x3d2   : > { %v3236_v16 = vmax.f32 %v3112_v5, 0.0 }
 0x3d3   : > { %v3268_v35 = vpack.c.bf16 %v3238_v11, %v3237_v60 }
 0x3d4   : > { %v3267_v23 = vpack.c.bf16 %v3236_v16, %v3235_v53  ;;  %v4846_v37 = vpop.f32.mrb[136].mxu1 }
 0x3d5   : > { %v3133_v45 = vadd.f32 %v4846_v37, %v7009_v61  ;;  %v3124_v28 = vpop.f32.mrb[137].mxu1 }
 0x3d6   : > { %v3125_v39 = vadd.f32 %v3124_v28, %v7003_v57  ;;  %v4847_v13 = vpop.f32.mrb[138].mxu1  ;;  %4888 = vmatprep.mubr.bf16.mxu0 %v3267_v23 }
 0x3d7   : > { %v3136_v20 = vadd.f32 %v4847_v13, %v7011_v18  ;;  %v3127_v47 = vpop.f32.mrb[139].mxu1  ;;  %4889 = vmatmul.mubr.bf16.vlgmr.msra.gmra.mrb[160].mxu0 %v3268_v35  ;;  %v3241_v49 = vmax.f32 %v3133_v45, 0.0 }
 0x3d8   : > { %v3128_v27 = vadd.f32 %v3127_v47, %v7005_v58  ;;  %v3239_v46 = vmax.f32 %v3125_v39, 0.0 }
 0x3d9   : > { %v3242_v8 = vmax.f32 %v3136_v20, 0.0 }
 0x3da   : > { %v3240_v42 = vmax.f32 %v3128_v27, 0.0 }
 0x3db   : > { %v3270_v25 = vpack.c.bf16 %v3242_v8, %v3241_v49 }
 0x3dc   : > { %v3269_v2 = vpack.c.bf16 %v3240_v42, %v3239_v46  ;;  %v4850_v63 = vpop.f32.mrb[140].mxu1 }
 0x3dd   : > { %v3149_v61 = vadd.f32 %v4850_v63, %v7021_v38  ;;  %v3140_v24 = vpop.f32.mrb[141].mxu1 }
 0x3de   : > { %v3141_v57 = vadd.f32 %v3140_v24, %v7015_v54  ;;  %v4851_v48 = vpop.f32.mrb[142].mxu1  ;;  %4892 = vmatprep.mubr.bf16.mxu0 %v3269_v2 }
 0x3df   : > { %v3152_v18 = vadd.f32 %v4851_v48, %v7023_v36  ;;  %v3143_v15 = vpop.f32.mrb[143].mxu1  ;;  %4893 = vmatmul.mubr.bf16.gmra.mrb[164].mxu0 %v3270_v25  ;;  %v3245_v22 = vmax.f32 %v3149_v61, 0.0 }
 0x3e0   : > { %v3144_v58 = vadd.f32 %v3143_v15, %v7017_v1  ;;  %v3243_v34 = vmax.f32 %v3141_v57, 0.0 }
 0x3e1   : > { %v3246_v21 = vmax.f32 %v3152_v18, 0.0 }
 0x3e2   : > { %v3244_v3 = vmax.f32 %v3144_v58, 0.0 }
 0x3e3   : > { %v3272_v59 = vpack.c.bf16 %v3246_v21, %v3245_v22 }
 0x3e4   : > { %v3271_v4 = vpack.c.bf16 %v3244_v3, %v3243_v34  ;;  %v4854_v51 = vpop.f32.mrb[144].mxu1 }
 0x3e5   : > { %v3165_v38 = vadd.f32 %v4854_v51, %v7033_v44  ;;  %v3156_v62 = vpop.f32.mrb[145].mxu1 }
 0x3e6   : > { %v3157_v54 = vadd.f32 %v3156_v62, %v7027_v50  ;;  %v4855_v26 = vpop.f32.mrb[146].mxu1  ;;  %4896 = vmatprep.mubr.bf16.mxu0 %v3271_v4 }
 0x3e7   : > { %v3168_v36 = vadd.f32 %v4855_v26, %v7035_v40  ;;  %v3159_v14 = vpop.f32.mrb[147].mxu1  ;;  %4897 = vmatmul.mubr.bf16.gmra.mrb[168].mxu0 %v3272_v59  ;;  %v3249_v56 = vmax.f32 %v3165_v38, 0.0 }
 0x3e8   : > { %v3160_v1 = vadd.f32 %v3159_v14, %v7029_v12  ;;  %v3247_v60 = vmax.f32 %v3157_v54, 0.0 }
 0x3e9   : > { %v3250_v5 = vmax.f32 %v3168_v36, 0.0 }
 0x3ea   : > { %v3248_v11 = vmax.f32 %v3160_v1, 0.0 }
 0x3eb   : > { %v3274_v53 = vpack.c.bf16 %v3250_v5, %v3249_v56  ;;  %v5161_v5 = vld [vmem:[%s5740_s20 + $0x8] sm:$0xff]  }
 0x3ec   : > { %v3273_v16 = vpack.c.bf16 %v3248_v11, %v3247_v60  ;;  %v4858_v35 = vpop.f32.mrb[148].mxu1  ;;  %v5162_v60 = vld [vmem:[%s5740_s20] sm:$0xff]  }
 0x3ed   : > { %v3181_v44 = vadd.f32 %v4858_v35, %v7045_v17  ;;  %v3172_v23 = vpop.f32.mrb[149].mxu1  ;;  %v3515_v11 = vunpack.c.l.bf16 %v5162_v60  ;;  %v3518_v35 = vunpack.c.h.bf16 %v5161_v5 }
 0x3ee   : > { %v3173_v50 = vadd.f32 %v3172_v23, %v7039_v0  ;;  %v4859_v37 = vpop.f32.mrb[150].mxu1  ;;  %4900 = vmatprep.mubr.bf16.mxu0 %v3273_v16 }
 0x3ef   : > { %v3184_v40 = vadd.f32 %v4859_v37, %v7047_v9  ;;  %v3175_v45 = vpop.f32.mrb[151].mxu1  ;;  %4901 = vmatmul.mubr.bf16.gmra.mrb[172].mxu0 %v3274_v53  ;;  %v3253_v28 = vmax.f32 %v3181_v44, 0.0  ;;  %v3516_v44 = vunpack.c.h.bf16 %v5162_v60  ;;  %v5167_v60 = vld [vmem:[%s5740_s20 + $0x38] sm:$0xff]  }
 0x3f0   : > { %v3176_v12 = vadd.f32 %v3175_v45, %v7041_v41  ;;  %v3251_v13 = vmax.f32 %v3173_v50, 0.0 }
 0x3f1   : > { %v3254_v39 = vmax.f32 %v3184_v40, 0.0 }
 0x3f2   : > { %v3252_v20 = vmax.f32 %v3176_v12, 0.0 }
 0x3f3   : > { %v3276_v47 = vpack.c.bf16 %v3254_v39, %v3253_v28 }
 0x3f4   : > { %v3275_v27 = vpack.c.bf16 %v3252_v20, %v3251_v13  ;;  %v4862_v49 = vpop.f32.mrb[152].mxu1 }
 0x3f5   : > { %v3197_v17 = vadd.f32 %v4862_v49, %v7057_v30  ;;  %v3188_v8 = vpop.f32.mrb[153].mxu1  ;;  %v5163_v49 = vld [vmem:[%s5740_s20 + $0x18] sm:$0xff]  }
 0x3f6   : > { %v3189_v0 = vadd.f32 %v3188_v8, %v7051_v43  ;;  %v4863_v46 = vpop.f32.mrb[154].mxu1  ;;  %4904 = vmatprep.mubr.bf16.mxu0 %v3275_v27 }
 0x3f7   : > { %v3200_v9 = vadd.f32 %v4863_v46, %v7059_v19  ;;  %v3191_v42 = vpop.f32.mrb[155].mxu1  ;;  %4905 = vmatmul.mubr.bf16.gmra.mrb[176].mxu0 %v3276_v47  ;;  %v3257_v25 = vmax.f32 %v3197_v17, 0.0  ;;  %v3521_v17 = vunpack.c.l.bf16 %v5163_v49  ;;  %v5164_v46 = vld [vmem:[%s5740_s20 + $0x10] sm:$0xff]  }
 0x3f8   : > { %v3192_v41 = vadd.f32 %v3191_v42, %v7053_v29  ;;  %v3255_v63 = vmax.f32 %v3189_v0, 0.0 }
 0x3f9   : > { %v3258_v2 = vmax.f32 %v3200_v9, 0.0  ;;  %v3519_v9 = vunpack.c.l.bf16 %v5164_v46 }
 0x3fa   : > { %v3256_v61 = vmax.f32 %v3192_v41, 0.0 }
 0x3fb   : > { %v3278_v24 = vpack.c.bf16 %v3258_v2, %v3257_v25  ;;  %v3522_v25 = vunpack.c.h.bf16 %v5163_v49 }
 0x3fc   : > { %v3277_v57 = vpack.c.bf16 %v3256_v61, %v3255_v63  ;;  %v4866_v48 = vpop.f32.mrb[156].mxu1  ;;  %v3520_v61 = vunpack.c.h.bf16 %v5164_v46 }
 0x3fd   : > { %v3213_v30 = vadd.f32 %v4866_v48, %v7069_v33  ;;  %v3204_v18 = vpop.f32.mrb[157].mxu1 }
 0x3fe   : > { %v3205_v43 = vadd.f32 %v3204_v18, %v7063_v55  ;;  %v4867_v15 = vpop.f32.mrb[158].mxu1  ;;  %4908 = vmatprep.mubr.bf16.mxu0 %v3277_v57 }
 0x3ff   : > { %v3216_v19 = vadd.f32 %v4867_v15, %v7071_v52  ;;  %v3207_v58 = vpop.f32.mrb[159].mxu1  ;;  %4909 = vmatmul.mubr.bf16.gmra.mrb[180].mxu0 %v3278_v24  ;;  %v3261_v22 = vmax.f32 %v3213_v30, 0.0 }
 0x400   : > { %v3208_v29 = vadd.f32 %v3207_v58, %v7065_v32  ;;  %v3259_v34 = vmax.f32 %v3205_v43, 0.0 }
 0x401   : > { %v3262_v21 = vmax.f32 %v3216_v19, 0.0 }
 0x402   : > { %v3260_v3 = vmax.f32 %v3208_v29, 0.0 }
 0x403   : > { %v3280_v59 = vpack.c.bf16 %v3262_v21, %v3261_v22  ;;  %v5165_v22 = vld [vmem:[%s5740_s20 + $0x28] sm:$0xff]  }
 0x404   : > { %v3279_v4 = vpack.c.bf16 %v3260_v3, %v3259_v34  ;;  %v4870_v51 = vpop.f32.mrb[160].mxu1  ;;  %v3525_v21 = vunpack.c.l.bf16 %v5165_v22 }
 0x405   : > { %v3229_v33 = vadd.f32 %v4870_v51, %v7081_v31  ;;  %v3220_v38 = vpop.f32.mrb[161].mxu1 }
 0x406   : > { %v3221_v55 = vadd.f32 %v3220_v38, %v7075_v7  ;;  %v4871_v62 = vpop.f32.mrb[162].mxu1  ;;  %4912 = vmatprep.mubr.bf16.mxu1 %v3279_v4  ;;  %v7120_v7 = vld [vmem:[%s7268_s7] ss:$0 sm:$0xff]  ;;  %v3526_v38 = vunpack.c.h.bf16 %v5165_v22 }
 0x407   : > { %v3232_v52 = vadd.f32 %v4871_v62, %v7083_v6  ;;  %v3223_v54 = vpop.f32.mrb[163].mxu1  ;;  %4913 = vmatmul.mubr.bf16.vlgmr.msra.gmra.mrb[164].mxu1 %v3280_v59  ;;  %v3265_v26 = vmax.f32 %v3229_v33, 0.0  ;;  %v3517_v6 = vunpack.c.l.bf16 %v5161_v5  ;;  %v5166_v59 = vld [vmem:[%s5740_s20 + $0x20] sm:$0xff]  }
 0x408   : > { %v3224_v32 = vadd.f32 %v3223_v54, %v7077_v10  ;;  %v3263_v14 = vmax.f32 %v3221_v55, 0.0  ;;  %v3523_v4 = vunpack.c.l.bf16 %v5166_v59 }
 0x409   : > { %v3266_v36 = vmax.f32 %v3232_v52, 0.0  ;;  %v3524_v52 = vunpack.c.h.bf16 %v5166_v59 }
 0x40a   : > { %v3264_v1 = vmax.f32 %v3224_v32, 0.0 }
 0x40b   : > { %v3282_v56 = vpack.c.bf16 %v3266_v36, %v3265_v26 }
 0x40c   : > { %v3281_v31 = vpack.c.bf16 %v3264_v1, %v3263_v14 }
 0x40e   : > { %4916 = vmatprep.mubr.bf16.mxu1 %v3281_v31 }
 0x40f   : > { %4917 = vmatmul.mubr.bf16.gmra.mrb[168].mxu1 %v3282_v56 }
 0x4aa   : > { %v4890_v53 = vpop.f32.mrb[160].mxu0 }
 0x4ab   : > { %v3397_v10 = vadd.f32 %v4890_v53, %v7120_v7  ;;  %v3388_v16 = vpop.f32.mrb[161].mxu0 }
 0x4ac   : > { %v3389_v23 = vadd.f32 %v7120_v7, %v3388_v16  ;;  %v4891_v50 = vpop.f32.mrb[162].mxu0  ;;  %v5168_v16 = vld [vmem:[%s5740_s20 + $0x30] sm:$0xff]  }
 0x4ad   : > { %v3549_v37 = vadd.f32 %v3517_v6, %v3397_v10  ;;  %v3400_v40 = vadd.f32 %v4891_v50, %v7120_v7  ;;  %v3391_v45 = vpop.f32.mrb[163].mxu0  ;;  %v3530_v50 = vunpack.c.h.bf16 %v5167_v60 }
 0x4ae   : > { %v3547_v12 = vadd.f32 %v3515_v11, %v3389_v23  ;;  %v3392_v28 = vadd.f32 %v7120_v7, %v3391_v45  ;;  %v3529_v11 = vunpack.c.l.bf16 %v5167_v60  ;;  %v3528_v45 = vunpack.c.h.bf16 %v5168_v16 }
 0x4af   : > { %v3581_v39 = vmax.f32 %v3549_v37, 0.0  ;;  %v3550_v13 = vadd.f32 %v3518_v35, %v3400_v40  ;;  %v3527_v35 = vunpack.c.l.bf16 %v5168_v16 }
 0x4b0   : > { %v3579_v20 = vmax.f32 %v3547_v12, 0.0  ;;  %v3548_v47 = vadd.f32 %v3516_v44, %v3392_v28 }
 0x4b1   : > { %3613 = vst [vmem:[%s7129_s17 + $0x10] sm:$0xff] %v3581_v39  ;;  %v3582_v27 = vmax.f32 %v3550_v13, 0.0 }
 0x4b2   : > { %3611 = vst [vmem:[%s7129_s17] sm:$0xff] %v3579_v20  ;;  %v3580_v8 = vmax.f32 %v3548_v47, 0.0  ;;  %v4894_v0 = vpop.f32.mrb[164].mxu0 }
 0x4b3   : > { %3614 = vst [vmem:[%s7129_s17 + $0x18] sm:$0xff] %v3582_v27  ;;  %v3413_v42 = vadd.f32 %v4894_v0, %v7120_v7  ;;  %v3404_v41 = vpop.f32.mrb[165].mxu0  ;;  %v5169_v0 = vld [vmem:[%s5740_s20 + $0x48] sm:$0xff]  }
 0x4b4   : > { %3612 = vst [vmem:[%s7129_s17 + $0x8] sm:$0xff] %v3580_v8  ;;  %v3405_v2 = vadd.f32 %v7120_v7, %v3404_v41  ;;  %v4895_v63 = vpop.f32.mrb[166].mxu0  ;;  %v3533_v46 = vunpack.c.l.bf16 %v5169_v0  ;;  %v5170_v41 = vld [vmem:[%s5740_s20 + $0x40] sm:$0xff]  }
 0x4b5   : > { %v3553_v24 = vadd.f32 %v3521_v17, %v3413_v42  ;;  %v3416_v57 = vadd.f32 %v4895_v63, %v7120_v7  ;;  %v3407_v48 = vpop.f32.mrb[167].mxu0 }
 0x4b6   : > { %v3551_v30 = vadd.f32 %v3519_v9, %v3405_v2  ;;  %v3408_v18 = vadd.f32 %v7120_v7, %v3407_v48  ;;  %v3532_v48 = vunpack.c.h.bf16 %v5170_v41 }
 0x4b7   : > { %v3585_v43 = vmax.f32 %v3553_v24, 0.0  ;;  %v3554_v15 = vadd.f32 %v3522_v25, %v3416_v57  ;;  %v3531_v25 = vunpack.c.l.bf16 %v5170_v41 }
 0x4b8   : > { %v3583_v19 = vmax.f32 %v3551_v30, 0.0  ;;  %v3552_v58 = vadd.f32 %v3520_v61, %v3408_v18  ;;  %v3534_v61 = vunpack.c.h.bf16 %v5169_v0 }
 0x4b9   : > { %3617 = vst [vmem:[%s7129_s17 + $0x30] sm:$0xff] %v3585_v43  ;;  %v3586_v29 = vmax.f32 %v3554_v15, 0.0 }
 0x4ba   : > { %3615 = vst [vmem:[%s7129_s17 + $0x20] sm:$0xff] %v3583_v19  ;;  %v3584_v34 = vmax.f32 %v3552_v58, 0.0  ;;  %v4898_v3 = vpop.f32.mrb[168].mxu0 }
 0x4bb   : > { %3618 = vst [vmem:[%s7129_s17 + $0x38] sm:$0xff] %v3586_v29  ;;  %v3429_v51 = vadd.f32 %v4898_v3, %v7120_v7  ;;  %v3420_v33 = vpop.f32.mrb[169].mxu0  ;;  %v5171_v3 = vld [vmem:[%s5740_s20 + $0x58] sm:$0xff]  }
 0x4bc   : > { %3616 = vst [vmem:[%s7129_s17 + $0x28] sm:$0xff] %v3584_v34  ;;  %v3421_v55 = vadd.f32 %v7120_v7, %v3420_v33  ;;  %v4899_v62 = vpop.f32.mrb[170].mxu0  ;;  %v3537_v59 = vunpack.c.l.bf16 %v5171_v3  ;;  %v5172_v33 = vld [vmem:[%s5740_s20 + $0x50] sm:$0xff]  }
 0x4bd   : > { %v3557_v54 = vadd.f32 %v3525_v21, %v3429_v51  ;;  %v3432_v32 = vadd.f32 %v4899_v62, %v7120_v7  ;;  %v3423_v26 = vpop.f32.mrb[171].mxu0 }
 0x4be   : > { %v3555_v36 = vadd.f32 %v3523_v4, %v3421_v55  ;;  %v3424_v14 = vadd.f32 %v7120_v7, %v3423_v26  ;;  %v3536_v26 = vunpack.c.h.bf16 %v5172_v33 }
 0x4bf   : > { %v3589_v1 = vmax.f32 %v3557_v54, 0.0  ;;  %v3558_v56 = vadd.f32 %v3526_v38, %v3432_v32  ;;  %v3535_v38 = vunpack.c.l.bf16 %v5172_v33 }
 0x4c0   : > { %v3587_v31 = vmax.f32 %v3555_v36, 0.0  ;;  %v3556_v5 = vadd.f32 %v3524_v52, %v3424_v14  ;;  %v3538_v52 = vunpack.c.h.bf16 %v5171_v3 }
 0x4c1   : > { %3621 = vst [vmem:[%s7129_s17 + $0x50] sm:$0xff] %v3589_v1  ;;  %v3590_v6 = vmax.f32 %v3558_v56, 0.0 }
 0x4c2   : > { %3619 = vst [vmem:[%s7129_s17 + $0x40] sm:$0xff] %v3587_v31  ;;  %v3588_v53 = vmax.f32 %v3556_v5, 0.0  ;;  %v4902_v10 = vpop.f32.mrb[172].mxu0 }
 0x4c3   : > { %3622 = vst [vmem:[%s7129_s17 + $0x58] sm:$0xff] %v3590_v6  ;;  %v3445_v44 = vadd.f32 %v4902_v10, %v7120_v7  ;;  %v3436_v23 = vpop.f32.mrb[173].mxu0  ;;  %v5173_v10 = vld [vmem:[%s5740_s20 + $0x68] sm:$0xff]  }
 0x4c4   : > { %3620 = vst [vmem:[%s7129_s17 + $0x48] sm:$0xff] %v3588_v53  ;;  %v3437_v37 = vadd.f32 %v7120_v7, %v3436_v23  ;;  %v4903_v40 = vpop.f32.mrb[174].mxu0  ;;  %v3541_v16 = vunpack.c.l.bf16 %v5173_v10  ;;  %v5174_v23 = vld [vmem:[%s5740_s20 + $0x60] sm:$0xff]  }
 0x4c5   : > { %v3561_v12 = vadd.f32 %v3529_v11, %v3445_v44  ;;  %v3448_v28 = vadd.f32 %v4903_v40, %v7120_v7  ;;  %v3439_v39 = vpop.f32.mrb[175].mxu0 }
 0x4c6   : > { %v3559_v13 = vadd.f32 %v3527_v35, %v3437_v37  ;;  %v3440_v20 = vadd.f32 %v7120_v7, %v3439_v39  ;;  %v3540_v39 = vunpack.c.h.bf16 %v5174_v23 }
 0x4c7   : > { %v3593_v47 = vmax.f32 %v3561_v12, 0.0  ;;  %v3562_v27 = vadd.f32 %v3530_v50, %v3448_v28  ;;  %v3539_v50 = vunpack.c.l.bf16 %v5174_v23 }
 0x4c8   : > { %v3591_v49 = vmax.f32 %v3559_v13, 0.0  ;;  %v3560_v17 = vadd.f32 %v3528_v45, %v3440_v20  ;;  %v3542_v45 = vunpack.c.h.bf16 %v5173_v10 }
 0x4c9   : > { %3625 = vst [vmem:[%s7129_s17 + $0x70] sm:$0xff] %v3593_v47  ;;  %v3594_v8 = vmax.f32 %v3562_v27, 0.0 }
 0x4ca   : > { %3623 = vst [vmem:[%s7129_s17 + $0x60] sm:$0xff] %v3591_v49  ;;  %v3592_v9 = vmax.f32 %v3560_v17, 0.0  ;;  %v4906_v42 = vpop.f32.mrb[176].mxu0 }
 0x4cb   : > { %3626 = vst [vmem:[%s7129_s17 + $0x78] sm:$0xff] %v3594_v8  ;;  %v3461_v2 = vadd.f32 %v4906_v42, %v7120_v7  ;;  %v3452_v63 = vpop.f32.mrb[177].mxu0  ;;  %v5175_v42 = vld [vmem:[%s5740_s20 + $0x78] sm:$0xff]  }
 0x4cc   : > { %3624 = vst [vmem:[%s7129_s17 + $0x68] sm:$0xff] %v3592_v9  ;;  %v3453_v24 = vadd.f32 %v7120_v7, %v3452_v63  ;;  %v4907_v57 = vpop.f32.mrb[178].mxu0  ;;  %v3545_v41 = vunpack.c.l.bf16 %v5175_v42  ;;  %v5176_v63 = vld [vmem:[%s5740_s20 + $0x70] sm:$0xff]   ;;  %s7207_s20 = scalar_lea.hbm %s7592_s23, %s4225_s22 }
 0x4cd   : > { %v3565_v30 = vadd.f32 %v3533_v46, %v3461_v2  ;;  %v3464_v18 = vadd.f32 %v4907_v57, %v7120_v7  ;;  %v3455_v43 = vpop.f32.mrb[179].mxu0 }
 0x4ce   : > { %v3563_v15 = vadd.f32 %v3531_v25, %v3453_v24  ;;  %v3456_v19 = vadd.f32 %v7120_v7, %v3455_v43  ;;  %v3544_v43 = vunpack.c.h.bf16 %v5176_v63 }
 0x4cf   : > { %v3597_v58 = vmax.f32 %v3565_v30, 0.0  ;;  %v3566_v29 = vadd.f32 %v3534_v61, %v3464_v18  ;;  %v3543_v61 = vunpack.c.l.bf16 %v5176_v63 }
 0x4d0   : > { %v3595_v22 = vmax.f32 %v3563_v15, 0.0  ;;  %v3564_v21 = vadd.f32 %v3532_v48, %v3456_v19  ;;  %v3546_v48 = vunpack.c.h.bf16 %v5175_v42 }
 0x4d1   : > { %3629 = vst [vmem:[%s7129_s17 + $0x90] sm:$0xff] %v3597_v58  ;;  %v3598_v34 = vmax.f32 %v3566_v29, 0.0 }
 0x4d2   : > { %3627 = vst [vmem:[%s7129_s17 + $0x80] sm:$0xff] %v3595_v22  ;;  %v3596_v4 = vmax.f32 %v3564_v21, 0.0  ;;  %v4910_v51 = vpop.f32.mrb[180].mxu0 }
 0x4d3   : > { %3630 = vst [vmem:[%s7129_s17 + $0x98] sm:$0xff] %v3598_v34  ;;  %v3477_v55 = vadd.f32 %v4910_v51, %v7120_v7  ;;  %v3468_v62 = vpop.f32.mrb[181].mxu0 }
 0x4d4   : > { %3628 = vst [vmem:[%s7129_s17 + $0x88] sm:$0xff] %v3596_v4  ;;  %v3469_v54 = vadd.f32 %v7120_v7, %v3468_v62  ;;  %v4911_v32 = vpop.f32.mrb[182].mxu0 }
 0x4d5   : > { %v3569_v36 = vadd.f32 %v3537_v59, %v3477_v55  ;;  %v3480_v14 = vadd.f32 %v4911_v32, %v7120_v7  ;;  %v3471_v1 = vpop.f32.mrb[183].mxu0 }
 0x4d6   : > { %v3567_v56 = vadd.f32 %v3535_v38, %v3469_v54  ;;  %v3472_v31 = vadd.f32 %v7120_v7, %v3471_v1 }
 0x4d7   : > { %v3601_v5 = vmax.f32 %v3569_v36, 0.0  ;;  %v3570_v6 = vadd.f32 %v3538_v52, %v3480_v14 }
 0x4d8   : > { %v3599_v60 = vmax.f32 %v3567_v56, 0.0  ;;  %v3568_v11 = vadd.f32 %v3536_v26, %v3472_v31 }
 0x4d9   : > { %3633 = vst [vmem:[%s7129_s17 + $0xb0] sm:$0xff] %v3601_v5  ;;  %v3602_v53 = vmax.f32 %v3570_v6, 0.0 }
 0x4da   : > { %3631 = vst [vmem:[%s7129_s17 + $0xa0] sm:$0xff] %v3599_v60  ;;  %v3600_v35 = vmax.f32 %v3568_v11, 0.0  ;;  %v4914_v44 = vpop.f32.mrb[164].mxu1 }
 0x4db   : > { %3634 = vst [vmem:[%s7129_s17 + $0xb8] sm:$0xff] %v3602_v53  ;;  %v3493_v37 = vadd.f32 %v4914_v44, %v7120_v7  ;;  %v3484_v40 = vpop.f32.mrb[165].mxu1 }
 0x4dc   : > { %3632 = vst [vmem:[%s7129_s17 + $0xa8] sm:$0xff] %v3600_v35  ;;  %v3485_v12 = vadd.f32 %v7120_v7, %v3484_v40  ;;  %v4915_v28 = vpop.f32.mrb[166].mxu1 }
 0x4dd   : > { %v3573_v13 = vadd.f32 %v3541_v16, %v3493_v37  ;;  %v3496_v20 = vadd.f32 %v4915_v28, %v7120_v7  ;;  %v3487_v47 = vpop.f32.mrb[167].mxu1 }
 0x4de   : > { %v3571_v27 = vadd.f32 %v3539_v50, %v3485_v12  ;;  %v3488_v49 = vadd.f32 %v7120_v7, %v3487_v47 }
 0x4df   : > { %v3605_v17 = vmax.f32 %v3573_v13, 0.0  ;;  %v3574_v8 = vadd.f32 %v3542_v45, %v3496_v20 }
 0x4e0   : > { %v3603_v0 = vmax.f32 %v3571_v27, 0.0  ;;  %v3572_v46 = vadd.f32 %v3540_v39, %v3488_v49 }
 0x4e1   : > { %3637 = vst [vmem:[%s7129_s17 + $0xd0] sm:$0xff] %v3605_v17  ;;  %v3606_v9 = vmax.f32 %v3574_v8, 0.0 }
 0x4e2   : > { %3635 = vst [vmem:[%s7129_s17 + $0xc0] sm:$0xff] %v3603_v0  ;;  %v3604_v25 = vmax.f32 %v3572_v46, 0.0  ;;  %v4918_v2 = vpop.f32.mrb[168].mxu1 }
 0x4e3   : > { %3638 = vst [vmem:[%s7129_s17 + $0xd8] sm:$0xff] %v3606_v9  ;;  %v3509_v24 = vadd.f32 %v4918_v2, %v7120_v7  ;;  %v3500_v57 = vpop.f32.mrb[169].mxu1 }
 0x4e4   : > { %3636 = vst [vmem:[%s7129_s17 + $0xc8] sm:$0xff] %v3604_v25  ;;  %v3501_v30 = vadd.f32 %v7120_v7, %v3500_v57  ;;  %v4919_v18 = vpop.f32.mrb[170].mxu1 }
 0x4e5   : > { %v3577_v15 = vadd.f32 %v3545_v41, %v3509_v24  ;;  %v3512_v19 = vadd.f32 %v4919_v18, %v7120_v7  ;;  %v3503_v58 = vpop.f32.mrb[171].mxu1 }
 0x4e6   : > { %v3575_v29 = vadd.f32 %v3543_v61, %v3501_v30  ;;  %v3504_v22 = vadd.f32 %v7120_v7, %v3503_v58 }
 0x4e7   : > { %v3609_v21 = vmax.f32 %v3577_v15, 0.0  ;;  %v3578_v34 = vadd.f32 %v3546_v48, %v3512_v19 }
 0x4e8   : > { %v3607_v3 = vmax.f32 %v3575_v29, 0.0  ;;  %v3576_v59 = vadd.f32 %v3544_v43, %v3504_v22 }
 0x4e9   : > { %3641 = vst [vmem:[%s7129_s17 + $0xf0] sm:$0xff] %v3609_v21  ;;  %v3610_v4 = vmax.f32 %v3578_v34, 0.0 }
 0x4ea   : > { %3639 = vst [vmem:[%s7129_s17 + $0xe0] sm:$0xff] %v3607_v3  ;;  %v3608_v7 = vmax.f32 %v3576_v59, 0.0 }
 0x4eb   : > { %3642 = vst [vmem:[%s7129_s17 + $0xf8] sm:$0xff] %v3610_v4 }
 0x4ec   : > { %3640 = vst [vmem:[%s7129_s17 + $0xe8] sm:$0xff] %v3608_v7 }
 0x4ed   : > { %5334 = shalt.err (!%p5331_p11)
}
 0x4ee   : > { %s5335_s13 = scalar_lea.hbm %s7207_s20, 4096  ;;  %s5339_s21 = scalar_lea.hbm %s7592_s23, 8192 }
 0x4ef   : > { %p5336_p12 = scmp.ne.s32.totalorder %s7207_s20, %s5335_s13  ;;  %p5340_p9 = scmp.lt.u32.totalorder %s7207_s20, %s7592_s23 }
 0x4f0   : > { %p5341_p0 = scmp.lt.u32.totalorder %s5339_s21, %s5335_s13  ;;  %p5343_p4 = scmp.lt.u32.totalorder %s5335_s13, %s7207_s20 }
 0x4f1   : > { %p5337_p6 = pnand %p5336_p12, %p5629_p10 }
 0x4f2   : > { %p5342_p2 = por %p5341_p0, %p5340_p9 }
 0x4f3   : > { %p5338_p7 = pneg %p5337_p6 }
 0x4f4   : > { %p5344_p8 = por %p5343_p4, %p5342_p2 }
 0x4f6   : > { %p5345_p1 = pnand %p5344_p8, %p5338_p7 }
 0x4f8   : > { %5348 = shalt.err (!%p5345_p1)
}
 0x4f9   : > { %s5426_s17 = smov 128   ;;  %s5427_s2 = smov 8  }
 0x4fa   : > { %4952 = dma.vmem_to_hbm [thread:$0]  (%p5629_p10), %s7209_s14, 4096, %s7207_s20, %s3644_s0, %s5426_s17, %s5426_s17, %s5427_s2  }
 0x4fb PF: > { %s7593_s22 = sld [smem:[#allocation17_spill]]  ;;  %s7594_s16 = sld [smem:[#allocation19_spill]] }
 0x4fc   : > { %p7596_p3 = scmp.ge.s32.totalorder %s5415_s10, 2 }
 0x501   : > { %s3675_s24 = sand.u32 1, %s7593_s22   ;;  %p7595_p13 = scmp.ne.s32.totalorder %s7594_s16, 0 }
 0x502   : > { %s3676_s4 = scalar_lea.sflag [#allocation4], %s3675_s24 }
 0x503   : > { %p4972_p5 = pnand %p7596_p3, %p7595_p13 }
 0x505   : > { %5390 = dma.done.wait (!%p4972_p5), %s3676_s4, 4096  }
 0x506   : > { %5392 = vsyncadd (!%p4972_p5), %s3676_s4, 4294963200  ;;  %s28_s10 = sadd.s32 1, %s5415_s10   ;;  %s7597_s27 = smov %s5399_s28 }
 0x507   : > { %p25_p11 = scmp.ge.s32.totalorder %s28_s10, 4   ;;  %s7598_s28 = smov %s5403_s29 }
 0x508   : > { %s7599_s29 = smov %s5644_s12  ;;  %s7600_s30 = smov %s5411_s9 }
 0x509   : > { %s7601_s9 = smov %s7603_s18  ;;  %27 = sbr.rel (!%p25_p11) target bundleno = 15 (0xf), region = 122 }
 0x510   :  { %3681 = vsyncpa [#allocation3], 1 }
 0x511   :  { %3683 = vsyncpa [#allocation3 + $0x1], 1 }
 0x512   :  { %3684 = vsyncpa [#allocation6], 1 }
 0x513   :  { %3686 = vsyncpa [#allocation6 + $0x1], 1 }
 0x514   :  { %3687 = vsyncpa [#allocation9], 1 }
 0x515   :  { %3688 = vsyncpa [#allocation4], 1 }
 0x516   :  { %3690 = vsyncpa [#allocation4 + $0x1], 1 }

</bundles_post_ra>
